<compile_context>
chip_gen: v6e
topology: v6e:2x2x1
jax: 0.10.0
libtpu: 0.0.40
codegen_flags: <defaults>
</compile_context>

<pallas_src>
import functools

import numpy as np
import jax
import jax.numpy as jnp
from jax import lax
from jax.experimental import pallas as pl
from jax.experimental.pallas import tpu as pltpu

# ---- model hyper-params (mirrors CNN_Retino __init__) ----------------------
PARAMS = dict(
    shape_in=(3, 50, 50),     # (Cin, Hin, Win) -- survives 4 conv+pool stages
    initial_filters=4,
    num_fc1=32,
    num_classes=5,
    dropout_rate=0.25,
)


def _layer_dims(shape_in, init_f):
    """Static per-layer shapes, mirroring findConv2dOutShape(..., pool=2)."""
    cin, h, w = shape_in
    chans = [cin, init_f, 2 * init_f, 4 * init_f, 8 * init_f]
    dims = []
    for i in range(4):
        ho, wo = h - 2, w - 2            # valid 3x3 conv, stride 1
        hp, wp = ho // 2, wo // 2        # floor-mode 2x2/2 max-pool
        dims.append(dict(cin=chans[i], cout=chans[i + 1],
                         h=h, w=w, ho=ho, wo=wo, hp=hp, wp=wp))
        h, w = hp, wp
    return dims


def _pool_selector(wo, wp):
    """(wo, 2*wp) 0/1 matrix: column p selects conv col 2p, column wp+p -> 2p+1."""
    s = np.zeros((wo, 2 * wp), np.float32)
    for p in range(wp):
        s[2 * p, p] = 1.0
        s[2 * p + 1, wp + p] = 1.0
    return jnp.asarray(s)


# ---------------------------------------------------------------------------
# Fused Pallas kernel: whole forward pass for B samples per grid step.
# ---------------------------------------------------------------------------
def _fused_forward_kernel(x_ref, u_ref,
                          w1_ref, b1_ref, s1_ref,
                          w2_ref, b2_ref, s2_ref,
                          w3_ref, b3_ref, s3_ref,
                          w4_ref, b4_ref,
                          fw1_ref, fb1_ref, fw2_ref, fb2_ref,
                          o_ref,
                          a1_ref, a2_ref, a3_ref, xft_ref,
                          *, dims, dropout_rate, batch):
    f32 = jnp.float32
    d1, d2, d3, d4 = dims

    def conv_relu_pool(b, in_ref, w_ref, b_ref, s_ref, out_ref, d):
        """conv3x3(valid) -> 2x2/2 maxpool -> bias -> ReLU for one sample.

        Layout: in_ref[b, row] is one (Cin, W) tile (channels on sublanes,
        W on lanes); out_ref[b, ph] is the pooled (Cout, Wp) tile.
        """
        hp, wp, wo = d['hp'], d['wp'], d['wo']
        taps = [[w_ref[kh, kw] for kw in range(3)] for kh in range(3)]   # (Cout, Cin)
        bias = b_ref[...]                                                # (Cout, 1)
        sel = s_ref[...]                                                 # (Wo, 2*Wp)

        def row_body(ph, carry):
            i0 = 2 * ph
            cmax = None
            for r in range(2):                      # the two conv rows pooled into ph
                rows = [in_ref[b, i0 + r + kh] for kh in range(3)]       # (Cin, W)
                acc = None
                for kh in range(3):
                    row = rows[kh]
                    for kw in range(3):
                        t = jnp.dot(taps[kh][kw], row[:, kw:kw + wo],
                                    preferred_element_type=f32)          # (Cout, Wo)
                        acc = t if acc is None else acc + t
                cmax = acc if cmax is None else jnp.maximum(cmax, acc)
            # W-pool: one stacked-selector dot, then max of the two lane halves.
            res = jnp.dot(cmax, sel, preferred_element_type=f32)         # (Cout, 2*Wp)
            pooled = jnp.maximum(res[:, :wp], res[:, wp:2 * wp])         # (Cout, Wp)
            # bias + ReLU after the 2x2 max: identical (monotone, shared bias).
            out_ref[b, ph] = jnp.maximum(pooled + bias, 0.0)
            return carry

        lax.fori_loop(0, hp, row_body, 0)

    # ---- conv blocks 1..3: loop over the B samples in this block ------------
    def per_sample(b, carry):
        conv_relu_pool(b, x_ref, w1_ref, b1_ref, s1_ref, a1_ref, d1)
        conv_relu_pool(b, a1_ref, w2_ref, b2_ref, s2_ref, a2_ref, d2)
        conv_relu_pool(b, a2_ref, w3_ref, b3_ref, s3_ref, a3_ref, d3)
        return carry

    lax.fori_loop(0, batch, per_sample, 0)

    # ---- conv block 4 (1x1 spatial output) + flatten into xft (Cout4, B) ----
    w4 = [[w4_ref[kh, kw] for kw in range(3)] for kh in range(3)]        # (Cout4, Cin4)
    b4 = b4_ref[...]                                                     # (Cout4, 1)
    wo4 = d4['wo']
    for b in range(batch):                       # tiny: ~30 ops per sample
        cmax = None
        for r in range(2):
            rows = [a3_ref[b, r + kh] for kh in range(3)]                # (Cin4, 4)
            acc = None
            for kh in range(3):
                row = rows[kh]
                for kw in range(3):
                    t = jnp.dot(w4[kh][kw], row[:, kw:kw + wo4],
                                preferred_element_type=f32)              # (Cout4, 2)
                    acc = t if acc is None else acc + t
            cmax = acc if cmax is None else jnp.maximum(cmax, acc)
        pooled = jnp.maximum(cmax[:, 0:1], cmax[:, 1:2])                 # (Cout4, 1)
        xft_ref[:, b:b + 1] = jnp.maximum(pooled + b4, 0.0)

    # ---- FC head, batched over the block (feature-major: features x batch) --
    xft = xft_ref[...]                                                   # (32, B)
    h = jnp.dot(fw1_ref[...], xft, preferred_element_type=f32) + fb1_ref[...]
    h = jnp.maximum(h, 0.0)
    # F.dropout defaults to training=True, so dropout IS applied in forward().
    # TODO(synk): cannot bit-match torch's RNG stream; drop-prob p / 1/(1-p)
    # scaling semantics are preserved with a per-sample jax.random mask.
    keep = (u_ref[0] >= dropout_rate).astype(f32)                        # (32, B)
    h = h * keep * (1.0 / (1.0 - dropout_rate))
    logits = jnp.dot(fw2_ref[...], h, preferred_element_type=f32) + fb2_ref[...]

    # log_softmax over the class axis (sublanes of the (classes, B) block)
    m = jnp.max(logits, axis=0, keepdims=True)
    s = logits - m
    lse = jnp.log(jnp.sum(jnp.exp(s), axis=0, keepdims=True))
    o_ref[0] = s - lse                                                   # (5, B)


# ---------------------------------------------------------------------------
# Wrapper: layout plumbing + the single pallas_call
# ---------------------------------------------------------------------------
def _const_spec(arr):
    nd = arr.ndim
    return pl.BlockSpec(arr.shape, lambda n, _nd=nd: (0,) * _nd)


def cnn_retino_forward(params, x_nchw, dropout_key, *, max_block=8):
    N, Cin, Hin, Win = x_nchw.shape
    init_f = PARAMS['initial_filters']
    num_fc1 = PARAMS['num_fc1']
    num_classes = PARAMS['num_classes']
    p_drop = float(PARAMS['dropout_rate'])
    dims = _layer_dims((Cin, Hin, Win), init_f)
    # Head flattens the final feature map as a pure channel vector; exact
    # because the spatial size after conv4+pool is 1x1 for this shape_in.
    assert dims[-1]['hp'] == 1 and dims[-1]['wp'] == 1

    # Per-step batch: amortize grid-step overhead but keep >=2 grid steps so
    # dimension_semantics=("parallel",) can shard across v7x's 2 TensorCores.
    if N >= 2 * max_block:
        B = max_block
    elif N >= 2:
        B = (N + 1) // 2
    else:
        B = 1
    n_steps = -(-N // B)
    Npad = n_steps * B

    # (N,C,H,W) -> (N,H,C,W): every per-row read in the kernel is then ONE
    # (C, W) tile with the wide W axis on the 128 lanes (lane-dense).
    x = jnp.transpose(x_nchw, (0, 2, 1, 3)).astype(jnp.float32)
    if Npad != N:
        x = jnp.pad(x, ((0, Npad - N), (0, 0), (0, 0), (0, 0)))

    # Dropout uniforms, feature-major so the in-kernel mask is (num_fc1, B).
    u = jax.random.uniform(dropout_key, (num_fc1, N), jnp.float32)
    if Npad != N:
        u = jnp.pad(u, ((0, 0), (0, Npad - N)), constant_values=1.0)
    u = jnp.transpose(u.reshape(num_fc1, n_steps, B), (1, 0, 2))   # (steps, 32, B)

    def conv_w(i):  # torch (Cout,Cin,3,3) -> (3,3,Cout,Cin)
        return jnp.transpose(params[f'conv{i}_w'], (2, 3, 0, 1)).astype(jnp.float32)

    def col(v):
        return v.reshape(-1, 1).astype(jnp.float32)

    consts = [
        conv_w(1), col(params['conv1_b']), _pool_selector(dims[0]['wo'], dims[0]['wp']),
        conv_w(2), col(params['conv2_b']), _pool_selector(dims[1]['wo'], dims[1]['wp']),
        conv_w(3), col(params['conv3_b']), _pool_selector(dims[2]['wo'], dims[2]['wp']),
        conv_w(4), col(params['conv4_b']),
        params['fc1_w'].astype(jnp.float32), col(params['fc1_b']),
        params['fc2_w'].astype(jnp.float32), col(params['fc2_b']),
    ]

    kernel = functools.partial(_fused_forward_kernel, dims=dims,
                               dropout_rate=p_drop, batch=B)

    in_specs = ([pl.BlockSpec((B, Hin, Cin, Win), lambda n: (n, 0, 0, 0)),
                 pl.BlockSpec((1, num_fc1, B), lambda n: (n, 0, 0))]
                + [_const_spec(a) for a in consts])

    out = pl.pallas_call(
        kernel,
        grid=(n_steps,),
        in_specs=in_specs,
        out_specs=pl.BlockSpec((1, num_classes, B), lambda n: (n, 0, 0)),
        out_shape=jax.ShapeDtypeStruct((n_steps, num_classes, B), jnp.float32),
        scratch_shapes=[
            pltpu.VMEM((B, dims[0]['hp'], dims[0]['cout'], dims[0]['wp']), jnp.float32),
            pltpu.VMEM((B, dims[1]['hp'], dims[1]['cout'], dims[1]['wp']), jnp.float32),
            pltpu.VMEM((B, dims[2]['hp'], dims[2]['cout'], dims[2]['wp']), jnp.float32),
            pltpu.VMEM((dims[3]['cout'], B), jnp.float32),
        ],
        compiler_params=pltpu.CompilerParams(dimension_semantics=("parallel",)),
    )(x, u, *consts)

    out = jnp.transpose(out, (0, 2, 1)).reshape(Npad, num_classes)
    return out[:N]


# ---------------------------------------------------------------------------
# Pure-JAX reference (same math, same dropout mask) for validation
# ---------------------------------------------------------------------------
def reference_forward(params, x_nchw, dropout_key):
    p_drop = PARAMS['dropout_rate']
    num_fc1 = PARAMS['num_fc1']
    N = x_nchw.shape[0]
    x = jnp.transpose(x_nchw, (0, 2, 3, 1)).astype(jnp.float32)
    for i in range(1, 5):
        w = jnp.transpose(params[f'conv{i}_w'], (2, 3, 1, 0))            # HWIO
        y = lax.conv_general_dilated(x, w, (1, 1), 'VALID',
                                     dimension_numbers=('NHWC', 'HWIO', 'NHWC'))
        y = jnp.maximum(y + params[f'conv{i}_b'], 0.0)
        x = lax.reduce_window(y, -jnp.inf, lax.max,
                              (1, 2, 2, 1), (1, 2, 2, 1), 'VALID')
    x = jnp.transpose(x, (0, 3, 1, 2)).reshape(N, -1)                    # torch flatten order
    h = jnp.maximum(x @ params['fc1_w'].T + params['fc1_b'], 0.0)
    u = jax.random.uniform(dropout_key, (num_fc1, N), jnp.float32)
    keep = (jnp.transpose(u) >= p_drop).astype(jnp.float32)
    h = h * keep / (1.0 - p_drop)
    logits = h @ params['fc2_w'].T + params['fc2_b']
    return jax.nn.log_softmax(logits, axis=-1)


# ---------------------------------------------------------------------------
# Deterministic parameter init (torch-shaped parameters)
# ---------------------------------------------------------------------------
def _uniform(key, shape, fan_in):
    bound = float(fan_in) ** -0.5
    return jax.random.uniform(key, shape, jnp.float32, -bound, bound)


def init_params(key):
    cin, hin, win = PARAMS['shape_in']
    f = PARAMS['initial_filters']
    num_fc1 = PARAMS['num_fc1']
    num_classes = PARAMS['num_classes']
    dims = _layer_dims((cin, hin, win), f)
    keys = jax.random.split(key, 12)
    p = {}
    for i, d in enumerate(dims):
        fan_in = d['cin'] * 9
        p[f'conv{i+1}_w'] = _uniform(keys[2 * i], (d['cout'], d['cin'], 3, 3), fan_in)
        p[f'conv{i+1}_b'] = _uniform(keys[2 * i + 1], (d['cout'],), fan_in)
    num_flatten = dims[-1]['hp'] * dims[-1]['wp'] * dims[-1]['cout']
    p['fc1_w'] = _uniform(keys[8], (num_fc1, num_flatten), num_flatten)
    p['fc1_b'] = _uniform(keys[9], (num_fc1,), num_flatten)
    p['fc2_w'] = _uniform(keys[10], (num_classes, num_fc1), num_fc1)
    p['fc2_b'] = _uniform(keys[11], (num_classes,), num_fc1)
    return p


# ---------------------------------------------------------------------------
if __name__ == "__main__":
    key = jax.random.PRNGKey(0)
    k_x, k_p, k_d = jax.random.split(key, 3)

    params = init_params(k_p)
    Cin, Hin, Win = PARAMS['shape_in']
    N = 4
    x = jax.random.normal(k_x, (N, Cin, Hin, Win), jnp.float32)     # NCHW like PyTorch

    out = jax.jit(cnn_retino_forward)(params, x, k_d)
    out = jax.block_until_ready(out)

    ref = jax.jit(reference_forward)(params, x, k_d)
    ref = jax.block_until_ready(ref)

    assert out.shape == (N, PARAMS['num_classes'])
    assert bool(jnp.all(jnp.isfinite(out)))
    # rows of log_softmax must exponentiate-and-sum to ~1
    assert bool(jnp.all(jnp.abs(jnp.sum(jnp.exp(out), axis=1) - 1.0) < 1e-3))
    # matches the pure-JAX reference (tolerance absorbs MXU default-precision rounding)
    assert bool(jnp.allclose(out, ref, atol=5e-2, rtol=5e-2)), (out, ref)
    print("KERNEL_OK")
</pallas_src>

<mosaic_0001>
module attributes {stable_mosaic.version = 11 : i64} {
  func.func @_fused_forward_kernel(%arg0: i32, %arg1: memref<2x50x3x50xf32, #tpu.memory_space<vmem>>, %arg2: memref<1x32x2xf32, #tpu.memory_space<vmem>>, %arg3: memref<3x3x4x3xf32, #tpu.memory_space<vmem>>, %arg4: memref<4x1xf32, #tpu.memory_space<vmem>>, %arg5: memref<48x48xf32, #tpu.memory_space<vmem>>, %arg6: memref<3x3x8x4xf32, #tpu.memory_space<vmem>>, %arg7: memref<8x1xf32, #tpu.memory_space<vmem>>, %arg8: memref<22x22xf32, #tpu.memory_space<vmem>>, %arg9: memref<3x3x16x8xf32, #tpu.memory_space<vmem>>, %arg10: memref<16x1xf32, #tpu.memory_space<vmem>>, %arg11: memref<9x8xf32, #tpu.memory_space<vmem>>, %arg12: memref<3x3x32x16xf32, #tpu.memory_space<vmem>>, %arg13: memref<32x1xf32, #tpu.memory_space<vmem>>, %arg14: memref<32x32xf32, #tpu.memory_space<vmem>>, %arg15: memref<32x1xf32, #tpu.memory_space<vmem>>, %arg16: memref<5x32xf32, #tpu.memory_space<vmem>>, %arg17: memref<5x1xf32, #tpu.memory_space<vmem>>, %arg18: memref<1x5x2xf32, #tpu.memory_space<vmem>>, %arg19: memref<2x24x4x24xf32, #tpu.memory_space<vmem>>, %arg20: memref<2x11x8x11xf32, #tpu.memory_space<vmem>>, %arg21: memref<2x4x16x4xf32, #tpu.memory_space<vmem>>, %arg22: memref<32x2xf32, #tpu.memory_space<vmem>>) attributes {dimension_semantics = [#tpu.dimension_semantics<parallel>], iteration_bounds = array<i64: 2>, scalar_prefetch = 0 : i64, scratch_operands = 4 : i64, tpu.core_type = #tpu.core_type<tc>, window_params = [{transform_indices = @transform_0, window_bounds = array<i64: 2, 50, 3, 50>}, {transform_indices = @transform_1, window_bounds = array<i64: 1, 32, 2>}, {pipeline_mode = #tpu.pipeline_mode<synchronous>, transform_indices = @transform_2, window_bounds = array<i64: 3, 3, 4, 3>}, {pipeline_mode = #tpu.pipeline_mode<synchronous>, transform_indices = @transform_3, window_bounds = array<i64: 4, 1>}, {pipeline_mode = #tpu.pipeline_mode<synchronous>, transform_indices = @transform_4, window_bounds = array<i64: 48, 48>}, {pipeline_mode = #tpu.pipeline_mode<synchronous>, transform_indices = @transform_5, window_bounds = array<i64: 3, 3, 8, 4>}, {pipeline_mode = #tpu.pipeline_mode<synchronous>, transform_indices = @transform_6, window_bounds = array<i64: 8, 1>}, {pipeline_mode = #tpu.pipeline_mode<synchronous>, transform_indices = @transform_7, window_bounds = array<i64: 22, 22>}, {pipeline_mode = #tpu.pipeline_mode<synchronous>, transform_indices = @transform_8, window_bounds = array<i64: 3, 3, 16, 8>}, {pipeline_mode = #tpu.pipeline_mode<synchronous>, transform_indices = @transform_9, window_bounds = array<i64: 16, 1>}, {pipeline_mode = #tpu.pipeline_mode<synchronous>, transform_indices = @transform_10, window_bounds = array<i64: 9, 8>}, {pipeline_mode = #tpu.pipeline_mode<synchronous>, transform_indices = @transform_11, window_bounds = array<i64: 3, 3, 32, 16>}, {pipeline_mode = #tpu.pipeline_mode<synchronous>, transform_indices = @transform_12, window_bounds = array<i64: 32, 1>}, {pipeline_mode = #tpu.pipeline_mode<synchronous>, transform_indices = @transform_13, window_bounds = array<i64: 32, 32>}, {pipeline_mode = #tpu.pipeline_mode<synchronous>, transform_indices = @transform_14, window_bounds = array<i64: 32, 1>}, {pipeline_mode = #tpu.pipeline_mode<synchronous>, transform_indices = @transform_15, window_bounds = array<i64: 5, 32>}, {pipeline_mode = #tpu.pipeline_mode<synchronous>, transform_indices = @transform_16, window_bounds = array<i64: 5, 1>}, {transform_indices = @transform_17, window_bounds = array<i64: 1, 5, 2>}]} {
    %c0_i32 = arith.constant 0 : i32
    %c2_i32 = arith.constant 2 : i32
    %0 = arith.addi %c0_i32, %c2_i32 : i32
    %c1_i32 = arith.constant 1 : i32
    scf.for %arg23 = %c0_i32 to %0 step %c1_i32  : i32 {
      %c0_147 = arith.constant 0 : index
      %c0_148 = arith.constant 0 : index
      %c0_149 = arith.constant 0 : index
      %c0_150 = arith.constant 0 : index
      %199 = vector.load %arg3[%c0_147, %c0_148, %c0_149, %c0_150] : memref<3x3x4x3xf32, #tpu.memory_space<vmem>>, vector<1x1x4x3xf32>
      %200 = vector.shape_cast %199 : vector<1x1x4x3xf32> to vector<4x3xf32>
      %c0_151 = arith.constant 0 : index
      %c1_152 = arith.constant 1 : index
      %c0_153 = arith.constant 0 : index
      %c0_154 = arith.constant 0 : index
      %201 = vector.load %arg3[%c0_151, %c1_152, %c0_153, %c0_154] : memref<3x3x4x3xf32, #tpu.memory_space<vmem>>, vector<1x1x4x3xf32>
      %202 = vector.shape_cast %201 : vector<1x1x4x3xf32> to vector<4x3xf32>
      %c0_155 = arith.constant 0 : index
      %c2_156 = arith.constant 2 : index
      %c0_157 = arith.constant 0 : index
      %c0_158 = arith.constant 0 : index
      %203 = vector.load %arg3[%c0_155, %c2_156, %c0_157, %c0_158] : memref<3x3x4x3xf32, #tpu.memory_space<vmem>>, vector<1x1x4x3xf32>
      %204 = vector.shape_cast %203 : vector<1x1x4x3xf32> to vector<4x3xf32>
      %c1_159 = arith.constant 1 : index
      %c0_160 = arith.constant 0 : index
      %c0_161 = arith.constant 0 : index
      %c0_162 = arith.constant 0 : index
      %205 = vector.load %arg3[%c1_159, %c0_160, %c0_161, %c0_162] : memref<3x3x4x3xf32, #tpu.memory_space<vmem>>, vector<1x1x4x3xf32>
      %206 = vector.shape_cast %205 : vector<1x1x4x3xf32> to vector<4x3xf32>
      %c1_163 = arith.constant 1 : index
      %c1_164 = arith.constant 1 : index
      %c0_165 = arith.constant 0 : index
      %c0_166 = arith.constant 0 : index
      %207 = vector.load %arg3[%c1_163, %c1_164, %c0_165, %c0_166] : memref<3x3x4x3xf32, #tpu.memory_space<vmem>>, vector<1x1x4x3xf32>
      %208 = vector.shape_cast %207 : vector<1x1x4x3xf32> to vector<4x3xf32>
      %c1_167 = arith.constant 1 : index
      %c2_168 = arith.constant 2 : index
      %c0_169 = arith.constant 0 : index
      %c0_170 = arith.constant 0 : index
      %209 = vector.load %arg3[%c1_167, %c2_168, %c0_169, %c0_170] : memref<3x3x4x3xf32, #tpu.memory_space<vmem>>, vector<1x1x4x3xf32>
      %210 = vector.shape_cast %209 : vector<1x1x4x3xf32> to vector<4x3xf32>
      %c2_171 = arith.constant 2 : index
      %c0_172 = arith.constant 0 : index
      %c0_173 = arith.constant 0 : index
      %c0_174 = arith.constant 0 : index
      %211 = vector.load %arg3[%c2_171, %c0_172, %c0_173, %c0_174] : memref<3x3x4x3xf32, #tpu.memory_space<vmem>>, vector<1x1x4x3xf32>
      %212 = vector.shape_cast %211 : vector<1x1x4x3xf32> to vector<4x3xf32>
      %c2_175 = arith.constant 2 : index
      %c1_176 = arith.constant 1 : index
      %c0_177 = arith.constant 0 : index
      %c0_178 = arith.constant 0 : index
      %213 = vector.load %arg3[%c2_175, %c1_176, %c0_177, %c0_178] : memref<3x3x4x3xf32, #tpu.memory_space<vmem>>, vector<1x1x4x3xf32>
      %214 = vector.shape_cast %213 : vector<1x1x4x3xf32> to vector<4x3xf32>
      %c2_179 = arith.constant 2 : index
      %c2_180 = arith.constant 2 : index
      %c0_181 = arith.constant 0 : index
      %c0_182 = arith.constant 0 : index
      %215 = vector.load %arg3[%c2_179, %c2_180, %c0_181, %c0_182] : memref<3x3x4x3xf32, #tpu.memory_space<vmem>>, vector<1x1x4x3xf32>
      %216 = vector.shape_cast %215 : vector<1x1x4x3xf32> to vector<4x3xf32>
      %c0_183 = arith.constant 0 : index
      %c0_184 = arith.constant 0 : index
      %217 = vector.load %arg4[%c0_183, %c0_184] : memref<4x1xf32, #tpu.memory_space<vmem>>, vector<4x1xf32>
      %c0_185 = arith.constant 0 : index
      %c0_186 = arith.constant 0 : index
      %218 = vector.load %arg5[%c0_185, %c0_186] : memref<48x48xf32, #tpu.memory_space<vmem>>, vector<48x48xf32>
      %c0_i32_187 = arith.constant 0 : i32
      %c24_i32 = arith.constant 24 : i32
      %219 = arith.addi %c0_i32_187, %c24_i32 : i32
      %c1_i32_188 = arith.constant 1 : i32
      scf.for %arg24 = %c0_i32_187 to %219 step %c1_i32_188  : i32 {
        %c2_i32_276 = arith.constant 2 : i32
        %262 = arith.muli %c2_i32_276, %arg24 : i32
        %c0_i32_277 = arith.constant 0 : i32
        %263 = arith.addi %262, %c0_i32_277 : i32
        %c0_i32_278 = arith.constant 0 : i32
        %264 = arith.addi %263, %c0_i32_278 : i32
        %265 = arith.index_cast %arg23 : i32 to index
        %266 = arith.index_cast %264 : i32 to index
        %c0_279 = arith.constant 0 : index
        %c0_280 = arith.constant 0 : index
        %267 = vector.load %arg1[%265, %266, %c0_279, %c0_280] : memref<2x50x3x50xf32, #tpu.memory_space<vmem>>, vector<1x1x3x50xf32>
        %268 = vector.shape_cast %267 : vector<1x1x3x50xf32> to vector<3x50xf32>
        %c0_i32_281 = arith.constant 0 : i32
        %269 = arith.addi %262, %c0_i32_281 : i32
        %c1_i32_282 = arith.constant 1 : i32
        %270 = arith.addi %269, %c1_i32_282 : i32
        %271 = arith.index_cast %arg23 : i32 to index
        %272 = arith.index_cast %270 : i32 to index
        %c0_283 = arith.constant 0 : index
        %c0_284 = arith.constant 0 : index
        %273 = vector.load %arg1[%271, %272, %c0_283, %c0_284] : memref<2x50x3x50xf32, #tpu.memory_space<vmem>>, vector<1x1x3x50xf32>
        %274 = vector.shape_cast %273 : vector<1x1x3x50xf32> to vector<3x50xf32>
        %c0_i32_285 = arith.constant 0 : i32
        %275 = arith.addi %262, %c0_i32_285 : i32
        %c2_i32_286 = arith.constant 2 : i32
        %276 = arith.addi %275, %c2_i32_286 : i32
        %277 = arith.index_cast %arg23 : i32 to index
        %278 = arith.index_cast %276 : i32 to index
        %c0_287 = arith.constant 0 : index
        %c0_288 = arith.constant 0 : index
        %279 = vector.load %arg1[%277, %278, %c0_287, %c0_288] : memref<2x50x3x50xf32, #tpu.memory_space<vmem>>, vector<1x1x3x50xf32>
        %280 = vector.shape_cast %279 : vector<1x1x3x50xf32> to vector<3x50xf32>
        %281 = vector.extract_strided_slice %268 {offsets = [0, 0], sizes = [3, 48], strides = [1, 1]} : vector<3x50xf32> to vector<3x48xf32>
        %cst_289 = arith.constant dense<0.000000e+00> : vector<4x48xf32>
        %282 = tpu.matmul %200, %281, %cst_289 {dimension_numbers = #tpu.dot_dimension_numbers<[1], [0], [0], [1], [0, 0, 1, 1], [], []>} : vector<4x3xf32>, vector<3x48xf32>, vector<4x48xf32> -> vector<4x48xf32>
        %283 = vector.extract_strided_slice %268 {offsets = [0, 1], sizes = [3, 48], strides = [1, 1]} : vector<3x50xf32> to vector<3x48xf32>
        %cst_290 = arith.constant dense<0.000000e+00> : vector<4x48xf32>
        %284 = tpu.matmul %202, %283, %cst_290 {dimension_numbers = #tpu.dot_dimension_numbers<[1], [0], [0], [1], [0, 0, 1, 1], [], []>} : vector<4x3xf32>, vector<3x48xf32>, vector<4x48xf32> -> vector<4x48xf32>
        %285 = arith.addf %282, %284 : vector<4x48xf32>
        %286 = vector.extract_strided_slice %268 {offsets = [0, 2], sizes = [3, 48], strides = [1, 1]} : vector<3x50xf32> to vector<3x48xf32>
        %cst_291 = arith.constant dense<0.000000e+00> : vector<4x48xf32>
        %287 = tpu.matmul %204, %286, %cst_291 {dimension_numbers = #tpu.dot_dimension_numbers<[1], [0], [0], [1], [0, 0, 1, 1], [], []>} : vector<4x3xf32>, vector<3x48xf32>, vector<4x48xf32> -> vector<4x48xf32>
        %288 = arith.addf %285, %287 : vector<4x48xf32>
        %289 = vector.extract_strided_slice %274 {offsets = [0, 0], sizes = [3, 48], strides = [1, 1]} : vector<3x50xf32> to vector<3x48xf32>
        %cst_292 = arith.constant dense<0.000000e+00> : vector<4x48xf32>
        %290 = tpu.matmul %206, %289, %cst_292 {dimension_numbers = #tpu.dot_dimension_numbers<[1], [0], [0], [1], [0, 0, 1, 1], [], []>} : vector<4x3xf32>, vector<3x48xf32>, vector<4x48xf32> -> vector<4x48xf32>
        %291 = arith.addf %288, %290 : vector<4x48xf32>
        %292 = vector.extract_strided_slice %274 {offsets = [0, 1], sizes = [3, 48], strides = [1, 1]} : vector<3x50xf32> to vector<3x48xf32>
        %cst_293 = arith.constant dense<0.000000e+00> : vector<4x48xf32>
        %293 = tpu.matmul %208, %292, %cst_293 {dimension_numbers = #tpu.dot_dimension_numbers<[1], [0], [0], [1], [0, 0, 1, 1], [], []>} : vector<4x3xf32>, vector<3x48xf32>, vector<4x48xf32> -> vector<4x48xf32>
        %294 = arith.addf %291, %293 : vector<4x48xf32>
        %295 = vector.extract_strided_slice %274 {offsets = [0, 2], sizes = [3, 48], strides = [1, 1]} : vector<3x50xf32> to vector<3x48xf32>
        %cst_294 = arith.constant dense<0.000000e+00> : vector<4x48xf32>
        %296 = tpu.matmul %210, %295, %cst_294 {dimension_numbers = #tpu.dot_dimension_numbers<[1], [0], [0], [1], [0, 0, 1, 1], [], []>} : vector<4x3xf32>, vector<3x48xf32>, vector<4x48xf32> -> vector<4x48xf32>
        %297 = arith.addf %294, %296 : vector<4x48xf32>
        %298 = vector.extract_strided_slice %280 {offsets = [0, 0], sizes = [3, 48], strides = [1, 1]} : vector<3x50xf32> to vector<3x48xf32>
        %cst_295 = arith.constant dense<0.000000e+00> : vector<4x48xf32>
        %299 = tpu.matmul %212, %298, %cst_295 {dimension_numbers = #tpu.dot_dimension_numbers<[1], [0], [0], [1], [0, 0, 1, 1], [], []>} : vector<4x3xf32>, vector<3x48xf32>, vector<4x48xf32> -> vector<4x48xf32>
        %300 = arith.addf %297, %299 : vector<4x48xf32>
        %301 = vector.extract_strided_slice %280 {offsets = [0, 1], sizes = [3, 48], strides = [1, 1]} : vector<3x50xf32> to vector<3x48xf32>
        %cst_296 = arith.constant dense<0.000000e+00> : vector<4x48xf32>
        %302 = tpu.matmul %214, %301, %cst_296 {dimension_numbers = #tpu.dot_dimension_numbers<[1], [0], [0], [1], [0, 0, 1, 1], [], []>} : vector<4x3xf32>, vector<3x48xf32>, vector<4x48xf32> -> vector<4x48xf32>
        %303 = arith.addf %300, %302 : vector<4x48xf32>
        %304 = vector.extract_strided_slice %280 {offsets = [0, 2], sizes = [3, 48], strides = [1, 1]} : vector<3x50xf32> to vector<3x48xf32>
        %cst_297 = arith.constant dense<0.000000e+00> : vector<4x48xf32>
        %305 = tpu.matmul %216, %304, %cst_297 {dimension_numbers = #tpu.dot_dimension_numbers<[1], [0], [0], [1], [0, 0, 1, 1], [], []>} : vector<4x3xf32>, vector<3x48xf32>, vector<4x48xf32> -> vector<4x48xf32>
        %306 = arith.addf %303, %305 : vector<4x48xf32>
        %c1_i32_298 = arith.constant 1 : i32
        %307 = arith.addi %262, %c1_i32_298 : i32
        %c0_i32_299 = arith.constant 0 : i32
        %308 = arith.addi %307, %c0_i32_299 : i32
        %309 = arith.index_cast %arg23 : i32 to index
        %310 = arith.index_cast %308 : i32 to index
        %c0_300 = arith.constant 0 : index
        %c0_301 = arith.constant 0 : index
        %311 = vector.load %arg1[%309, %310, %c0_300, %c0_301] : memref<2x50x3x50xf32, #tpu.memory_space<vmem>>, vector<1x1x3x50xf32>
        %312 = vector.shape_cast %311 : vector<1x1x3x50xf32> to vector<3x50xf32>
        %c1_i32_302 = arith.constant 1 : i32
        %313 = arith.addi %262, %c1_i32_302 : i32
        %c1_i32_303 = arith.constant 1 : i32
        %314 = arith.addi %313, %c1_i32_303 : i32
        %315 = arith.index_cast %arg23 : i32 to index
        %316 = arith.index_cast %314 : i32 to index
        %c0_304 = arith.constant 0 : index
        %c0_305 = arith.constant 0 : index
        %317 = vector.load %arg1[%315, %316, %c0_304, %c0_305] : memref<2x50x3x50xf32, #tpu.memory_space<vmem>>, vector<1x1x3x50xf32>
        %318 = vector.shape_cast %317 : vector<1x1x3x50xf32> to vector<3x50xf32>
        %c1_i32_306 = arith.constant 1 : i32
        %319 = arith.addi %262, %c1_i32_306 : i32
        %c2_i32_307 = arith.constant 2 : i32
        %320 = arith.addi %319, %c2_i32_307 : i32
        %321 = arith.index_cast %arg23 : i32 to index
        %322 = arith.index_cast %320 : i32 to index
        %c0_308 = arith.constant 0 : index
        %c0_309 = arith.constant 0 : index
        %323 = vector.load %arg1[%321, %322, %c0_308, %c0_309] : memref<2x50x3x50xf32, #tpu.memory_space<vmem>>, vector<1x1x3x50xf32>
        %324 = vector.shape_cast %323 : vector<1x1x3x50xf32> to vector<3x50xf32>
        %325 = vector.extract_strided_slice %312 {offsets = [0, 0], sizes = [3, 48], strides = [1, 1]} : vector<3x50xf32> to vector<3x48xf32>
        %cst_310 = arith.constant dense<0.000000e+00> : vector<4x48xf32>
        %326 = tpu.matmul %200, %325, %cst_310 {dimension_numbers = #tpu.dot_dimension_numbers<[1], [0], [0], [1], [0, 0, 1, 1], [], []>} : vector<4x3xf32>, vector<3x48xf32>, vector<4x48xf32> -> vector<4x48xf32>
        %327 = vector.extract_strided_slice %312 {offsets = [0, 1], sizes = [3, 48], strides = [1, 1]} : vector<3x50xf32> to vector<3x48xf32>
        %cst_311 = arith.constant dense<0.000000e+00> : vector<4x48xf32>
        %328 = tpu.matmul %202, %327, %cst_311 {dimension_numbers = #tpu.dot_dimension_numbers<[1], [0], [0], [1], [0, 0, 1, 1], [], []>} : vector<4x3xf32>, vector<3x48xf32>, vector<4x48xf32> -> vector<4x48xf32>
        %329 = arith.addf %326, %328 : vector<4x48xf32>
        %330 = vector.extract_strided_slice %312 {offsets = [0, 2], sizes = [3, 48], strides = [1, 1]} : vector<3x50xf32> to vector<3x48xf32>
        %cst_312 = arith.constant dense<0.000000e+00> : vector<4x48xf32>
        %331 = tpu.matmul %204, %330, %cst_312 {dimension_numbers = #tpu.dot_dimension_numbers<[1], [0], [0], [1], [0, 0, 1, 1], [], []>} : vector<4x3xf32>, vector<3x48xf32>, vector<4x48xf32> -> vector<4x48xf32>
        %332 = arith.addf %329, %331 : vector<4x48xf32>
        %333 = vector.extract_strided_slice %318 {offsets = [0, 0], sizes = [3, 48], strides = [1, 1]} : vector<3x50xf32> to vector<3x48xf32>
        %cst_313 = arith.constant dense<0.000000e+00> : vector<4x48xf32>
        %334 = tpu.matmul %206, %333, %cst_313 {dimension_numbers = #tpu.dot_dimension_numbers<[1], [0], [0], [1], [0, 0, 1, 1], [], []>} : vector<4x3xf32>, vector<3x48xf32>, vector<4x48xf32> -> vector<4x48xf32>
        %335 = arith.addf %332, %334 : vector<4x48xf32>
        %336 = vector.extract_strided_slice %318 {offsets = [0, 1], sizes = [3, 48], strides = [1, 1]} : vector<3x50xf32> to vector<3x48xf32>
        %cst_314 = arith.constant dense<0.000000e+00> : vector<4x48xf32>
        %337 = tpu.matmul %208, %336, %cst_314 {dimension_numbers = #tpu.dot_dimension_numbers<[1], [0], [0], [1], [0, 0, 1, 1], [], []>} : vector<4x3xf32>, vector<3x48xf32>, vector<4x48xf32> -> vector<4x48xf32>
        %338 = arith.addf %335, %337 : vector<4x48xf32>
        %339 = vector.extract_strided_slice %318 {offsets = [0, 2], sizes = [3, 48], strides = [1, 1]} : vector<3x50xf32> to vector<3x48xf32>
        %cst_315 = arith.constant dense<0.000000e+00> : vector<4x48xf32>
        %340 = tpu.matmul %210, %339, %cst_315 {dimension_numbers = #tpu.dot_dimension_numbers<[1], [0], [0], [1], [0, 0, 1, 1], [], []>} : vector<4x3xf32>, vector<3x48xf32>, vector<4x48xf32> -> vector<4x48xf32>
        %341 = arith.addf %338, %340 : vector<4x48xf32>
        %342 = vector.extract_strided_slice %324 {offsets = [0, 0], sizes = [3, 48], strides = [1, 1]} : vector<3x50xf32> to vector<3x48xf32>
        %cst_316 = arith.constant dense<0.000000e+00> : vector<4x48xf32>
        %343 = tpu.matmul %212, %342, %cst_316 {dimension_numbers = #tpu.dot_dimension_numbers<[1], [0], [0], [1], [0, 0, 1, 1], [], []>} : vector<4x3xf32>, vector<3x48xf32>, vector<4x48xf32> -> vector<4x48xf32>
        %344 = arith.addf %341, %343 : vector<4x48xf32>
        %345 = vector.extract_strided_slice %324 {offsets = [0, 1], sizes = [3, 48], strides = [1, 1]} : vector<3x50xf32> to vector<3x48xf32>
        %cst_317 = arith.constant dense<0.000000e+00> : vector<4x48xf32>
        %346 = tpu.matmul %214, %345, %cst_317 {dimension_numbers = #tpu.dot_dimension_numbers<[1], [0], [0], [1], [0, 0, 1, 1], [], []>} : vector<4x3xf32>, vector<3x48xf32>, vector<4x48xf32> -> vector<4x48xf32>
        %347 = arith.addf %344, %346 : vector<4x48xf32>
        %348 = vector.extract_strided_slice %324 {offsets = [0, 2], sizes = [3, 48], strides = [1, 1]} : vector<3x50xf32> to vector<3x48xf32>
        %cst_318 = arith.constant dense<0.000000e+00> : vector<4x48xf32>
        %349 = tpu.matmul %216, %348, %cst_318 {dimension_numbers = #tpu.dot_dimension_numbers<[1], [0], [0], [1], [0, 0, 1, 1], [], []>} : vector<4x3xf32>, vector<3x48xf32>, vector<4x48xf32> -> vector<4x48xf32>
        %350 = arith.addf %347, %349 : vector<4x48xf32>
        %351 = arith.maximumf %306, %350 : vector<4x48xf32>
        %cst_319 = arith.constant dense<0.000000e+00> : vector<4x48xf32>
        %352 = tpu.matmul %351, %218, %cst_319 {dimension_numbers = #tpu.dot_dimension_numbers<[1], [0], [0], [1], [0, 0, 1, 1], [], []>} : vector<4x48xf32>, vector<48x48xf32>, vector<4x48xf32> -> vector<4x48xf32>
        %353 = vector.extract_strided_slice %352 {offsets = [0, 0], sizes = [4, 24], strides = [1, 1]} : vector<4x48xf32> to vector<4x24xf32>
        %354 = vector.extract_strided_slice %352 {offsets = [0, 24], sizes = [4, 24], strides = [1, 1]} : vector<4x48xf32> to vector<4x24xf32>
        %355 = arith.maximumf %353, %354 : vector<4x24xf32>
        %356 = vector.broadcast %217 : vector<4x1xf32> to vector<4x24xf32>
        %357 = arith.addf %355, %356 : vector<4x24xf32>
        %cst_320 = arith.constant 0.000000e+00 : f32
        %358 = vector.broadcast %cst_320 : f32 to vector<4x24xf32>
        %359 = arith.maximumf %357, %358 : vector<4x24xf32>
        %360 = arith.index_cast %arg23 : i32 to index
        %361 = arith.index_cast %arg24 : i32 to index
        %c0_321 = arith.constant 0 : index
        %c0_322 = arith.constant 0 : index
        %362 = vector.load %arg19[%360, %361, %c0_321, %c0_322] : memref<2x24x4x24xf32, #tpu.memory_space<vmem>>, vector<1x1x4x24xf32>
        %363 = vector.shape_cast %362 : vector<1x1x4x24xf32> to vector<4x24xf32>
        %364 = vector.shape_cast %359 : vector<4x24xf32> to vector<1x1x4x24xf32>
        tpu.vector_store %arg19[%360, %361, %c0_321, %c0_322], %364 {strides = array<i32>} : memref<2x24x4x24xf32, #tpu.memory_space<vmem>>, vector<1x1x4x24xf32>,
      }
      %c24_i32_189 = arith.constant 24 : i32
      %c0_190 = arith.constant 0 : index
      %c0_191 = arith.constant 0 : index
      %c0_192 = arith.constant 0 : index
      %c0_193 = arith.constant 0 : index
      %220 = vector.load %arg6[%c0_190, %c0_191, %c0_192, %c0_193] : memref<3x3x8x4xf32, #tpu.memory_space<vmem>>, vector<1x1x8x4xf32>
      %221 = vector.shape_cast %220 : vector<1x1x8x4xf32> to vector<8x4xf32>
      %c0_194 = arith.constant 0 : index
      %c1_195 = arith.constant 1 : index
      %c0_196 = arith.constant 0 : index
      %c0_197 = arith.constant 0 : index
      %222 = vector.load %arg6[%c0_194, %c1_195, %c0_196, %c0_197] : memref<3x3x8x4xf32, #tpu.memory_space<vmem>>, vector<1x1x8x4xf32>
      %223 = vector.shape_cast %222 : vector<1x1x8x4xf32> to vector<8x4xf32>
      %c0_198 = arith.constant 0 : index
      %c2_199 = arith.constant 2 : index
      %c0_200 = arith.constant 0 : index
      %c0_201 = arith.constant 0 : index
      %224 = vector.load %arg6[%c0_198, %c2_199, %c0_200, %c0_201] : memref<3x3x8x4xf32, #tpu.memory_space<vmem>>, vector<1x1x8x4xf32>
      %225 = vector.shape_cast %224 : vector<1x1x8x4xf32> to vector<8x4xf32>
      %c1_202 = arith.constant 1 : index
      %c0_203 = arith.constant 0 : index
      %c0_204 = arith.constant 0 : index
      %c0_205 = arith.constant 0 : index
      %226 = vector.load %arg6[%c1_202, %c0_203, %c0_204, %c0_205] : memref<3x3x8x4xf32, #tpu.memory_space<vmem>>, vector<1x1x8x4xf32>
      %227 = vector.shape_cast %226 : vector<1x1x8x4xf32> to vector<8x4xf32>
      %c1_206 = arith.constant 1 : index
      %c1_207 = arith.constant 1 : index
      %c0_208 = arith.constant 0 : index
      %c0_209 = arith.constant 0 : index
      %228 = vector.load %arg6[%c1_206, %c1_207, %c0_208, %c0_209] : memref<3x3x8x4xf32, #tpu.memory_space<vmem>>, vector<1x1x8x4xf32>
      %229 = vector.shape_cast %228 : vector<1x1x8x4xf32> to vector<8x4xf32>
      %c1_210 = arith.constant 1 : index
      %c2_211 = arith.constant 2 : index
      %c0_212 = arith.constant 0 : index
      %c0_213 = arith.constant 0 : index
      %230 = vector.load %arg6[%c1_210, %c2_211, %c0_212, %c0_213] : memref<3x3x8x4xf32, #tpu.memory_space<vmem>>, vector<1x1x8x4xf32>
      %231 = vector.shape_cast %230 : vector<1x1x8x4xf32> to vector<8x4xf32>
      %c2_214 = arith.constant 2 : index
      %c0_215 = arith.constant 0 : index
      %c0_216 = arith.constant 0 : index
      %c0_217 = arith.constant 0 : index
      %232 = vector.load %arg6[%c2_214, %c0_215, %c0_216, %c0_217] : memref<3x3x8x4xf32, #tpu.memory_space<vmem>>, vector<1x1x8x4xf32>
      %233 = vector.shape_cast %232 : vector<1x1x8x4xf32> to vector<8x4xf32>
      %c2_218 = arith.constant 2 : index
      %c1_219 = arith.constant 1 : index
      %c0_220 = arith.constant 0 : index
      %c0_221 = arith.constant 0 : index
      %234 = vector.load %arg6[%c2_218, %c1_219, %c0_220, %c0_221] : memref<3x3x8x4xf32, #tpu.memory_space<vmem>>, vector<1x1x8x4xf32>
      %235 = vector.shape_cast %234 : vector<1x1x8x4xf32> to vector<8x4xf32>
      %c2_222 = arith.constant 2 : index
      %c2_223 = arith.constant 2 : index
      %c0_224 = arith.constant 0 : index
      %c0_225 = arith.constant 0 : index
      %236 = vector.load %arg6[%c2_222, %c2_223, %c0_224, %c0_225] : memref<3x3x8x4xf32, #tpu.memory_space<vmem>>, vector<1x1x8x4xf32>
      %237 = vector.shape_cast %236 : vector<1x1x8x4xf32> to vector<8x4xf32>
      %c0_226 = arith.constant 0 : index
      %c0_227 = arith.constant 0 : index
      %238 = vector.load %arg7[%c0_226, %c0_227] : memref<8x1xf32, #tpu.memory_space<vmem>>, vector<8x1xf32>
      %c0_228 = arith.constant 0 : index
      %c0_229 = arith.constant 0 : index
      %239 = vector.load %arg8[%c0_228, %c0_229] : memref<22x22xf32, #tpu.memory_space<vmem>>, vector<22x22xf32>
      %c0_i32_230 = arith.constant 0 : i32
      %c11_i32 = arith.constant 11 : i32
      %240 = arith.addi %c0_i32_230, %c11_i32 : i32
      %c1_i32_231 = arith.constant 1 : i32
      scf.for %arg24 = %c0_i32_230 to %240 step %c1_i32_231  : i32 {
        %c2_i32_276 = arith.constant 2 : i32
        %262 = arith.muli %c2_i32_276, %arg24 : i32
        %c0_i32_277 = arith.constant 0 : i32
        %263 = arith.addi %262, %c0_i32_277 : i32
        %c0_i32_278 = arith.constant 0 : i32
        %264 = arith.addi %263, %c0_i32_278 : i32
        %265 = arith.index_cast %arg23 : i32 to index
        %266 = arith.index_cast %264 : i32 to index
        %c0_279 = arith.constant 0 : index
        %c0_280 = arith.constant 0 : index
        %267 = vector.load %arg19[%265, %266, %c0_279, %c0_280] : memref<2x24x4x24xf32, #tpu.memory_space<vmem>>, vector<1x1x4x24xf32>
        %268 = vector.shape_cast %267 : vector<1x1x4x24xf32> to vector<4x24xf32>
        %c0_i32_281 = arith.constant 0 : i32
        %269 = arith.addi %262, %c0_i32_281 : i32
        %c1_i32_282 = arith.constant 1 : i32
        %270 = arith.addi %269, %c1_i32_282 : i32
        %271 = arith.index_cast %arg23 : i32 to index
        %272 = arith.index_cast %270 : i32 to index
        %c0_283 = arith.constant 0 : index
        %c0_284 = arith.constant 0 : index
        %273 = vector.load %arg19[%271, %272, %c0_283, %c0_284] : memref<2x24x4x24xf32, #tpu.memory_space<vmem>>, vector<1x1x4x24xf32>
        %274 = vector.shape_cast %273 : vector<1x1x4x24xf32> to vector<4x24xf32>
        %c0_i32_285 = arith.constant 0 : i32
        %275 = arith.addi %262, %c0_i32_285 : i32
        %c2_i32_286 = arith.constant 2 : i32
        %276 = arith.addi %275, %c2_i32_286 : i32
        %277 = arith.index_cast %arg23 : i32 to index
        %278 = arith.index_cast %276 : i32 to index
        %c0_287 = arith.constant 0 : index
        %c0_288 = arith.constant 0 : index
        %279 = vector.load %arg19[%277, %278, %c0_287, %c0_288] : memref<2x24x4x24xf32, #tpu.memory_space<vmem>>, vector<1x1x4x24xf32>
        %280 = vector.shape_cast %279 : vector<1x1x4x24xf32> to vector<4x24xf32>
        %281 = vector.extract_strided_slice %268 {offsets = [0, 0], sizes = [4, 22], strides = [1, 1]} : vector<4x24xf32> to vector<4x22xf32>
        %cst_289 = arith.constant dense<0.000000e+00> : vector<8x22xf32>
        %282 = tpu.matmul %221, %281, %cst_289 {dimension_numbers = #tpu.dot_dimension_numbers<[1], [0], [0], [1], [0, 0, 1, 1], [], []>} : vector<8x4xf32>, vector<4x22xf32>, vector<8x22xf32> -> vector<8x22xf32>
        %283 = vector.extract_strided_slice %268 {offsets = [0, 1], sizes = [4, 22], strides = [1, 1]} : vector<4x24xf32> to vector<4x22xf32>
        %cst_290 = arith.constant dense<0.000000e+00> : vector<8x22xf32>
        %284 = tpu.matmul %223, %283, %cst_290 {dimension_numbers = #tpu.dot_dimension_numbers<[1], [0], [0], [1], [0, 0, 1, 1], [], []>} : vector<8x4xf32>, vector<4x22xf32>, vector<8x22xf32> -> vector<8x22xf32>
        %285 = arith.addf %282, %284 : vector<8x22xf32>
        %286 = vector.extract_strided_slice %268 {offsets = [0, 2], sizes = [4, 22], strides = [1, 1]} : vector<4x24xf32> to vector<4x22xf32>
        %cst_291 = arith.constant dense<0.000000e+00> : vector<8x22xf32>
        %287 = tpu.matmul %225, %286, %cst_291 {dimension_numbers = #tpu.dot_dimension_numbers<[1], [0], [0], [1], [0, 0, 1, 1], [], []>} : vector<8x4xf32>, vector<4x22xf32>, vector<8x22xf32> -> vector<8x22xf32>
        %288 = arith.addf %285, %287 : vector<8x22xf32>
        %289 = vector.extract_strided_slice %274 {offsets = [0, 0], sizes = [4, 22], strides = [1, 1]} : vector<4x24xf32> to vector<4x22xf32>
        %cst_292 = arith.constant dense<0.000000e+00> : vector<8x22xf32>
        %290 = tpu.matmul %227, %289, %cst_292 {dimension_numbers = #tpu.dot_dimension_numbers<[1], [0], [0], [1], [0, 0, 1, 1], [], []>} : vector<8x4xf32>, vector<4x22xf32>, vector<8x22xf32> -> vector<8x22xf32>
        %291 = arith.addf %288, %290 : vector<8x22xf32>
        %292 = vector.extract_strided_slice %274 {offsets = [0, 1], sizes = [4, 22], strides = [1, 1]} : vector<4x24xf32> to vector<4x22xf32>
        %cst_293 = arith.constant dense<0.000000e+00> : vector<8x22xf32>
        %293 = tpu.matmul %229, %292, %cst_293 {dimension_numbers = #tpu.dot_dimension_numbers<[1], [0], [0], [1], [0, 0, 1, 1], [], []>} : vector<8x4xf32>, vector<4x22xf32>, vector<8x22xf32> -> vector<8x22xf32>
        %294 = arith.addf %291, %293 : vector<8x22xf32>
        %295 = vector.extract_strided_slice %274 {offsets = [0, 2], sizes = [4, 22], strides = [1, 1]} : vector<4x24xf32> to vector<4x22xf32>
        %cst_294 = arith.constant dense<0.000000e+00> : vector<8x22xf32>
        %296 = tpu.matmul %231, %295, %cst_294 {dimension_numbers = #tpu.dot_dimension_numbers<[1], [0], [0], [1], [0, 0, 1, 1], [], []>} : vector<8x4xf32>, vector<4x22xf32>, vector<8x22xf32> -> vector<8x22xf32>
        %297 = arith.addf %294, %296 : vector<8x22xf32>
        %298 = vector.extract_strided_slice %280 {offsets = [0, 0], sizes = [4, 22], strides = [1, 1]} : vector<4x24xf32> to vector<4x22xf32>
        %cst_295 = arith.constant dense<0.000000e+00> : vector<8x22xf32>
        %299 = tpu.matmul %233, %298, %cst_295 {dimension_numbers = #tpu.dot_dimension_numbers<[1], [0], [0], [1], [0, 0, 1, 1], [], []>} : vector<8x4xf32>, vector<4x22xf32>, vector<8x22xf32> -> vector<8x22xf32>
        %300 = arith.addf %297, %299 : vector<8x22xf32>
        %301 = vector.extract_strided_slice %280 {offsets = [0, 1], sizes = [4, 22], strides = [1, 1]} : vector<4x24xf32> to vector<4x22xf32>
        %cst_296 = arith.constant dense<0.000000e+00> : vector<8x22xf32>
        %302 = tpu.matmul %235, %301, %cst_296 {dimension_numbers = #tpu.dot_dimension_numbers<[1], [0], [0], [1], [0, 0, 1, 1], [], []>} : vector<8x4xf32>, vector<4x22xf32>, vector<8x22xf32> -> vector<8x22xf32>
        %303 = arith.addf %300, %302 : vector<8x22xf32>
        %304 = vector.extract_strided_slice %280 {offsets = [0, 2], sizes = [4, 22], strides = [1, 1]} : vector<4x24xf32> to vector<4x22xf32>
        %cst_297 = arith.constant dense<0.000000e+00> : vector<8x22xf32>
        %305 = tpu.matmul %237, %304, %cst_297 {dimension_numbers = #tpu.dot_dimension_numbers<[1], [0], [0], [1], [0, 0, 1, 1], [], []>} : vector<8x4xf32>, vector<4x22xf32>, vector<8x22xf32> -> vector<8x22xf32>
        %306 = arith.addf %303, %305 : vector<8x22xf32>
        %c1_i32_298 = arith.constant 1 : i32
        %307 = arith.addi %262, %c1_i32_298 : i32
        %c0_i32_299 = arith.constant 0 : i32
        %308 = arith.addi %307, %c0_i32_299 : i32
        %309 = arith.index_cast %arg23 : i32 to index
        %310 = arith.index_cast %308 : i32 to index
        %c0_300 = arith.constant 0 : index
        %c0_301 = arith.constant 0 : index
        %311 = vector.load %arg19[%309, %310, %c0_300, %c0_301] : memref<2x24x4x24xf32, #tpu.memory_space<vmem>>, vector<1x1x4x24xf32>
        %312 = vector.shape_cast %311 : vector<1x1x4x24xf32> to vector<4x24xf32>
        %c1_i32_302 = arith.constant 1 : i32
        %313 = arith.addi %262, %c1_i32_302 : i32
        %c1_i32_303 = arith.constant 1 : i32
        %314 = arith.addi %313, %c1_i32_303 : i32
        %315 = arith.index_cast %arg23 : i32 to index
        %316 = arith.index_cast %314 : i32 to index
        %c0_304 = arith.constant 0 : index
        %c0_305 = arith.constant 0 : index
        %317 = vector.load %arg19[%315, %316, %c0_304, %c0_305] : memref<2x24x4x24xf32, #tpu.memory_space<vmem>>, vector<1x1x4x24xf32>
        %318 = vector.shape_cast %317 : vector<1x1x4x24xf32> to vector<4x24xf32>
        %c1_i32_306 = arith.constant 1 : i32
        %319 = arith.addi %262, %c1_i32_306 : i32
        %c2_i32_307 = arith.constant 2 : i32
        %320 = arith.addi %319, %c2_i32_307 : i32
        %321 = arith.index_cast %arg23 : i32 to index
        %322 = arith.index_cast %320 : i32 to index
        %c0_308 = arith.constant 0 : index
        %c0_309 = arith.constant 0 : index
        %323 = vector.load %arg19[%321, %322, %c0_308, %c0_309] : memref<2x24x4x24xf32, #tpu.memory_space<vmem>>, vector<1x1x4x24xf32>
        %324 = vector.shape_cast %323 : vector<1x1x4x24xf32> to vector<4x24xf32>
        %325 = vector.extract_strided_slice %312 {offsets = [0, 0], sizes = [4, 22], strides = [1, 1]} : vector<4x24xf32> to vector<4x22xf32>
        %cst_310 = arith.constant dense<0.000000e+00> : vector<8x22xf32>
        %326 = tpu.matmul %221, %325, %cst_310 {dimension_numbers = #tpu.dot_dimension_numbers<[1], [0], [0], [1], [0, 0, 1, 1], [], []>} : vector<8x4xf32>, vector<4x22xf32>, vector<8x22xf32> -> vector<8x22xf32>
        %327 = vector.extract_strided_slice %312 {offsets = [0, 1], sizes = [4, 22], strides = [1, 1]} : vector<4x24xf32> to vector<4x22xf32>
        %cst_311 = arith.constant dense<0.000000e+00> : vector<8x22xf32>
        %328 = tpu.matmul %223, %327, %cst_311 {dimension_numbers = #tpu.dot_dimension_numbers<[1], [0], [0], [1], [0, 0, 1, 1], [], []>} : vector<8x4xf32>, vector<4x22xf32>, vector<8x22xf32> -> vector<8x22xf32>
        %329 = arith.addf %326, %328 : vector<8x22xf32>
        %330 = vector.extract_strided_slice %312 {offsets = [0, 2], sizes = [4, 22], strides = [1, 1]} : vector<4x24xf32> to vector<4x22xf32>
        %cst_312 = arith.constant dense<0.000000e+00> : vector<8x22xf32>
        %331 = tpu.matmul %225, %330, %cst_312 {dimension_numbers = #tpu.dot_dimension_numbers<[1], [0], [0], [1], [0, 0, 1, 1], [], []>} : vector<8x4xf32>, vector<4x22xf32>, vector<8x22xf32> -> vector<8x22xf32>
        %332 = arith.addf %329, %331 : vector<8x22xf32>
        %333 = vector.extract_strided_slice %318 {offsets = [0, 0], sizes = [4, 22], strides = [1, 1]} : vector<4x24xf32> to vector<4x22xf32>
        %cst_313 = arith.constant dense<0.000000e+00> : vector<8x22xf32>
        %334 = tpu.matmul %227, %333, %cst_313 {dimension_numbers = #tpu.dot_dimension_numbers<[1], [0], [0], [1], [0, 0, 1, 1], [], []>} : vector<8x4xf32>, vector<4x22xf32>, vector<8x22xf32> -> vector<8x22xf32>
        %335 = arith.addf %332, %334 : vector<8x22xf32>
        %336 = vector.extract_strided_slice %318 {offsets = [0, 1], sizes = [4, 22], strides = [1, 1]} : vector<4x24xf32> to vector<4x22xf32>
        %cst_314 = arith.constant dense<0.000000e+00> : vector<8x22xf32>
        %337 = tpu.matmul %229, %336, %cst_314 {dimension_numbers = #tpu.dot_dimension_numbers<[1], [0], [0], [1], [0, 0, 1, 1], [], []>} : vector<8x4xf32>, vector<4x22xf32>, vector<8x22xf32> -> vector<8x22xf32>
        %338 = arith.addf %335, %337 : vector<8x22xf32>
        %339 = vector.extract_strided_slice %318 {offsets = [0, 2], sizes = [4, 22], strides = [1, 1]} : vector<4x24xf32> to vector<4x22xf32>
        %cst_315 = arith.constant dense<0.000000e+00> : vector<8x22xf32>
        %340 = tpu.matmul %231, %339, %cst_315 {dimension_numbers = #tpu.dot_dimension_numbers<[1], [0], [0], [1], [0, 0, 1, 1], [], []>} : vector<8x4xf32>, vector<4x22xf32>, vector<8x22xf32> -> vector<8x22xf32>
        %341 = arith.addf %338, %340 : vector<8x22xf32>
        %342 = vector.extract_strided_slice %324 {offsets = [0, 0], sizes = [4, 22], strides = [1, 1]} : vector<4x24xf32> to vector<4x22xf32>
        %cst_316 = arith.constant dense<0.000000e+00> : vector<8x22xf32>
        %343 = tpu.matmul %233, %342, %cst_316 {dimension_numbers = #tpu.dot_dimension_numbers<[1], [0], [0], [1], [0, 0, 1, 1], [], []>} : vector<8x4xf32>, vector<4x22xf32>, vector<8x22xf32> -> vector<8x22xf32>
        %344 = arith.addf %341, %343 : vector<8x22xf32>
        %345 = vector.extract_strided_slice %324 {offsets = [0, 1], sizes = [4, 22], strides = [1, 1]} : vector<4x24xf32> to vector<4x22xf32>
        %cst_317 = arith.constant dense<0.000000e+00> : vector<8x22xf32>
        %346 = tpu.matmul %235, %345, %cst_317 {dimension_numbers = #tpu.dot_dimension_numbers<[1], [0], [0], [1], [0, 0, 1, 1], [], []>} : vector<8x4xf32>, vector<4x22xf32>, vector<8x22xf32> -> vector<8x22xf32>
        %347 = arith.addf %344, %346 : vector<8x22xf32>
        %348 = vector.extract_strided_slice %324 {offsets = [0, 2], sizes = [4, 22], strides = [1, 1]} : vector<4x24xf32> to vector<4x22xf32>
        %cst_318 = arith.constant dense<0.000000e+00> : vector<8x22xf32>
        %349 = tpu.matmul %237, %348, %cst_318 {dimension_numbers = #tpu.dot_dimension_numbers<[1], [0], [0], [1], [0, 0, 1, 1], [], []>} : vector<8x4xf32>, vector<4x22xf32>, vector<8x22xf32> -> vector<8x22xf32>
        %350 = arith.addf %347, %349 : vector<8x22xf32>
        %351 = arith.maximumf %306, %350 : vector<8x22xf32>
        %cst_319 = arith.constant dense<0.000000e+00> : vector<8x22xf32>
        %352 = tpu.matmul %351, %239, %cst_319 {dimension_numbers = #tpu.dot_dimension_numbers<[1], [0], [0], [1], [0, 0, 1, 1], [], []>} : vector<8x22xf32>, vector<22x22xf32>, vector<8x22xf32> -> vector<8x22xf32>
        %353 = vector.extract_strided_slice %352 {offsets = [0, 0], sizes = [8, 11], strides = [1, 1]} : vector<8x22xf32> to vector<8x11xf32>
        %354 = vector.extract_strided_slice %352 {offsets = [0, 11], sizes = [8, 11], strides = [1, 1]} : vector<8x22xf32> to vector<8x11xf32>
        %355 = arith.maximumf %353, %354 : vector<8x11xf32>
        %356 = vector.broadcast %238 : vector<8x1xf32> to vector<8x11xf32>
        %357 = arith.addf %355, %356 : vector<8x11xf32>
        %cst_320 = arith.constant 0.000000e+00 : f32
        %358 = vector.broadcast %cst_320 : f32 to vector<8x11xf32>
        %359 = arith.maximumf %357, %358 : vector<8x11xf32>
        %360 = arith.index_cast %arg23 : i32 to index
        %361 = arith.index_cast %arg24 : i32 to index
        %c0_321 = arith.constant 0 : index
        %c0_322 = arith.constant 0 : index
        %362 = vector.load %arg20[%360, %361, %c0_321, %c0_322] : memref<2x11x8x11xf32, #tpu.memory_space<vmem>>, vector<1x1x8x11xf32>
        %363 = vector.shape_cast %362 : vector<1x1x8x11xf32> to vector<8x11xf32>
        %364 = vector.shape_cast %359 : vector<8x11xf32> to vector<1x1x8x11xf32>
        tpu.vector_store %arg20[%360, %361, %c0_321, %c0_322], %364 {strides = array<i32>} : memref<2x11x8x11xf32, #tpu.memory_space<vmem>>, vector<1x1x8x11xf32>,
      }
      %c11_i32_232 = arith.constant 11 : i32
      %c0_233 = arith.constant 0 : index
      %c0_234 = arith.constant 0 : index
      %c0_235 = arith.constant 0 : index
      %c0_236 = arith.constant 0 : index
      %241 = vector.load %arg9[%c0_233, %c0_234, %c0_235, %c0_236] : memref<3x3x16x8xf32, #tpu.memory_space<vmem>>, vector<1x1x16x8xf32>
      %242 = vector.shape_cast %241 : vector<1x1x16x8xf32> to vector<16x8xf32>
      %c0_237 = arith.constant 0 : index
      %c1_238 = arith.constant 1 : index
      %c0_239 = arith.constant 0 : index
      %c0_240 = arith.constant 0 : index
      %243 = vector.load %arg9[%c0_237, %c1_238, %c0_239, %c0_240] : memref<3x3x16x8xf32, #tpu.memory_space<vmem>>, vector<1x1x16x8xf32>
      %244 = vector.shape_cast %243 : vector<1x1x16x8xf32> to vector<16x8xf32>
      %c0_241 = arith.constant 0 : index
      %c2_242 = arith.constant 2 : index
      %c0_243 = arith.constant 0 : index
      %c0_244 = arith.constant 0 : index
      %245 = vector.load %arg9[%c0_241, %c2_242, %c0_243, %c0_244] : memref<3x3x16x8xf32, #tpu.memory_space<vmem>>, vector<1x1x16x8xf32>
      %246 = vector.shape_cast %245 : vector<1x1x16x8xf32> to vector<16x8xf32>
      %c1_245 = arith.constant 1 : index
      %c0_246 = arith.constant 0 : index
      %c0_247 = arith.constant 0 : index
      %c0_248 = arith.constant 0 : index
      %247 = vector.load %arg9[%c1_245, %c0_246, %c0_247, %c0_248] : memref<3x3x16x8xf32, #tpu.memory_space<vmem>>, vector<1x1x16x8xf32>
      %248 = vector.shape_cast %247 : vector<1x1x16x8xf32> to vector<16x8xf32>
      %c1_249 = arith.constant 1 : index
      %c1_250 = arith.constant 1 : index
      %c0_251 = arith.constant 0 : index
      %c0_252 = arith.constant 0 : index
      %249 = vector.load %arg9[%c1_249, %c1_250, %c0_251, %c0_252] : memref<3x3x16x8xf32, #tpu.memory_space<vmem>>, vector<1x1x16x8xf32>
      %250 = vector.shape_cast %249 : vector<1x1x16x8xf32> to vector<16x8xf32>
      %c1_253 = arith.constant 1 : index
      %c2_254 = arith.constant 2 : index
      %c0_255 = arith.constant 0 : index
      %c0_256 = arith.constant 0 : index
      %251 = vector.load %arg9[%c1_253, %c2_254, %c0_255, %c0_256] : memref<3x3x16x8xf32, #tpu.memory_space<vmem>>, vector<1x1x16x8xf32>
      %252 = vector.shape_cast %251 : vector<1x1x16x8xf32> to vector<16x8xf32>
      %c2_257 = arith.constant 2 : index
      %c0_258 = arith.constant 0 : index
      %c0_259 = arith.constant 0 : index
      %c0_260 = arith.constant 0 : index
      %253 = vector.load %arg9[%c2_257, %c0_258, %c0_259, %c0_260] : memref<3x3x16x8xf32, #tpu.memory_space<vmem>>, vector<1x1x16x8xf32>
      %254 = vector.shape_cast %253 : vector<1x1x16x8xf32> to vector<16x8xf32>
      %c2_261 = arith.constant 2 : index
      %c1_262 = arith.constant 1 : index
      %c0_263 = arith.constant 0 : index
      %c0_264 = arith.constant 0 : index
      %255 = vector.load %arg9[%c2_261, %c1_262, %c0_263, %c0_264] : memref<3x3x16x8xf32, #tpu.memory_space<vmem>>, vector<1x1x16x8xf32>
      %256 = vector.shape_cast %255 : vector<1x1x16x8xf32> to vector<16x8xf32>
      %c2_265 = arith.constant 2 : index
      %c2_266 = arith.constant 2 : index
      %c0_267 = arith.constant 0 : index
      %c0_268 = arith.constant 0 : index
      %257 = vector.load %arg9[%c2_265, %c2_266, %c0_267, %c0_268] : memref<3x3x16x8xf32, #tpu.memory_space<vmem>>, vector<1x1x16x8xf32>
      %258 = vector.shape_cast %257 : vector<1x1x16x8xf32> to vector<16x8xf32>
      %c0_269 = arith.constant 0 : index
      %c0_270 = arith.constant 0 : index
      %259 = vector.load %arg10[%c0_269, %c0_270] : memref<16x1xf32, #tpu.memory_space<vmem>>, vector<16x1xf32>
      %c0_271 = arith.constant 0 : index
      %c0_272 = arith.constant 0 : index
      %260 = vector.load %arg11[%c0_271, %c0_272] : memref<9x8xf32, #tpu.memory_space<vmem>>, vector<9x8xf32>
      %c0_i32_273 = arith.constant 0 : i32
      %c4_i32 = arith.constant 4 : i32
      %261 = arith.addi %c0_i32_273, %c4_i32 : i32
      %c1_i32_274 = arith.constant 1 : i32
      scf.for %arg24 = %c0_i32_273 to %261 step %c1_i32_274  : i32 {
        %c2_i32_276 = arith.constant 2 : i32
        %262 = arith.muli %c2_i32_276, %arg24 : i32
        %c0_i32_277 = arith.constant 0 : i32
        %263 = arith.addi %262, %c0_i32_277 : i32
        %c0_i32_278 = arith.constant 0 : i32
        %264 = arith.addi %263, %c0_i32_278 : i32
        %265 = arith.index_cast %arg23 : i32 to index
        %266 = arith.index_cast %264 : i32 to index
        %c0_279 = arith.constant 0 : index
        %c0_280 = arith.constant 0 : index
        %267 = vector.load %arg20[%265, %266, %c0_279, %c0_280] : memref<2x11x8x11xf32, #tpu.memory_space<vmem>>, vector<1x1x8x11xf32>
        %268 = vector.shape_cast %267 : vector<1x1x8x11xf32> to vector<8x11xf32>
        %c0_i32_281 = arith.constant 0 : i32
        %269 = arith.addi %262, %c0_i32_281 : i32
        %c1_i32_282 = arith.constant 1 : i32
        %270 = arith.addi %269, %c1_i32_282 : i32
        %271 = arith.index_cast %arg23 : i32 to index
        %272 = arith.index_cast %270 : i32 to index
        %c0_283 = arith.constant 0 : index
        %c0_284 = arith.constant 0 : index
        %273 = vector.load %arg20[%271, %272, %c0_283, %c0_284] : memref<2x11x8x11xf32, #tpu.memory_space<vmem>>, vector<1x1x8x11xf32>
        %274 = vector.shape_cast %273 : vector<1x1x8x11xf32> to vector<8x11xf32>
        %c0_i32_285 = arith.constant 0 : i32
        %275 = arith.addi %262, %c0_i32_285 : i32
        %c2_i32_286 = arith.constant 2 : i32
        %276 = arith.addi %275, %c2_i32_286 : i32
        %277 = arith.index_cast %arg23 : i32 to index
        %278 = arith.index_cast %276 : i32 to index
        %c0_287 = arith.constant 0 : index
        %c0_288 = arith.constant 0 : index
        %279 = vector.load %arg20[%277, %278, %c0_287, %c0_288] : memref<2x11x8x11xf32, #tpu.memory_space<vmem>>, vector<1x1x8x11xf32>
        %280 = vector.shape_cast %279 : vector<1x1x8x11xf32> to vector<8x11xf32>
        %281 = vector.extract_strided_slice %268 {offsets = [0, 0], sizes = [8, 9], strides = [1, 1]} : vector<8x11xf32> to vector<8x9xf32>
        %cst_289 = arith.constant dense<0.000000e+00> : vector<16x9xf32>
        %282 = tpu.matmul %242, %281, %cst_289 {dimension_numbers = #tpu.dot_dimension_numbers<[1], [0], [0], [1], [0, 0, 1, 1], [], []>} : vector<16x8xf32>, vector<8x9xf32>, vector<16x9xf32> -> vector<16x9xf32>
        %283 = vector.extract_strided_slice %268 {offsets = [0, 1], sizes = [8, 9], strides = [1, 1]} : vector<8x11xf32> to vector<8x9xf32>
        %cst_290 = arith.constant dense<0.000000e+00> : vector<16x9xf32>
        %284 = tpu.matmul %244, %283, %cst_290 {dimension_numbers = #tpu.dot_dimension_numbers<[1], [0], [0], [1], [0, 0, 1, 1], [], []>} : vector<16x8xf32>, vector<8x9xf32>, vector<16x9xf32> -> vector<16x9xf32>
        %285 = arith.addf %282, %284 : vector<16x9xf32>
        %286 = vector.extract_strided_slice %268 {offsets = [0, 2], sizes = [8, 9], strides = [1, 1]} : vector<8x11xf32> to vector<8x9xf32>
        %cst_291 = arith.constant dense<0.000000e+00> : vector<16x9xf32>
        %287 = tpu.matmul %246, %286, %cst_291 {dimension_numbers = #tpu.dot_dimension_numbers<[1], [0], [0], [1], [0, 0, 1, 1], [], []>} : vector<16x8xf32>, vector<8x9xf32>, vector<16x9xf32> -> vector<16x9xf32>
        %288 = arith.addf %285, %287 : vector<16x9xf32>
        %289 = vector.extract_strided_slice %274 {offsets = [0, 0], sizes = [8, 9], strides = [1, 1]} : vector<8x11xf32> to vector<8x9xf32>
        %cst_292 = arith.constant dense<0.000000e+00> : vector<16x9xf32>
        %290 = tpu.matmul %248, %289, %cst_292 {dimension_numbers = #tpu.dot_dimension_numbers<[1], [0], [0], [1], [0, 0, 1, 1], [], []>} : vector<16x8xf32>, vector<8x9xf32>, vector<16x9xf32> -> vector<16x9xf32>
        %291 = arith.addf %288, %290 : vector<16x9xf32>
        %292 = vector.extract_strided_slice %274 {offsets = [0, 1], sizes = [8, 9], strides = [1, 1]} : vector<8x11xf32> to vector<8x9xf32>
        %cst_293 = arith.constant dense<0.000000e+00> : vector<16x9xf32>
        %293 = tpu.matmul %250, %292, %cst_293 {dimension_numbers = #tpu.dot_dimension_numbers<[1], [0], [0], [1], [0, 0, 1, 1], [], []>} : vector<16x8xf32>, vector<8x9xf32>, vector<16x9xf32> -> vector<16x9xf32>
        %294 = arith.addf %291, %293 : vector<16x9xf32>
        %295 = vector.extract_strided_slice %274 {offsets = [0, 2], sizes = [8, 9], strides = [1, 1]} : vector<8x11xf32> to vector<8x9xf32>
        %cst_294 = arith.constant dense<0.000000e+00> : vector<16x9xf32>
        %296 = tpu.matmul %252, %295, %cst_294 {dimension_numbers = #tpu.dot_dimension_numbers<[1], [0], [0], [1], [0, 0, 1, 1], [], []>} : vector<16x8xf32>, vector<8x9xf32>, vector<16x9xf32> -> vector<16x9xf32>
        %297 = arith.addf %294, %296 : vector<16x9xf32>
        %298 = vector.extract_strided_slice %280 {offsets = [0, 0], sizes = [8, 9], strides = [1, 1]} : vector<8x11xf32> to vector<8x9xf32>
        %cst_295 = arith.constant dense<0.000000e+00> : vector<16x9xf32>
        %299 = tpu.matmul %254, %298, %cst_295 {dimension_numbers = #tpu.dot_dimension_numbers<[1], [0], [0], [1], [0, 0, 1, 1], [], []>} : vector<16x8xf32>, vector<8x9xf32>, vector<16x9xf32> -> vector<16x9xf32>
        %300 = arith.addf %297, %299 : vector<16x9xf32>
        %301 = vector.extract_strided_slice %280 {offsets = [0, 1], sizes = [8, 9], strides = [1, 1]} : vector<8x11xf32> to vector<8x9xf32>
        %cst_296 = arith.constant dense<0.000000e+00> : vector<16x9xf32>
        %302 = tpu.matmul %256, %301, %cst_296 {dimension_numbers = #tpu.dot_dimension_numbers<[1], [0], [0], [1], [0, 0, 1, 1], [], []>} : vector<16x8xf32>, vector<8x9xf32>, vector<16x9xf32> -> vector<16x9xf32>
        %303 = arith.addf %300, %302 : vector<16x9xf32>
        %304 = vector.extract_strided_slice %280 {offsets = [0, 2], sizes = [8, 9], strides = [1, 1]} : vector<8x11xf32> to vector<8x9xf32>
        %cst_297 = arith.constant dense<0.000000e+00> : vector<16x9xf32>
        %305 = tpu.matmul %258, %304, %cst_297 {dimension_numbers = #tpu.dot_dimension_numbers<[1], [0], [0], [1], [0, 0, 1, 1], [], []>} : vector<16x8xf32>, vector<8x9xf32>, vector<16x9xf32> -> vector<16x9xf32>
        %306 = arith.addf %303, %305 : vector<16x9xf32>
        %c1_i32_298 = arith.constant 1 : i32
        %307 = arith.addi %262, %c1_i32_298 : i32
        %c0_i32_299 = arith.constant 0 : i32
        %308 = arith.addi %307, %c0_i32_299 : i32
        %309 = arith.index_cast %arg23 : i32 to index
        %310 = arith.index_cast %308 : i32 to index
        %c0_300 = arith.constant 0 : index
        %c0_301 = arith.constant 0 : index
        %311 = vector.load %arg20[%309, %310, %c0_300, %c0_301] : memref<2x11x8x11xf32, #tpu.memory_space<vmem>>, vector<1x1x8x11xf32>
        %312 = vector.shape_cast %311 : vector<1x1x8x11xf32> to vector<8x11xf32>
        %c1_i32_302 = arith.constant 1 : i32
        %313 = arith.addi %262, %c1_i32_302 : i32
        %c1_i32_303 = arith.constant 1 : i32
        %314 = arith.addi %313, %c1_i32_303 : i32
        %315 = arith.index_cast %arg23 : i32 to index
        %316 = arith.index_cast %314 : i32 to index
        %c0_304 = arith.constant 0 : index
        %c0_305 = arith.constant 0 : index
        %317 = vector.load %arg20[%315, %316, %c0_304, %c0_305] : memref<2x11x8x11xf32, #tpu.memory_space<vmem>>, vector<1x1x8x11xf32>
        %318 = vector.shape_cast %317 : vector<1x1x8x11xf32> to vector<8x11xf32>
        %c1_i32_306 = arith.constant 1 : i32
        %319 = arith.addi %262, %c1_i32_306 : i32
        %c2_i32_307 = arith.constant 2 : i32
        %320 = arith.addi %319, %c2_i32_307 : i32
        %321 = arith.index_cast %arg23 : i32 to index
        %322 = arith.index_cast %320 : i32 to index
        %c0_308 = arith.constant 0 : index
        %c0_309 = arith.constant 0 : index
        %323 = vector.load %arg20[%321, %322, %c0_308, %c0_309] : memref<2x11x8x11xf32, #tpu.memory_space<vmem>>, vector<1x1x8x11xf32>
        %324 = vector.shape_cast %323 : vector<1x1x8x11xf32> to vector<8x11xf32>
        %325 = vector.extract_strided_slice %312 {offsets = [0, 0], sizes = [8, 9], strides = [1, 1]} : vector<8x11xf32> to vector<8x9xf32>
        %cst_310 = arith.constant dense<0.000000e+00> : vector<16x9xf32>
        %326 = tpu.matmul %242, %325, %cst_310 {dimension_numbers = #tpu.dot_dimension_numbers<[1], [0], [0], [1], [0, 0, 1, 1], [], []>} : vector<16x8xf32>, vector<8x9xf32>, vector<16x9xf32> -> vector<16x9xf32>
        %327 = vector.extract_strided_slice %312 {offsets = [0, 1], sizes = [8, 9], strides = [1, 1]} : vector<8x11xf32> to vector<8x9xf32>
        %cst_311 = arith.constant dense<0.000000e+00> : vector<16x9xf32>
        %328 = tpu.matmul %244, %327, %cst_311 {dimension_numbers = #tpu.dot_dimension_numbers<[1], [0], [0], [1], [0, 0, 1, 1], [], []>} : vector<16x8xf32>, vector<8x9xf32>, vector<16x9xf32> -> vector<16x9xf32>
        %329 = arith.addf %326, %328 : vector<16x9xf32>
        %330 = vector.extract_strided_slice %312 {offsets = [0, 2], sizes = [8, 9], strides = [1, 1]} : vector<8x11xf32> to vector<8x9xf32>
        %cst_312 = arith.constant dense<0.000000e+00> : vector<16x9xf32>
        %331 = tpu.matmul %246, %330, %cst_312 {dimension_numbers = #tpu.dot_dimension_numbers<[1], [0], [0], [1], [0, 0, 1, 1], [], []>} : vector<16x8xf32>, vector<8x9xf32>, vector<16x9xf32> -> vector<16x9xf32>
        %332 = arith.addf %329, %331 : vector<16x9xf32>
        %333 = vector.extract_strided_slice %318 {offsets = [0, 0], sizes = [8, 9], strides = [1, 1]} : vector<8x11xf32> to vector<8x9xf32>
        %cst_313 = arith.constant dense<0.000000e+00> : vector<16x9xf32>
        %334 = tpu.matmul %248, %333, %cst_313 {dimension_numbers = #tpu.dot_dimension_numbers<[1], [0], [0], [1], [0, 0, 1, 1], [], []>} : vector<16x8xf32>, vector<8x9xf32>, vector<16x9xf32> -> vector<16x9xf32>
        %335 = arith.addf %332, %334 : vector<16x9xf32>
        %336 = vector.extract_strided_slice %318 {offsets = [0, 1], sizes = [8, 9], strides = [1, 1]} : vector<8x11xf32> to vector<8x9xf32>
        %cst_314 = arith.constant dense<0.000000e+00> : vector<16x9xf32>
        %337 = tpu.matmul %250, %336, %cst_314 {dimension_numbers = #tpu.dot_dimension_numbers<[1], [0], [0], [1], [0, 0, 1, 1], [], []>} : vector<16x8xf32>, vector<8x9xf32>, vector<16x9xf32> -> vector<16x9xf32>
        %338 = arith.addf %335, %337 : vector<16x9xf32>
        %339 = vector.extract_strided_slice %318 {offsets = [0, 2], sizes = [8, 9], strides = [1, 1]} : vector<8x11xf32> to vector<8x9xf32>
        %cst_315 = arith.constant dense<0.000000e+00> : vector<16x9xf32>
        %340 = tpu.matmul %252, %339, %cst_315 {dimension_numbers = #tpu.dot_dimension_numbers<[1], [0], [0], [1], [0, 0, 1, 1], [], []>} : vector<16x8xf32>, vector<8x9xf32>, vector<16x9xf32> -> vector<16x9xf32>
        %341 = arith.addf %338, %340 : vector<16x9xf32>
        %342 = vector.extract_strided_slice %324 {offsets = [0, 0], sizes = [8, 9], strides = [1, 1]} : vector<8x11xf32> to vector<8x9xf32>
        %cst_316 = arith.constant dense<0.000000e+00> : vector<16x9xf32>
        %343 = tpu.matmul %254, %342, %cst_316 {dimension_numbers = #tpu.dot_dimension_numbers<[1], [0], [0], [1], [0, 0, 1, 1], [], []>} : vector<16x8xf32>, vector<8x9xf32>, vector<16x9xf32> -> vector<16x9xf32>
        %344 = arith.addf %341, %343 : vector<16x9xf32>
        %345 = vector.extract_strided_slice %324 {offsets = [0, 1], sizes = [8, 9], strides = [1, 1]} : vector<8x11xf32> to vector<8x9xf32>
        %cst_317 = arith.constant dense<0.000000e+00> : vector<16x9xf32>
        %346 = tpu.matmul %256, %345, %cst_317 {dimension_numbers = #tpu.dot_dimension_numbers<[1], [0], [0], [1], [0, 0, 1, 1], [], []>} : vector<16x8xf32>, vector<8x9xf32>, vector<16x9xf32> -> vector<16x9xf32>
        %347 = arith.addf %344, %346 : vector<16x9xf32>
        %348 = vector.extract_strided_slice %324 {offsets = [0, 2], sizes = [8, 9], strides = [1, 1]} : vector<8x11xf32> to vector<8x9xf32>
        %cst_318 = arith.constant dense<0.000000e+00> : vector<16x9xf32>
        %349 = tpu.matmul %258, %348, %cst_318 {dimension_numbers = #tpu.dot_dimension_numbers<[1], [0], [0], [1], [0, 0, 1, 1], [], []>} : vector<16x8xf32>, vector<8x9xf32>, vector<16x9xf32> -> vector<16x9xf32>
        %350 = arith.addf %347, %349 : vector<16x9xf32>
        %351 = arith.maximumf %306, %350 : vector<16x9xf32>
        %cst_319 = arith.constant dense<0.000000e+00> : vector<16x8xf32>
        %352 = tpu.matmul %351, %260, %cst_319 {dimension_numbers = #tpu.dot_dimension_numbers<[1], [0], [0], [1], [0, 0, 1, 1], [], []>} : vector<16x9xf32>, vector<9x8xf32>, vector<16x8xf32> -> vector<16x8xf32>
        %353 = vector.extract_strided_slice %352 {offsets = [0, 0], sizes = [16, 4], strides = [1, 1]} : vector<16x8xf32> to vector<16x4xf32>
        %354 = vector.extract_strided_slice %352 {offsets = [0, 4], sizes = [16, 4], strides = [1, 1]} : vector<16x8xf32> to vector<16x4xf32>
        %355 = arith.maximumf %353, %354 : vector<16x4xf32>
        %356 = vector.broadcast %259 : vector<16x1xf32> to vector<16x4xf32>
        %357 = arith.addf %355, %356 : vector<16x4xf32>
        %cst_320 = arith.constant 0.000000e+00 : f32
        %358 = vector.broadcast %cst_320 : f32 to vector<16x4xf32>
        %359 = arith.maximumf %357, %358 : vector<16x4xf32>
        %360 = arith.index_cast %arg23 : i32 to index
        %361 = arith.index_cast %arg24 : i32 to index
        %c0_321 = arith.constant 0 : index
        %c0_322 = arith.constant 0 : index
        %362 = vector.load %arg21[%360, %361, %c0_321, %c0_322] : memref<2x4x16x4xf32, #tpu.memory_space<vmem>>, vector<1x1x16x4xf32>
        %363 = vector.shape_cast %362 : vector<1x1x16x4xf32> to vector<16x4xf32>
        %364 = vector.shape_cast %359 : vector<16x4xf32> to vector<1x1x16x4xf32>
        tpu.vector_store %arg21[%360, %361, %c0_321, %c0_322], %364 {strides = array<i32>} : memref<2x4x16x4xf32, #tpu.memory_space<vmem>>, vector<1x1x16x4xf32>,
      }
      %c4_i32_275 = arith.constant 4 : i32
    }
    %c2_i32_0 = arith.constant 2 : i32
    %c0 = arith.constant 0 : index
    %c0_1 = arith.constant 0 : index
    %c0_2 = arith.constant 0 : index
    %c0_3 = arith.constant 0 : index
    %1 = vector.load %arg12[%c0, %c0_1, %c0_2, %c0_3] : memref<3x3x32x16xf32, #tpu.memory_space<vmem>>, vector<1x1x32x16xf32>
    %2 = vector.shape_cast %1 : vector<1x1x32x16xf32> to vector<32x16xf32>
    %c0_4 = arith.constant 0 : index
    %c1 = arith.constant 1 : index
    %c0_5 = arith.constant 0 : index
    %c0_6 = arith.constant 0 : index
    %3 = vector.load %arg12[%c0_4, %c1, %c0_5, %c0_6] : memref<3x3x32x16xf32, #tpu.memory_space<vmem>>, vector<1x1x32x16xf32>
    %4 = vector.shape_cast %3 : vector<1x1x32x16xf32> to vector<32x16xf32>
    %c0_7 = arith.constant 0 : index
    %c2 = arith.constant 2 : index
    %c0_8 = arith.constant 0 : index
    %c0_9 = arith.constant 0 : index
    %5 = vector.load %arg12[%c0_7, %c2, %c0_8, %c0_9] : memref<3x3x32x16xf32, #tpu.memory_space<vmem>>, vector<1x1x32x16xf32>
    %6 = vector.shape_cast %5 : vector<1x1x32x16xf32> to vector<32x16xf32>
    %c1_10 = arith.constant 1 : index
    %c0_11 = arith.constant 0 : index
    %c0_12 = arith.constant 0 : index
    %c0_13 = arith.constant 0 : index
    %7 = vector.load %arg12[%c1_10, %c0_11, %c0_12, %c0_13] : memref<3x3x32x16xf32, #tpu.memory_space<vmem>>, vector<1x1x32x16xf32>
    %8 = vector.shape_cast %7 : vector<1x1x32x16xf32> to vector<32x16xf32>
    %c1_14 = arith.constant 1 : index
    %c1_15 = arith.constant 1 : index
    %c0_16 = arith.constant 0 : index
    %c0_17 = arith.constant 0 : index
    %9 = vector.load %arg12[%c1_14, %c1_15, %c0_16, %c0_17] : memref<3x3x32x16xf32, #tpu.memory_space<vmem>>, vector<1x1x32x16xf32>
    %10 = vector.shape_cast %9 : vector<1x1x32x16xf32> to vector<32x16xf32>
    %c1_18 = arith.constant 1 : index
    %c2_19 = arith.constant 2 : index
    %c0_20 = arith.constant 0 : index
    %c0_21 = arith.constant 0 : index
    %11 = vector.load %arg12[%c1_18, %c2_19, %c0_20, %c0_21] : memref<3x3x32x16xf32, #tpu.memory_space<vmem>>, vector<1x1x32x16xf32>
    %12 = vector.shape_cast %11 : vector<1x1x32x16xf32> to vector<32x16xf32>
    %c2_22 = arith.constant 2 : index
    %c0_23 = arith.constant 0 : index
    %c0_24 = arith.constant 0 : index
    %c0_25 = arith.constant 0 : index
    %13 = vector.load %arg12[%c2_22, %c0_23, %c0_24, %c0_25] : memref<3x3x32x16xf32, #tpu.memory_space<vmem>>, vector<1x1x32x16xf32>
    %14 = vector.shape_cast %13 : vector<1x1x32x16xf32> to vector<32x16xf32>
    %c2_26 = arith.constant 2 : index
    %c1_27 = arith.constant 1 : index
    %c0_28 = arith.constant 0 : index
    %c0_29 = arith.constant 0 : index
    %15 = vector.load %arg12[%c2_26, %c1_27, %c0_28, %c0_29] : memref<3x3x32x16xf32, #tpu.memory_space<vmem>>, vector<1x1x32x16xf32>
    %16 = vector.shape_cast %15 : vector<1x1x32x16xf32> to vector<32x16xf32>
    %c2_30 = arith.constant 2 : index
    %c2_31 = arith.constant 2 : index
    %c0_32 = arith.constant 0 : index
    %c0_33 = arith.constant 0 : index
    %17 = vector.load %arg12[%c2_30, %c2_31, %c0_32, %c0_33] : memref<3x3x32x16xf32, #tpu.memory_space<vmem>>, vector<1x1x32x16xf32>
    %18 = vector.shape_cast %17 : vector<1x1x32x16xf32> to vector<32x16xf32>
    %c0_34 = arith.constant 0 : index
    %c0_35 = arith.constant 0 : index
    %19 = vector.load %arg13[%c0_34, %c0_35] : memref<32x1xf32, #tpu.memory_space<vmem>>, vector<32x1xf32>
    %c0_36 = arith.constant 0 : index
    %c0_37 = arith.constant 0 : index
    %c0_38 = arith.constant 0 : index
    %c0_39 = arith.constant 0 : index
    %20 = vector.load %arg21[%c0_36, %c0_37, %c0_38, %c0_39] : memref<2x4x16x4xf32, #tpu.memory_space<vmem>>, vector<1x1x16x4xf32>
    %21 = vector.shape_cast %20 : vector<1x1x16x4xf32> to vector<16x4xf32>
    %c0_40 = arith.constant 0 : index
    %c1_41 = arith.constant 1 : index
    %c0_42 = arith.constant 0 : index
    %c0_43 = arith.constant 0 : index
    %22 = vector.load %arg21[%c0_40, %c1_41, %c0_42, %c0_43] : memref<2x4x16x4xf32, #tpu.memory_space<vmem>>, vector<1x1x16x4xf32>
    %23 = vector.shape_cast %22 : vector<1x1x16x4xf32> to vector<16x4xf32>
    %c0_44 = arith.constant 0 : index
    %c2_45 = arith.constant 2 : index
    %c0_46 = arith.constant 0 : index
    %c0_47 = arith.constant 0 : index
    %24 = vector.load %arg21[%c0_44, %c2_45, %c0_46, %c0_47] : memref<2x4x16x4xf32, #tpu.memory_space<vmem>>, vector<1x1x16x4xf32>
    %25 = vector.shape_cast %24 : vector<1x1x16x4xf32> to vector<16x4xf32>
    %26 = vector.extract_strided_slice %21 {offsets = [0, 0], sizes = [16, 2], strides = [1, 1]} : vector<16x4xf32> to vector<16x2xf32>
    %cst = arith.constant dense<0.000000e+00> : vector<32x2xf32>
    %27 = tpu.matmul %2, %26, %cst {dimension_numbers = #tpu.dot_dimension_numbers<[1], [0], [0], [1], [0, 0, 1, 1], [], []>} : vector<32x16xf32>, vector<16x2xf32>, vector<32x2xf32> -> vector<32x2xf32>
    %28 = vector.extract_strided_slice %21 {offsets = [0, 1], sizes = [16, 2], strides = [1, 1]} : vector<16x4xf32> to vector<16x2xf32>
    %cst_48 = arith.constant dense<0.000000e+00> : vector<32x2xf32>
    %29 = tpu.matmul %4, %28, %cst_48 {dimension_numbers = #tpu.dot_dimension_numbers<[1], [0], [0], [1], [0, 0, 1, 1], [], []>} : vector<32x16xf32>, vector<16x2xf32>, vector<32x2xf32> -> vector<32x2xf32>
    %30 = arith.addf %27, %29 : vector<32x2xf32>
    %31 = vector.extract_strided_slice %21 {offsets = [0, 2], sizes = [16, 2], strides = [1, 1]} : vector<16x4xf32> to vector<16x2xf32>
    %cst_49 = arith.constant dense<0.000000e+00> : vector<32x2xf32>
    %32 = tpu.matmul %6, %31, %cst_49 {dimension_numbers = #tpu.dot_dimension_numbers<[1], [0], [0], [1], [0, 0, 1, 1], [], []>} : vector<32x16xf32>, vector<16x2xf32>, vector<32x2xf32> -> vector<32x2xf32>
    %33 = arith.addf %30, %32 : vector<32x2xf32>
    %34 = vector.extract_strided_slice %23 {offsets = [0, 0], sizes = [16, 2], strides = [1, 1]} : vector<16x4xf32> to vector<16x2xf32>
    %cst_50 = arith.constant dense<0.000000e+00> : vector<32x2xf32>
    %35 = tpu.matmul %8, %34, %cst_50 {dimension_numbers = #tpu.dot_dimension_numbers<[1], [0], [0], [1], [0, 0, 1, 1], [], []>} : vector<32x16xf32>, vector<16x2xf32>, vector<32x2xf32> -> vector<32x2xf32>
    %36 = arith.addf %33, %35 : vector<32x2xf32>
    %37 = vector.extract_strided_slice %23 {offsets = [0, 1], sizes = [16, 2], strides = [1, 1]} : vector<16x4xf32> to vector<16x2xf32>
    %cst_51 = arith.constant dense<0.000000e+00> : vector<32x2xf32>
    %38 = tpu.matmul %10, %37, %cst_51 {dimension_numbers = #tpu.dot_dimension_numbers<[1], [0], [0], [1], [0, 0, 1, 1], [], []>} : vector<32x16xf32>, vector<16x2xf32>, vector<32x2xf32> -> vector<32x2xf32>
    %39 = arith.addf %36, %38 : vector<32x2xf32>
    %40 = vector.extract_strided_slice %23 {offsets = [0, 2], sizes = [16, 2], strides = [1, 1]} : vector<16x4xf32> to vector<16x2xf32>
    %cst_52 = arith.constant dense<0.000000e+00> : vector<32x2xf32>
    %41 = tpu.matmul %12, %40, %cst_52 {dimension_numbers = #tpu.dot_dimension_numbers<[1], [0], [0], [1], [0, 0, 1, 1], [], []>} : vector<32x16xf32>, vector<16x2xf32>, vector<32x2xf32> -> vector<32x2xf32>
    %42 = arith.addf %39, %41 : vector<32x2xf32>
    %43 = vector.extract_strided_slice %25 {offsets = [0, 0], sizes = [16, 2], strides = [1, 1]} : vector<16x4xf32> to vector<16x2xf32>
    %cst_53 = arith.constant dense<0.000000e+00> : vector<32x2xf32>
    %44 = tpu.matmul %14, %43, %cst_53 {dimension_numbers = #tpu.dot_dimension_numbers<[1], [0], [0], [1], [0, 0, 1, 1], [], []>} : vector<32x16xf32>, vector<16x2xf32>, vector<32x2xf32> -> vector<32x2xf32>
    %45 = arith.addf %42, %44 : vector<32x2xf32>
    %46 = vector.extract_strided_slice %25 {offsets = [0, 1], sizes = [16, 2], strides = [1, 1]} : vector<16x4xf32> to vector<16x2xf32>
    %cst_54 = arith.constant dense<0.000000e+00> : vector<32x2xf32>
    %47 = tpu.matmul %16, %46, %cst_54 {dimension_numbers = #tpu.dot_dimension_numbers<[1], [0], [0], [1], [0, 0, 1, 1], [], []>} : vector<32x16xf32>, vector<16x2xf32>, vector<32x2xf32> -> vector<32x2xf32>
    %48 = arith.addf %45, %47 : vector<32x2xf32>
    %49 = vector.extract_strided_slice %25 {offsets = [0, 2], sizes = [16, 2], strides = [1, 1]} : vector<16x4xf32> to vector<16x2xf32>
    %cst_55 = arith.constant dense<0.000000e+00> : vector<32x2xf32>
    %50 = tpu.matmul %18, %49, %cst_55 {dimension_numbers = #tpu.dot_dimension_numbers<[1], [0], [0], [1], [0, 0, 1, 1], [], []>} : vector<32x16xf32>, vector<16x2xf32>, vector<32x2xf32> -> vector<32x2xf32>
    %51 = arith.addf %48, %50 : vector<32x2xf32>
    %c0_56 = arith.constant 0 : index
    %c1_57 = arith.constant 1 : index
    %c0_58 = arith.constant 0 : index
    %c0_59 = arith.constant 0 : index
    %52 = vector.load %arg21[%c0_56, %c1_57, %c0_58, %c0_59] : memref<2x4x16x4xf32, #tpu.memory_space<vmem>>, vector<1x1x16x4xf32>
    %53 = vector.shape_cast %52 : vector<1x1x16x4xf32> to vector<16x4xf32>
    %c0_60 = arith.constant 0 : index
    %c2_61 = arith.constant 2 : index
    %c0_62 = arith.constant 0 : index
    %c0_63 = arith.constant 0 : index
    %54 = vector.load %arg21[%c0_60, %c2_61, %c0_62, %c0_63] : memref<2x4x16x4xf32, #tpu.memory_space<vmem>>, vector<1x1x16x4xf32>
    %55 = vector.shape_cast %54 : vector<1x1x16x4xf32> to vector<16x4xf32>
    %c0_64 = arith.constant 0 : index
    %c3 = arith.constant 3 : index
    %c0_65 = arith.constant 0 : index
    %c0_66 = arith.constant 0 : index
    %56 = vector.load %arg21[%c0_64, %c3, %c0_65, %c0_66] : memref<2x4x16x4xf32, #tpu.memory_space<vmem>>, vector<1x1x16x4xf32>
    %57 = vector.shape_cast %56 : vector<1x1x16x4xf32> to vector<16x4xf32>
    %58 = vector.extract_strided_slice %53 {offsets = [0, 0], sizes = [16, 2], strides = [1, 1]} : vector<16x4xf32> to vector<16x2xf32>
    %cst_67 = arith.constant dense<0.000000e+00> : vector<32x2xf32>
    %59 = tpu.matmul %2, %58, %cst_67 {dimension_numbers = #tpu.dot_dimension_numbers<[1], [0], [0], [1], [0, 0, 1, 1], [], []>} : vector<32x16xf32>, vector<16x2xf32>, vector<32x2xf32> -> vector<32x2xf32>
    %60 = vector.extract_strided_slice %53 {offsets = [0, 1], sizes = [16, 2], strides = [1, 1]} : vector<16x4xf32> to vector<16x2xf32>
    %cst_68 = arith.constant dense<0.000000e+00> : vector<32x2xf32>
    %61 = tpu.matmul %4, %60, %cst_68 {dimension_numbers = #tpu.dot_dimension_numbers<[1], [0], [0], [1], [0, 0, 1, 1], [], []>} : vector<32x16xf32>, vector<16x2xf32>, vector<32x2xf32> -> vector<32x2xf32>
    %62 = arith.addf %59, %61 : vector<32x2xf32>
    %63 = vector.extract_strided_slice %53 {offsets = [0, 2], sizes = [16, 2], strides = [1, 1]} : vector<16x4xf32> to vector<16x2xf32>
    %cst_69 = arith.constant dense<0.000000e+00> : vector<32x2xf32>
    %64 = tpu.matmul %6, %63, %cst_69 {dimension_numbers = #tpu.dot_dimension_numbers<[1], [0], [0], [1], [0, 0, 1, 1], [], []>} : vector<32x16xf32>, vector<16x2xf32>, vector<32x2xf32> -> vector<32x2xf32>
    %65 = arith.addf %62, %64 : vector<32x2xf32>
    %66 = vector.extract_strided_slice %55 {offsets = [0, 0], sizes = [16, 2], strides = [1, 1]} : vector<16x4xf32> to vector<16x2xf32>
    %cst_70 = arith.constant dense<0.000000e+00> : vector<32x2xf32>
    %67 = tpu.matmul %8, %66, %cst_70 {dimension_numbers = #tpu.dot_dimension_numbers<[1], [0], [0], [1], [0, 0, 1, 1], [], []>} : vector<32x16xf32>, vector<16x2xf32>, vector<32x2xf32> -> vector<32x2xf32>
    %68 = arith.addf %65, %67 : vector<32x2xf32>
    %69 = vector.extract_strided_slice %55 {offsets = [0, 1], sizes = [16, 2], strides = [1, 1]} : vector<16x4xf32> to vector<16x2xf32>
    %cst_71 = arith.constant dense<0.000000e+00> : vector<32x2xf32>
    %70 = tpu.matmul %10, %69, %cst_71 {dimension_numbers = #tpu.dot_dimension_numbers<[1], [0], [0], [1], [0, 0, 1, 1], [], []>} : vector<32x16xf32>, vector<16x2xf32>, vector<32x2xf32> -> vector<32x2xf32>
    %71 = arith.addf %68, %70 : vector<32x2xf32>
    %72 = vector.extract_strided_slice %55 {offsets = [0, 2], sizes = [16, 2], strides = [1, 1]} : vector<16x4xf32> to vector<16x2xf32>
    %cst_72 = arith.constant dense<0.000000e+00> : vector<32x2xf32>
    %73 = tpu.matmul %12, %72, %cst_72 {dimension_numbers = #tpu.dot_dimension_numbers<[1], [0], [0], [1], [0, 0, 1, 1], [], []>} : vector<32x16xf32>, vector<16x2xf32>, vector<32x2xf32> -> vector<32x2xf32>
    %74 = arith.addf %71, %73 : vector<32x2xf32>
    %75 = vector.extract_strided_slice %57 {offsets = [0, 0], sizes = [16, 2], strides = [1, 1]} : vector<16x4xf32> to vector<16x2xf32>
    %cst_73 = arith.constant dense<0.000000e+00> : vector<32x2xf32>
    %76 = tpu.matmul %14, %75, %cst_73 {dimension_numbers = #tpu.dot_dimension_numbers<[1], [0], [0], [1], [0, 0, 1, 1], [], []>} : vector<32x16xf32>, vector<16x2xf32>, vector<32x2xf32> -> vector<32x2xf32>
    %77 = arith.addf %74, %76 : vector<32x2xf32>
    %78 = vector.extract_strided_slice %57 {offsets = [0, 1], sizes = [16, 2], strides = [1, 1]} : vector<16x4xf32> to vector<16x2xf32>
    %cst_74 = arith.constant dense<0.000000e+00> : vector<32x2xf32>
    %79 = tpu.matmul %16, %78, %cst_74 {dimension_numbers = #tpu.dot_dimension_numbers<[1], [0], [0], [1], [0, 0, 1, 1], [], []>} : vector<32x16xf32>, vector<16x2xf32>, vector<32x2xf32> -> vector<32x2xf32>
    %80 = arith.addf %77, %79 : vector<32x2xf32>
    %81 = vector.extract_strided_slice %57 {offsets = [0, 2], sizes = [16, 2], strides = [1, 1]} : vector<16x4xf32> to vector<16x2xf32>
    %cst_75 = arith.constant dense<0.000000e+00> : vector<32x2xf32>
    %82 = tpu.matmul %18, %81, %cst_75 {dimension_numbers = #tpu.dot_dimension_numbers<[1], [0], [0], [1], [0, 0, 1, 1], [], []>} : vector<32x16xf32>, vector<16x2xf32>, vector<32x2xf32> -> vector<32x2xf32>
    %83 = arith.addf %80, %82 : vector<32x2xf32>
    %84 = arith.maximumf %51, %83 : vector<32x2xf32>
    %85 = vector.extract_strided_slice %84 {offsets = [0, 0], sizes = [32, 1], strides = [1, 1]} : vector<32x2xf32> to vector<32x1xf32>
    %86 = vector.extract_strided_slice %84 {offsets = [0, 1], sizes = [32, 1], strides = [1, 1]} : vector<32x2xf32> to vector<32x1xf32>
    %87 = arith.maximumf %85, %86 : vector<32x1xf32>
    %88 = arith.addf %87, %19 : vector<32x1xf32>
    %cst_76 = arith.constant 0.000000e+00 : f32
    %89 = vector.broadcast %cst_76 : f32 to vector<32x1xf32>
    %90 = arith.maximumf %88, %89 : vector<32x1xf32>
    %c0_77 = arith.constant 0 : index
    %c0_78 = arith.constant 0 : index
    %91 = vector.load %arg22[%c0_77, %c0_78] : memref<32x2xf32, #tpu.memory_space<vmem>>, vector<32x1xf32>
    tpu.vector_store %arg22[%c0_77, %c0_78], %90 {strides = array<i32>} : memref<32x2xf32, #tpu.memory_space<vmem>>, vector<32x1xf32>,
    %c1_79 = arith.constant 1 : index
    %c0_80 = arith.constant 0 : index
    %c0_81 = arith.constant 0 : index
    %c0_82 = arith.constant 0 : index
    %92 = vector.load %arg21[%c1_79, %c0_80, %c0_81, %c0_82] : memref<2x4x16x4xf32, #tpu.memory_space<vmem>>, vector<1x1x16x4xf32>
    %93 = vector.shape_cast %92 : vector<1x1x16x4xf32> to vector<16x4xf32>
    %c1_83 = arith.constant 1 : index
    %c1_84 = arith.constant 1 : index
    %c0_85 = arith.constant 0 : index
    %c0_86 = arith.constant 0 : index
    %94 = vector.load %arg21[%c1_83, %c1_84, %c0_85, %c0_86] : memref<2x4x16x4xf32, #tpu.memory_space<vmem>>, vector<1x1x16x4xf32>
    %95 = vector.shape_cast %94 : vector<1x1x16x4xf32> to vector<16x4xf32>
    %c1_87 = arith.constant 1 : index
    %c2_88 = arith.constant 2 : index
    %c0_89 = arith.constant 0 : index
    %c0_90 = arith.constant 0 : index
    %96 = vector.load %arg21[%c1_87, %c2_88, %c0_89, %c0_90] : memref<2x4x16x4xf32, #tpu.memory_space<vmem>>, vector<1x1x16x4xf32>
    %97 = vector.shape_cast %96 : vector<1x1x16x4xf32> to vector<16x4xf32>
    %98 = vector.extract_strided_slice %93 {offsets = [0, 0], sizes = [16, 2], strides = [1, 1]} : vector<16x4xf32> to vector<16x2xf32>
    %cst_91 = arith.constant dense<0.000000e+00> : vector<32x2xf32>
    %99 = tpu.matmul %2, %98, %cst_91 {dimension_numbers = #tpu.dot_dimension_numbers<[1], [0], [0], [1], [0, 0, 1, 1], [], []>} : vector<32x16xf32>, vector<16x2xf32>, vector<32x2xf32> -> vector<32x2xf32>
    %100 = vector.extract_strided_slice %93 {offsets = [0, 1], sizes = [16, 2], strides = [1, 1]} : vector<16x4xf32> to vector<16x2xf32>
    %cst_92 = arith.constant dense<0.000000e+00> : vector<32x2xf32>
    %101 = tpu.matmul %4, %100, %cst_92 {dimension_numbers = #tpu.dot_dimension_numbers<[1], [0], [0], [1], [0, 0, 1, 1], [], []>} : vector<32x16xf32>, vector<16x2xf32>, vector<32x2xf32> -> vector<32x2xf32>
    %102 = arith.addf %99, %101 : vector<32x2xf32>
    %103 = vector.extract_strided_slice %93 {offsets = [0, 2], sizes = [16, 2], strides = [1, 1]} : vector<16x4xf32> to vector<16x2xf32>
    %cst_93 = arith.constant dense<0.000000e+00> : vector<32x2xf32>
    %104 = tpu.matmul %6, %103, %cst_93 {dimension_numbers = #tpu.dot_dimension_numbers<[1], [0], [0], [1], [0, 0, 1, 1], [], []>} : vector<32x16xf32>, vector<16x2xf32>, vector<32x2xf32> -> vector<32x2xf32>
    %105 = arith.addf %102, %104 : vector<32x2xf32>
    %106 = vector.extract_strided_slice %95 {offsets = [0, 0], sizes = [16, 2], strides = [1, 1]} : vector<16x4xf32> to vector<16x2xf32>
    %cst_94 = arith.constant dense<0.000000e+00> : vector<32x2xf32>
    %107 = tpu.matmul %8, %106, %cst_94 {dimension_numbers = #tpu.dot_dimension_numbers<[1], [0], [0], [1], [0, 0, 1, 1], [], []>} : vector<32x16xf32>, vector<16x2xf32>, vector<32x2xf32> -> vector<32x2xf32>
    %108 = arith.addf %105, %107 : vector<32x2xf32>
    %109 = vector.extract_strided_slice %95 {offsets = [0, 1], sizes = [16, 2], strides = [1, 1]} : vector<16x4xf32> to vector<16x2xf32>
    %cst_95 = arith.constant dense<0.000000e+00> : vector<32x2xf32>
    %110 = tpu.matmul %10, %109, %cst_95 {dimension_numbers = #tpu.dot_dimension_numbers<[1], [0], [0], [1], [0, 0, 1, 1], [], []>} : vector<32x16xf32>, vector<16x2xf32>, vector<32x2xf32> -> vector<32x2xf32>
    %111 = arith.addf %108, %110 : vector<32x2xf32>
    %112 = vector.extract_strided_slice %95 {offsets = [0, 2], sizes = [16, 2], strides = [1, 1]} : vector<16x4xf32> to vector<16x2xf32>
    %cst_96 = arith.constant dense<0.000000e+00> : vector<32x2xf32>
    %113 = tpu.matmul %12, %112, %cst_96 {dimension_numbers = #tpu.dot_dimension_numbers<[1], [0], [0], [1], [0, 0, 1, 1], [], []>} : vector<32x16xf32>, vector<16x2xf32>, vector<32x2xf32> -> vector<32x2xf32>
    %114 = arith.addf %111, %113 : vector<32x2xf32>
    %115 = vector.extract_strided_slice %97 {offsets = [0, 0], sizes = [16, 2], strides = [1, 1]} : vector<16x4xf32> to vector<16x2xf32>
    %cst_97 = arith.constant dense<0.000000e+00> : vector<32x2xf32>
    %116 = tpu.matmul %14, %115, %cst_97 {dimension_numbers = #tpu.dot_dimension_numbers<[1], [0], [0], [1], [0, 0, 1, 1], [], []>} : vector<32x16xf32>, vector<16x2xf32>, vector<32x2xf32> -> vector<32x2xf32>
    %117 = arith.addf %114, %116 : vector<32x2xf32>
    %118 = vector.extract_strided_slice %97 {offsets = [0, 1], sizes = [16, 2], strides = [1, 1]} : vector<16x4xf32> to vector<16x2xf32>
    %cst_98 = arith.constant dense<0.000000e+00> : vector<32x2xf32>
    %119 = tpu.matmul %16, %118, %cst_98 {dimension_numbers = #tpu.dot_dimension_numbers<[1], [0], [0], [1], [0, 0, 1, 1], [], []>} : vector<32x16xf32>, vector<16x2xf32>, vector<32x2xf32> -> vector<32x2xf32>
    %120 = arith.addf %117, %119 : vector<32x2xf32>
    %121 = vector.extract_strided_slice %97 {offsets = [0, 2], sizes = [16, 2], strides = [1, 1]} : vector<16x4xf32> to vector<16x2xf32>
    %cst_99 = arith.constant dense<0.000000e+00> : vector<32x2xf32>
    %122 = tpu.matmul %18, %121, %cst_99 {dimension_numbers = #tpu.dot_dimension_numbers<[1], [0], [0], [1], [0, 0, 1, 1], [], []>} : vector<32x16xf32>, vector<16x2xf32>, vector<32x2xf32> -> vector<32x2xf32>
    %123 = arith.addf %120, %122 : vector<32x2xf32>
    %c1_100 = arith.constant 1 : index
    %c1_101 = arith.constant 1 : index
    %c0_102 = arith.constant 0 : index
    %c0_103 = arith.constant 0 : index
    %124 = vector.load %arg21[%c1_100, %c1_101, %c0_102, %c0_103] : memref<2x4x16x4xf32, #tpu.memory_space<vmem>>, vector<1x1x16x4xf32>
    %125 = vector.shape_cast %124 : vector<1x1x16x4xf32> to vector<16x4xf32>
    %c1_104 = arith.constant 1 : index
    %c2_105 = arith.constant 2 : index
    %c0_106 = arith.constant 0 : index
    %c0_107 = arith.constant 0 : index
    %126 = vector.load %arg21[%c1_104, %c2_105, %c0_106, %c0_107] : memref<2x4x16x4xf32, #tpu.memory_space<vmem>>, vector<1x1x16x4xf32>
    %127 = vector.shape_cast %126 : vector<1x1x16x4xf32> to vector<16x4xf32>
    %c1_108 = arith.constant 1 : index
    %c3_109 = arith.constant 3 : index
    %c0_110 = arith.constant 0 : index
    %c0_111 = arith.constant 0 : index
    %128 = vector.load %arg21[%c1_108, %c3_109, %c0_110, %c0_111] : memref<2x4x16x4xf32, #tpu.memory_space<vmem>>, vector<1x1x16x4xf32>
    %129 = vector.shape_cast %128 : vector<1x1x16x4xf32> to vector<16x4xf32>
    %130 = vector.extract_strided_slice %125 {offsets = [0, 0], sizes = [16, 2], strides = [1, 1]} : vector<16x4xf32> to vector<16x2xf32>
    %cst_112 = arith.constant dense<0.000000e+00> : vector<32x2xf32>
    %131 = tpu.matmul %2, %130, %cst_112 {dimension_numbers = #tpu.dot_dimension_numbers<[1], [0], [0], [1], [0, 0, 1, 1], [], []>} : vector<32x16xf32>, vector<16x2xf32>, vector<32x2xf32> -> vector<32x2xf32>
    %132 = vector.extract_strided_slice %125 {offsets = [0, 1], sizes = [16, 2], strides = [1, 1]} : vector<16x4xf32> to vector<16x2xf32>
    %cst_113 = arith.constant dense<0.000000e+00> : vector<32x2xf32>
    %133 = tpu.matmul %4, %132, %cst_113 {dimension_numbers = #tpu.dot_dimension_numbers<[1], [0], [0], [1], [0, 0, 1, 1], [], []>} : vector<32x16xf32>, vector<16x2xf32>, vector<32x2xf32> -> vector<32x2xf32>
    %134 = arith.addf %131, %133 : vector<32x2xf32>
    %135 = vector.extract_strided_slice %125 {offsets = [0, 2], sizes = [16, 2], strides = [1, 1]} : vector<16x4xf32> to vector<16x2xf32>
    %cst_114 = arith.constant dense<0.000000e+00> : vector<32x2xf32>
    %136 = tpu.matmul %6, %135, %cst_114 {dimension_numbers = #tpu.dot_dimension_numbers<[1], [0], [0], [1], [0, 0, 1, 1], [], []>} : vector<32x16xf32>, vector<16x2xf32>, vector<32x2xf32> -> vector<32x2xf32>
    %137 = arith.addf %134, %136 : vector<32x2xf32>
    %138 = vector.extract_strided_slice %127 {offsets = [0, 0], sizes = [16, 2], strides = [1, 1]} : vector<16x4xf32> to vector<16x2xf32>
    %cst_115 = arith.constant dense<0.000000e+00> : vector<32x2xf32>
    %139 = tpu.matmul %8, %138, %cst_115 {dimension_numbers = #tpu.dot_dimension_numbers<[1], [0], [0], [1], [0, 0, 1, 1], [], []>} : vector<32x16xf32>, vector<16x2xf32>, vector<32x2xf32> -> vector<32x2xf32>
    %140 = arith.addf %137, %139 : vector<32x2xf32>
    %141 = vector.extract_strided_slice %127 {offsets = [0, 1], sizes = [16, 2], strides = [1, 1]} : vector<16x4xf32> to vector<16x2xf32>
    %cst_116 = arith.constant dense<0.000000e+00> : vector<32x2xf32>
    %142 = tpu.matmul %10, %141, %cst_116 {dimension_numbers = #tpu.dot_dimension_numbers<[1], [0], [0], [1], [0, 0, 1, 1], [], []>} : vector<32x16xf32>, vector<16x2xf32>, vector<32x2xf32> -> vector<32x2xf32>
    %143 = arith.addf %140, %142 : vector<32x2xf32>
    %144 = vector.extract_strided_slice %127 {offsets = [0, 2], sizes = [16, 2], strides = [1, 1]} : vector<16x4xf32> to vector<16x2xf32>
    %cst_117 = arith.constant dense<0.000000e+00> : vector<32x2xf32>
    %145 = tpu.matmul %12, %144, %cst_117 {dimension_numbers = #tpu.dot_dimension_numbers<[1], [0], [0], [1], [0, 0, 1, 1], [], []>} : vector<32x16xf32>, vector<16x2xf32>, vector<32x2xf32> -> vector<32x2xf32>
    %146 = arith.addf %143, %145 : vector<32x2xf32>
    %147 = vector.extract_strided_slice %129 {offsets = [0, 0], sizes = [16, 2], strides = [1, 1]} : vector<16x4xf32> to vector<16x2xf32>
    %cst_118 = arith.constant dense<0.000000e+00> : vector<32x2xf32>
    %148 = tpu.matmul %14, %147, %cst_118 {dimension_numbers = #tpu.dot_dimension_numbers<[1], [0], [0], [1], [0, 0, 1, 1], [], []>} : vector<32x16xf32>, vector<16x2xf32>, vector<32x2xf32> -> vector<32x2xf32>
    %149 = arith.addf %146, %148 : vector<32x2xf32>
    %150 = vector.extract_strided_slice %129 {offsets = [0, 1], sizes = [16, 2], strides = [1, 1]} : vector<16x4xf32> to vector<16x2xf32>
    %cst_119 = arith.constant dense<0.000000e+00> : vector<32x2xf32>
    %151 = tpu.matmul %16, %150, %cst_119 {dimension_numbers = #tpu.dot_dimension_numbers<[1], [0], [0], [1], [0, 0, 1, 1], [], []>} : vector<32x16xf32>, vector<16x2xf32>, vector<32x2xf32> -> vector<32x2xf32>
    %152 = arith.addf %149, %151 : vector<32x2xf32>
    %153 = vector.extract_strided_slice %129 {offsets = [0, 2], sizes = [16, 2], strides = [1, 1]} : vector<16x4xf32> to vector<16x2xf32>
    %cst_120 = arith.constant dense<0.000000e+00> : vector<32x2xf32>
    %154 = tpu.matmul %18, %153, %cst_120 {dimension_numbers = #tpu.dot_dimension_numbers<[1], [0], [0], [1], [0, 0, 1, 1], [], []>} : vector<32x16xf32>, vector<16x2xf32>, vector<32x2xf32> -> vector<32x2xf32>
    %155 = arith.addf %152, %154 : vector<32x2xf32>
    %156 = arith.maximumf %123, %155 : vector<32x2xf32>
    %157 = vector.extract_strided_slice %156 {offsets = [0, 0], sizes = [32, 1], strides = [1, 1]} : vector<32x2xf32> to vector<32x1xf32>
    %158 = vector.extract_strided_slice %156 {offsets = [0, 1], sizes = [32, 1], strides = [1, 1]} : vector<32x2xf32> to vector<32x1xf32>
    %159 = arith.maximumf %157, %158 : vector<32x1xf32>
    %160 = arith.addf %159, %19 : vector<32x1xf32>
    %cst_121 = arith.constant 0.000000e+00 : f32
    %161 = vector.broadcast %cst_121 : f32 to vector<32x1xf32>
    %162 = arith.maximumf %160, %161 : vector<32x1xf32>
    %c0_122 = arith.constant 0 : index
    %c1_123 = arith.constant 1 : index
    %163 = vector.load %arg22[%c0_122, %c1_123] : memref<32x2xf32, #tpu.memory_space<vmem>>, vector<32x1xf32>
    tpu.vector_store %arg22[%c0_122, %c1_123], %162 {strides = array<i32>} : memref<32x2xf32, #tpu.memory_space<vmem>>, vector<32x1xf32>,
    %c0_124 = arith.constant 0 : index
    %c0_125 = arith.constant 0 : index
    %164 = vector.load %arg22[%c0_124, %c0_125] : memref<32x2xf32, #tpu.memory_space<vmem>>, vector<32x2xf32>
    %c0_126 = arith.constant 0 : index
    %c0_127 = arith.constant 0 : index
    %165 = vector.load %arg14[%c0_126, %c0_127] : memref<32x32xf32, #tpu.memory_space<vmem>>, vector<32x32xf32>
    %cst_128 = arith.constant dense<0.000000e+00> : vector<32x2xf32>
    %166 = tpu.matmul %165, %164, %cst_128 {dimension_numbers = #tpu.dot_dimension_numbers<[1], [0], [0], [1], [0, 0, 1, 1], [], []>} : vector<32x32xf32>, vector<32x2xf32>, vector<32x2xf32> -> vector<32x2xf32>
    %c0_129 = arith.constant 0 : index
    %c0_130 = arith.constant 0 : index
    %167 = vector.load %arg15[%c0_129, %c0_130] : memref<32x1xf32, #tpu.memory_space<vmem>>, vector<32x1xf32>
    %168 = vector.broadcast %167 : vector<32x1xf32> to vector<32x2xf32>
    %169 = arith.addf %166, %168 : vector<32x2xf32>
    %cst_131 = arith.constant 0.000000e+00 : f32
    %170 = vector.broadcast %cst_131 : f32 to vector<32x2xf32>
    %171 = arith.maximumf %169, %170 : vector<32x2xf32>
    %c0_132 = arith.constant 0 : index
    %c0_133 = arith.constant 0 : index
    %c0_134 = arith.constant 0 : index
    %172 = vector.load %arg2[%c0_132, %c0_133, %c0_134] : memref<1x32x2xf32, #tpu.memory_space<vmem>>, vector<1x32x2xf32>
    %173 = vector.shape_cast %172 : vector<1x32x2xf32> to vector<32x2xf32>
    %cst_135 = arith.constant 2.500000e-01 : f32
    %174 = vector.broadcast %cst_135 : f32 to vector<32x2xf32>
    %175 = arith.cmpf oge, %173, %174 : vector<32x2xf32>
    %176 = arith.extui %175 : vector<32x2xi1> to vector<32x2xi32>
    %177 = arith.sitofp %176 : vector<32x2xi32> to vector<32x2xf32>
    %178 = arith.mulf %171, %177 : vector<32x2xf32>
    %cst_136 = arith.constant 1.33333337 : f32
    %179 = vector.broadcast %cst_136 : f32 to vector<32x2xf32>
    %180 = arith.mulf %178, %179 : vector<32x2xf32>
    %c0_137 = arith.constant 0 : index
    %c0_138 = arith.constant 0 : index
    %181 = vector.load %arg16[%c0_137, %c0_138] : memref<5x32xf32, #tpu.memory_space<vmem>>, vector<5x32xf32>
    %cst_139 = arith.constant dense<0.000000e+00> : vector<5x2xf32>
    %182 = tpu.matmul %181, %180, %cst_139 {dimension_numbers = #tpu.dot_dimension_numbers<[1], [0], [0], [1], [0, 0, 1, 1], [], []>} : vector<5x32xf32>, vector<32x2xf32>, vector<5x2xf32> -> vector<5x2xf32>
    %c0_140 = arith.constant 0 : index
    %c0_141 = arith.constant 0 : index
    %183 = vector.load %arg17[%c0_140, %c0_141] : memref<5x1xf32, #tpu.memory_space<vmem>>, vector<5x1xf32>
    %184 = vector.broadcast %183 : vector<5x1xf32> to vector<5x2xf32>
    %185 = arith.addf %182, %184 : vector<5x2xf32>
    %cst_142 = arith.constant dense<0xFF800000> : vector<2xf32>
    %186 = vector.multi_reduction <maximumf>, %185, %cst_142 [0] : vector<5x2xf32> to vector<2xf32>
    %187 = vector.shape_cast %186 : vector<2xf32> to vector<1x2xf32>
    %188 = vector.broadcast %187 : vector<1x2xf32> to vector<5x2xf32>
    %189 = arith.subf %185, %188 : vector<5x2xf32>
    %190 = math.exp %189 : vector<5x2xf32>
    %cst_143 = arith.constant dense<0.000000e+00> : vector<2xf32>
    %191 = vector.multi_reduction <add>, %190, %cst_143 [0] : vector<5x2xf32> to vector<2xf32>
    %192 = vector.shape_cast %191 : vector<2xf32> to vector<1x2xf32>
    %193 = math.log %192 : vector<1x2xf32>
    %194 = vector.broadcast %193 : vector<1x2xf32> to vector<5x2xf32>
    %195 = arith.subf %189, %194 : vector<5x2xf32>
    %c0_144 = arith.constant 0 : index
    %c0_145 = arith.constant 0 : index
    %c0_146 = arith.constant 0 : index
    %196 = vector.load %arg18[%c0_144, %c0_145, %c0_146] : memref<1x5x2xf32, #tpu.memory_space<vmem>>, vector<1x5x2xf32>
    %197 = vector.shape_cast %196 : vector<1x5x2xf32> to vector<5x2xf32>
    %198 = vector.shape_cast %195 : vector<5x2xf32> to vector<1x5x2xf32>
    tpu.vector_store %arg18[%c0_144, %c0_145, %c0_146], %198 {strides = array<i32>} : memref<1x5x2xf32, #tpu.memory_space<vmem>>, vector<1x5x2xf32>,
    return
  }
  func.func @transform_0(%arg0: i32) -> (i32, i32, i32, i32) {
    %c0_i32 = arith.constant 0 : i32
    %c0_i32_0 = arith.constant 0 : i32
    %c0_i32_1 = arith.constant 0 : i32
    %c0_i32_2 = arith.constant 0 : i32
    return %arg0, %c0_i32, %c0_i32_0, %c0_i32_1 : i32, i32, i32, i32
  }
  func.func @transform_1(%arg0: i32) -> (i32, i32, i32) {
    %c0_i32 = arith.constant 0 : i32
    %c0_i32_0 = arith.constant 0 : i32
    %c0_i32_1 = arith.constant 0 : i32
    return %arg0, %c0_i32, %c0_i32_0 : i32, i32, i32
  }
  func.func @transform_2(%arg0: i32) -> (i32, i32, i32, i32) {
    %c0_i32 = arith.constant 0 : i32
    %c0_i32_0 = arith.constant 0 : i32
    %c0_i32_1 = arith.constant 0 : i32
    %c0_i32_2 = arith.constant 0 : i32
    %c0_i32_3 = arith.constant 0 : i32
    return %c0_i32, %c0_i32_0, %c0_i32_1, %c0_i32_2 : i32, i32, i32, i32
  }
  func.func @transform_3(%arg0: i32) -> (i32, i32) {
    %c0_i32 = arith.constant 0 : i32
    %c0_i32_0 = arith.constant 0 : i32
    %c0_i32_1 = arith.constant 0 : i32
    return %c0_i32, %c0_i32_0 : i32, i32
  }
  func.func @transform_4(%arg0: i32) -> (i32, i32) {
    %c0_i32 = arith.constant 0 : i32
    %c0_i32_0 = arith.constant 0 : i32
    %c0_i32_1 = arith.constant 0 : i32
    return %c0_i32, %c0_i32_0 : i32, i32
  }
  func.func @transform_5(%arg0: i32) -> (i32, i32, i32, i32) {
    %c0_i32 = arith.constant 0 : i32
    %c0_i32_0 = arith.constant 0 : i32
    %c0_i32_1 = arith.constant 0 : i32
    %c0_i32_2 = arith.constant 0 : i32
    %c0_i32_3 = arith.constant 0 : i32
    return %c0_i32, %c0_i32_0, %c0_i32_1, %c0_i32_2 : i32, i32, i32, i32
  }
  func.func @transform_6(%arg0: i32) -> (i32, i32) {
    %c0_i32 = arith.constant 0 : i32
    %c0_i32_0 = arith.constant 0 : i32
    %c0_i32_1 = arith.constant 0 : i32
    return %c0_i32, %c0_i32_0 : i32, i32
  }
  func.func @transform_7(%arg0: i32) -> (i32, i32) {
    %c0_i32 = arith.constant 0 : i32
    %c0_i32_0 = arith.constant 0 : i32
    %c0_i32_1 = arith.constant 0 : i32
    return %c0_i32, %c0_i32_0 : i32, i32
  }
  func.func @transform_8(%arg0: i32) -> (i32, i32, i32, i32) {
    %c0_i32 = arith.constant 0 : i32
    %c0_i32_0 = arith.constant 0 : i32
    %c0_i32_1 = arith.constant 0 : i32
    %c0_i32_2 = arith.constant 0 : i32
    %c0_i32_3 = arith.constant 0 : i32
    return %c0_i32, %c0_i32_0, %c0_i32_1, %c0_i32_2 : i32, i32, i32, i32
  }
  func.func @transform_9(%arg0: i32) -> (i32, i32) {
    %c0_i32 = arith.constant 0 : i32
    %c0_i32_0 = arith.constant 0 : i32
    %c0_i32_1 = arith.constant 0 : i32
    return %c0_i32, %c0_i32_0 : i32, i32
  }
  func.func @transform_10(%arg0: i32) -> (i32, i32) {
    %c0_i32 = arith.constant 0 : i32
    %c0_i32_0 = arith.constant 0 : i32
    %c0_i32_1 = arith.constant 0 : i32
    return %c0_i32, %c0_i32_0 : i32, i32
  }
  func.func @transform_11(%arg0: i32) -> (i32, i32, i32, i32) {
    %c0_i32 = arith.constant 0 : i32
    %c0_i32_0 = arith.constant 0 : i32
    %c0_i32_1 = arith.constant 0 : i32
    %c0_i32_2 = arith.constant 0 : i32
    %c0_i32_3 = arith.constant 0 : i32
    return %c0_i32, %c0_i32_0, %c0_i32_1, %c0_i32_2 : i32, i32, i32, i32
  }
  func.func @transform_12(%arg0: i32) -> (i32, i32) {
    %c0_i32 = arith.constant 0 : i32
    %c0_i32_0 = arith.constant 0 : i32
    %c0_i32_1 = arith.constant 0 : i32
    return %c0_i32, %c0_i32_0 : i32, i32
  }
  func.func @transform_13(%arg0: i32) -> (i32, i32) {
    %c0_i32 = arith.constant 0 : i32
    %c0_i32_0 = arith.constant 0 : i32
    %c0_i32_1 = arith.constant 0 : i32
    return %c0_i32, %c0_i32_0 : i32, i32
  }
  func.func @transform_14(%arg0: i32) -> (i32, i32) {
    %c0_i32 = arith.constant 0 : i32
    %c0_i32_0 = arith.constant 0 : i32
    %c0_i32_1 = arith.constant 0 : i32
    return %c0_i32, %c0_i32_0 : i32, i32
  }
  func.func @transform_15(%arg0: i32) -> (i32, i32) {
    %c0_i32 = arith.constant 0 : i32
    %c0_i32_0 = arith.constant 0 : i32
    %c0_i32_1 = arith.constant 0 : i32
    return %c0_i32, %c0_i32_0 : i32, i32
  }
  func.func @transform_16(%arg0: i32) -> (i32, i32) {
    %c0_i32 = arith.constant 0 : i32
    %c0_i32_0 = arith.constant 0 : i32
    %c0_i32_1 = arith.constant 0 : i32
    return %c0_i32, %c0_i32_0 : i32, i32
  }
  func.func @transform_17(%arg0: i32) -> (i32, i32, i32) {
    %c0_i32 = arith.constant 0 : i32
    %c0_i32_0 = arith.constant 0 : i32
    %c0_i32_1 = arith.constant 0 : i32
    return %arg0, %c0_i32, %c0_i32_0 : i32, i32, i32
  }
}

</mosaic_0001>

<bundles_post_ra>
// kernel: cnn_retino_forward.1
= control target key start
LH: loop header
LB: loop body
LE: loop exit
PB: predicated region body
PF: predicated region fallthrough
CT: control target
= control target key end

     0   :  { %s10849_s24 = smov 0   ;;  %s12340_s0 = inlined_call_operand.vmem [shape: f32[4,50,3,50], index: 0, kind: input, shape index: {}]   ;;  %s12341_s1 = inlined_call_operand.vmem [shape: f32[2,32,2], index: 1, kind: input, shape index: {}]   ;;  %s12342_s2 = inlined_call_operand.vmem [shape: f32[3,3,4,3], index: 2, kind: input, shape index: {}]   ;;  %s12343_s3 = inlined_call_operand.vmem [shape: f32[4,1], index: 3, kind: input, shape index: {}]   ;;  %s12344_s4 = inlined_call_operand.vmem [shape: f32[48,48], index: 4, kind: input, shape index: {}]   ;;  %s12345_s5 = inlined_call_operand.vmem [shape: f32[3,3,8,4], index: 5, kind: input, shape index: {}]   ;;  %s12346_s6 = inlined_call_operand.vmem [shape: f32[8,1], index: 6, kind: input, shape index: {}]   ;;  %s12347_s7 = inlined_call_operand.vmem [shape: f32[22,22], index: 7, kind: input, shape index: {}]   ;;  %s12348_s8 = inlined_call_operand.vmem [shape: f32[3,3,16,8], index: 8, kind: input, shape index: {}]   ;;  %s12349_s9 = inlined_call_operand.vmem [shape: f32[16,1], index: 9, kind: input, shape index: {}]   ;;  %s12350_s10 = inlined_call_operand.vmem [shape: f32[9,8], index: 10, kind: input, shape index: {}]   ;;  %s12351_s11 = inlined_call_operand.vmem [shape: f32[3,3,32,16], index: 11, kind: input, shape index: {}]   ;;  %s12352_s12 = inlined_call_operand.vmem [shape: f32[32,1], index: 12, kind: input, shape index: {}]   ;;  %s12353_s13 = inlined_call_operand.vmem [shape: f32[32,32], index: 13, kind: input, shape index: {}]   ;;  %s12354_s14 = inlined_call_operand.vmem [shape: f32[32,1], index: 14, kind: input, shape index: {}]   ;;  %s12355_s15 = inlined_call_operand.vmem [shape: f32[5,32], index: 15, kind: input, shape index: {}]   ;;  %s12356_s16 = inlined_call_operand.vmem [shape: f32[5,1], index: 16, kind: input, shape index: {}]   ;;  %s12357_s17 = inlined_call_operand.vmem [shape: f32[2,5,2], index: 17, kind: output, shape index: {}]  }
   0x1   :  { %12363 = sst [smem:[#allocation17_spill]] %s12340_s0 }
   0x2   :  { %12364 = sst [smem:[#allocation18_spill]] %s12341_s1 }
   0x3   :  { %12365 = sst [smem:[#allocation19_spill]] %s12355_s15 }
   0x4   :  { %12366 = sst [smem:[#allocation20_spill]] %s12356_s16 }
   0x5 LB: > { %12367 = sst [smem:[#allocation6_spill]] %s10719_s24  ;;  %s9175_s25 = sadd.s32 4294967295, %s10719_s24   ;;  %s10719_s24 = sphi %s10849_s24, %s27_s24  }
   0x6   : > { %p9179_p0 = scmp.ge.s32.totalorder %s10719_s24, 1  ;;  %p499_p1 = scmp.lt.s32.totalorder %s10719_s24, 3 }
   0x8   : > { %p500_p2 = pnand %p9179_p0, %p499_p1 }
   0xa   : > { %503 = sbr.rel (%p500_p2) target bundleno = 3235 (0xca3), region = 88 }
   0xf   : > { %s9180_s26 = sshll.u32 %s9175_s25, 1  ;;  %p563_p3 = scmp.lt.s32.totalorder %s9175_s25, 1 }
  0x10   : > { %p557_p4 = scmp.lt.s32.totalorder %s9180_s26, 3  ;;  %s12368_s18 = sld [smem:[#allocation18_spill]] }
  0x11   : > { %s12394_s25 = smov (!%p563_p3, %s9175_s25), 1  ;;  %s12369_s24 = sld [smem:[#allocation17_spill]] }
  0x12   : > { %s12396_s26 = smov (!%p557_p4, %s9180_s26), 3  ;;  %s9555_s27 = sshll.u32 %s12394_s25, 5 }
  0x13   : > { %s9184_s28 = sshll.u32 %s12394_s25, 3  ;;  %s10624_s29 = smul.u32 200, %s12396_s26 }
  0x14   : > { %s10865_s21 = scalar_lea.vmem %s12357_s17, %s9184_s28  ;;  %s10872_s16 = smov 0  }
  0x16   : > { %s10860_s19 = scalar_lea.vmem %s12368_s18, %s9555_s27 }
  0x17   : > { %s10870_s15 = scalar_lea.vmem %s12369_s24, %s10624_s29 }
  0x18 LB: >> { %v10880_v0 = vld [vmem:[%s12342_s2] sm:$0xf]  ;;  %v10885_v1 = vld [vmem:[%s12342_s2 + $0x4] sm:$0xf]  ;;  %v10890_v2 = vld [vmem:[%s12342_s2 + $0x8] sm:$0xf]  ;;  %s10723_s16 = sphi %s10872_s16, %s577_s16  }
  0x19   : >> { %v10895_v3 = vld [vmem:[%s12342_s2 + $0xc] sm:$0xf]  ;;  %v10900_v4 = vld [vmem:[%s12342_s2 + $0x10] sm:$0xf]  ;;  %v10905_v5 = vld [vmem:[%s12342_s2 + $0x14] sm:$0xf] }
  0x1a   : >> { %v10910_v6 = vld [vmem:[%s12342_s2 + $0x18] sm:$0xf]  ;;  %v10915_v7 = vld [vmem:[%s12342_s2 + $0x1c] sm:$0xf]  ;;  %v10920_v8 = vld [vmem:[%s12342_s2 + $0x20] sm:$0xf] }
  0x1b   : >> { %v10925_v9 = vld [vmem:[%s12343_s3] sm:$0xf]  ;;  %v10935_v11 = vld [vmem:[%s12344_s4 + $0x8] sm:$0xff]  ;;  %v10940_v12 = vld [vmem:[%s12344_s4 + $0x10] sm:$0xff]  ;;  %s10957_s29 = smov 0  }
  0x1c   : >> { %v10930_v10 = vld [vmem:[%s12344_s4] sm:$0xff]  ;;  %v10945_v13 = vld [vmem:[%s12344_s4 + $0x18] sm:$0xff]  ;;  %v10955_v15 = vld [vmem:[%s12344_s4 + $0x28] sm:$0xff] }
  0x1d   : >> { %v10950_v14 = vld [vmem:[%s12344_s4 + $0x20] sm:$0xff] }
  0x1e LB: >>> { %s610_s30 = smul.u32 200, %s10723_s16  ;;  %v10737_v16 = vmov 0.0   ;;  %vm10738_vm0 = vmmov 0   ;;  %s9556_s18 = sshll.u32 %s10727_s29, 3  ;;  %vm631_vm1 = vcmask 1042432   ;;  %vm627_vm2 = vcmask 23552   ;;  %s10727_s29 = sphi %s10957_s29, %s607_s29  }
  0x1f   : >>> { %9938 = vmatprep.subr.mxu1 %v10737_v16  ;;  %9940 = vmatprep.mubr.msk.f32.mxu1 %vm10738_vm0, %v10737_v16  ;;  %s10739_s22 = smov 127   ;;  %s10740_s23 = smov 126   ;;  %v10741_v29 = vmov 0   ;;  %vm1977_vm3 = vcmask 392192   ;;  %vm2067_vm4 = vcmask 191488  }
  0x20   : >>> { %9948 = vmatprep.subr.mxu0 %v10737_v16  ;;  %9950 = vmatprep.mubr.msk.f32.mxu0 %vm10738_vm0, %v10737_v16  ;;  %s611_s1 = sadd.s32 %s9556_s18, %s610_s30  ;;  %s10742_s25 = smov 104  }
  0x21   : >>> { %s612_s20 = scalar_lea.vmem %s10870_s15, %s611_s1  ;;  %10687 = vset.pattern.permute.xlu0 %v10741_v29  ;;  %s2064_s26 = smul.u32 96, %s10723_s16 }
  0x22   : >>> { %v613_v17 = vld [vmem:[%s612_s20] sm:$0x7]  ;;  %v9197_v18 = vld [vmem:[%s612_s20 + $0x4] sm:$0x7]  ;;  %v9200_v19 = vld [vmem:[%s612_s20 + $0x8] sm:$0x7] }
  0x23   : >>> { %625 = vrot.lane.b32.xlu0 %v613_v17, %s10739_s22  ;;  %934 = vrot.lane.b32.xlu1 %v9197_v18, %s10739_s22  ;;  %v10971_v20 = vld [vmem:[%s612_s20 + $0xc] sm:$0x7]  ;;  %s9241_s27 = sshll.u32 %s10727_s29, 2  ;;  %s607_s29 = sadd.s32 1, %s10727_s29  }
  0x24   : >>> { %s2065_s28 = sadd.s32 %s9241_s27, %s2064_s26  ;;  %p604_p5 = scmp.ge.s32.totalorder %s607_s29, 24  }
  0x25   : >>> { %s2066_s0 = scalar_lea.vmem [#allocation2], %s2065_s28  ;;  %s11165_s18 = smov (%p604_p5), 0  }
  0x27   : >>> { %779 = vrot.lane.b32.xlu0 %v613_v17, %s10740_s23  ;;  %1012 = vrot.lane.b32.xlu1 %v9197_v18, %s10740_s23 }
  0x2b   : >>> { %1167 = vrot.lane.b32.xlu0 %v9200_v19, %s10739_s22  ;;  %1245 = vrot.lane.b32.xlu1 %v9200_v19, %s10740_s23 }
  0x2f   : >>> { %1826 = vrot.lane.b32.xlu0 %v10971_v20, %s10739_s22  ;;  %1901 = vrot.lane.b32.xlu1 %v10971_v20, %s10740_s23 }
  0x33   : >>> { %2058 = vperm.xlu0 %10687, %v10925_v9  }
  0x95   : >>> { %v626_v21 = vpop.permute.xlu0 %625  ;;  %v935_v22 = vpop.permute.xlu1 %934 }
  0x96   : >>> { %9939 = vmatpush3.msk.msra.mxu1 %vm631_vm1, %v626_v21 }
  0x97   : >>> { %9941 = vmatmul.mubr.msk.f32.vlgmr.msra.gmra.mxu1 %vm627_vm2, %v10885_v1  ;;  %9943 = vmatprep.subr.mxu1 %v10737_v16 }
  0x98   : >>> { %9944 = vmatpush3.msk.msra.mxu1 %vm631_vm1, %v613_v17  ;;  %9945 = vmatprep.mubr.msk.f32.mxu1 %vm10738_vm0, %v10737_v16 }
  0x99   : >>> { %v780_v23 = vpop.permute.xlu0 %779  ;;  %9953 = vmatprep.subr.mxu1 %v10737_v16  ;;  %v1013_v24 = vpop.permute.xlu1 %1012 }
  0x9a   : >>> { %9949 = vmatpush3.msk.msra.mxu0 %vm631_vm1, %v780_v23 }
  0x9b   : >>> { %9946 = vmatmul.mubr.msk.f32.vlgmr.msra.gmra.mxu1 %vm627_vm2, %v10880_v0  ;;  %9951 = vmatmul.mubr.msk.f32.vlgmr.msra.gmra.mxu0 %vm627_vm2, %v10890_v2 }
  0x9c   : >>> { %9958 = vmatprep.subr.mxu0 %v10737_v16  ;;  %9954 = vmatpush3.msk.msra.mxu1 %vm631_vm1, %v9197_v18 }
  0x9d   : >>> { %9959 = vmatpush3.msk.msra.mxu0 %vm631_vm1, %v935_v22  ;;  %9955 = vmatprep.mubr.msk.f32.mxu1 %vm10738_vm0, %v10737_v16  ;;  %v1168_v25 = vpop.permute.xlu0 %1167  ;;  %v1246_v26 = vpop.permute.xlu1 %1245 }
  0x9e   : >>> { %9960 = vmatprep.mubr.msk.f32.mxu0 %vm10738_vm0, %v10737_v16  ;;  %9963 = vmatprep.subr.mxu1 %v10737_v16 }
  0x9f   : >>> { %9956 = vmatmul.mubr.msk.f32.vlgmr.msra.gmra.mxu1 %vm627_vm2, %v10895_v3  ;;  %9961 = vmatmul.mubr.msk.f32.vlgmr.msra.gmra.mxu0 %vm627_vm2, %v10900_v4 }
  0xa0   : >>> { %9964 = vmatpush3.msk.msra.mxu1 %vm631_vm1, %v1013_v24  ;;  %9968 = vmatprep.subr.mxu0 %v10737_v16 }
  0xa1   : >>> { %9965 = vmatprep.mubr.msk.f32.mxu1 %vm10738_vm0, %v10737_v16  ;;  %9969 = vmatpush3.msk.msra.mxu0 %vm631_vm1, %v9200_v19  ;;  %v1827_v27 = vpop.permute.xlu0 %1826  ;;  %v1902_v28 = vpop.permute.xlu1 %1901 }
  0xa2   : >>> { %9970 = vmatprep.mubr.msk.f32.mxu0 %vm10738_vm0, %v10737_v16  ;;  %9973 = vmatprep.subr.mxu1 %v10737_v16 }
  0xa3   : >>> { %9966 = vmatmul.mubr.msk.f32.vlgmr.msra.gmra.mxu1 %vm627_vm2, %v10905_v5  ;;  %9971 = vmatmul.mubr.msk.f32.vlgmr.msra.gmra.mxu0 %vm627_vm2, %v10910_v6 }
  0xa4   : >>> { %9974 = vmatpush3.msk.msra.mxu1 %vm631_vm1, %v1168_v25  ;;  %9978 = vmatprep.subr.mxu0 %v10737_v16 }
  0xa5   : >>> { %9975 = vmatprep.mubr.msk.f32.mxu1 %vm10738_vm0, %v10737_v16  ;;  %9979 = vmatpush3.msk.msra.mxu0 %vm631_vm1, %v1246_v26 }
  0xa6   : >>> { %9980 = vmatprep.mubr.msk.f32.mxu0 %vm10738_vm0, %v10737_v16  ;;  %9983 = vmatprep.subr.mxu1 %v10737_v16 }
  0xa7   : >>> { %9976 = vmatmul.mubr.msk.f32.vlgmr.msra.gmra.mxu1 %vm627_vm2, %v10915_v7  ;;  %9981 = vmatmul.mubr.msk.f32.vlgmr.msra.gmra.mxu0 %vm627_vm2, %v10920_v8 }
  0xa8   : >>> { %9984 = vmatpush3.msk.msra.mxu1 %vm631_vm1, %v935_v22  ;;  %9988 = vmatprep.subr.mxu0 %v10737_v16 }
  0xa9   : >>> { %9985 = vmatprep.mubr.msk.f32.mxu1 %vm10738_vm0, %v10737_v16  ;;  %9989 = vmatpush3.msk.msra.mxu0 %vm631_vm1, %v9197_v18 }
  0xaa   : >>> { %9990 = vmatprep.mubr.msk.f32.mxu0 %vm10738_vm0, %v10737_v16  ;;  %9993 = vmatprep.subr.mxu1 %v10737_v16 }
  0xab   : >>> { %9986 = vmatmul.mubr.msk.f32.vlgmr.msra.gmra.mxu1 %vm627_vm2, %v10885_v1  ;;  %9991 = vmatmul.mubr.msk.f32.vlgmr.msra.gmra.mxu0 %vm627_vm2, %v10880_v0  ;;  %v11123_v0 = vld [vmem:[%s12345_s5 + $0x20] sm:$0xff] (%p604_p5)  ;;  %v11128_v1 = vld [vmem:[%s12345_s5 + $0x28] sm:$0xff] (%p604_p5) }
  0xac   : >>> { %9994 = vmatpush3.msk.msra.mxu1 %vm631_vm1, %v1013_v24  ;;  %9998 = vmatprep.subr.mxu0 %v10737_v16 }
  0xad   : >>> { %9999 = vmatpush3.msk.msra.mxu0 %vm631_vm1, %v9200_v19  ;;  %9995 = vmatprep.mubr.msk.f32.mxu1 %vm10738_vm0, %v10737_v16 }
  0xae   : >>> { %10000 = vmatprep.mubr.msk.f32.mxu0 %vm10738_vm0, %v10737_v16  ;;  %10003 = vmatprep.subr.mxu1 %v10737_v16 }
  0xaf   : >>> { %10008 = vmatprep.subr.mxu0 %v10737_v16  ;;  %9996 = vmatmul.mubr.msk.f32.vlgmr.msra.gmra.mxu1 %vm627_vm2, %v10890_v2  ;;  %v11133_v2 = vld [vmem:[%s12345_s5 + $0x30] sm:$0xff] (%p604_p5) }
  0xb0   : >>> { %10001 = vmatmul.mubr.msk.f32.vlgmr.msra.gmra.mxu0 %vm627_vm2, %v10895_v3  ;;  %10004 = vmatpush3.msk.msra.mxu1 %vm631_vm1, %v1168_v25  ;;  %v11138_v3 = vld [vmem:[%s12345_s5 + $0x38] sm:$0xff] (%p604_p5) }
  0xb1   : >>> { %10009 = vmatpush3.msk.msra.mxu0 %vm631_vm1, %v1246_v26  ;;  %10005 = vmatprep.mubr.msk.f32.mxu1 %vm10738_vm0, %v10737_v16 }
  0xb2   : >>> { %10010 = vmatprep.mubr.msk.f32.mxu0 %vm10738_vm0, %v10737_v16  ;;  %10013 = vmatprep.subr.mxu1 %v10737_v16 }
  0xb3   : >>> { %10006 = vmatmul.mubr.msk.f32.vlgmr.msra.gmra.mxu1 %vm627_vm2, %v10900_v4  ;;  %10018 = vmatprep.subr.mxu0 %v10737_v16  ;;  %v11143_v4 = vld [vmem:[%s12345_s5 + $0x40] sm:$0xff] (%p604_p5) }
  0xb4   : >>> { %10011 = vmatmul.mubr.msk.f32.vlgmr.msra.gmra.mxu0 %vm627_vm2, %v10905_v5  ;;  %10014 = vmatpush3.msk.msra.mxu1 %vm631_vm1, %v10971_v20  ;;  %v11148_v5 = vld [vmem:[%s12346_s6] sm:$0xff] (%p604_p5) }
  0xb5   : >>> { %10015 = vmatprep.mubr.msk.f32.mxu1 %vm10738_vm0, %v10737_v16  ;;  %10019 = vmatpush3.msk.msra.mxu0 %vm631_vm1, %v1827_v27 }
  0xb6   : >>> { %10020 = vmatprep.mubr.msk.f32.mxu0 %vm10738_vm0, %v10737_v16  ;;  %10023 = vmatprep.subr.mxu1 %v10737_v16 }
  0xb7   : >>> { %10016 = vmatmul.mubr.msk.f32.vlgmr.msra.gmra.mxu1 %vm627_vm2, %v10910_v6  ;;  %10028 = vmatprep.subr.mxu0 %v10737_v16  ;;  %v11153_v6 = vld [vmem:[%s12347_s7] sm:$0xff] (%p604_p5) }
  0xb8   : >>> { %10021 = vmatmul.mubr.msk.f32.vlgmr.msra.gmra.mxu0 %vm627_vm2, %v10915_v7  ;;  %10024 = vmatpush3.msk.msra.mxu1 %vm631_vm1, %v1902_v28  ;;  %v11158_v7 = vld [vmem:[%s12347_s7 + $0x8] sm:$0xff] (%p604_p5) }
  0xb9   : >>> { %10025 = vmatprep.mubr.msk.f32.mxu1 %vm10738_vm0, %v10737_v16  ;;  %10029 = vmatpush3.msra.mxu0 %v10955_v15 }
  0xba   : >>> { %10030 = vmatprep.subr.mxu0 %v10737_v16  ;;  %10040 = vmatprep.mubr.msk.f32.mxu0 %vm10738_vm0, %v10737_v16 }
  0xbb   : >>> { %10026 = vmatmul.mubr.msk.f32.vlgmr.msra.gmra.mxu1 %vm627_vm2, %v10920_v8  ;;  %10031 = vmatpush3.msra.mxu0 %v10950_v14  ;;  %v11163_v8 = vld [vmem:[%s12347_s7 + $0x10] sm:$0x3f] (%p604_p5) }
  0xbc   : >>> { %10032 = vmatprep.subr.mxu0 %v10737_v16 }
  0xbd   : >>> { %10033 = vmatpush3.msra.mxu0 %v10945_v13 }
  0xbe   : >>> { %10034 = vmatprep.subr.mxu0 %v10737_v16 }
  0xbf   : >>> { %10035 = vmatpush3.msra.mxu0 %v10940_v12 }
  0xc0   : >>> { %10036 = vmatprep.subr.mxu0 %v10737_v16 }
  0xc1   : >>> { %10037 = vmatpush3.msra.mxu0 %v10935_v11 }
  0xc2   : >>> { %10038 = vmatprep.subr.mxu0 %v10737_v16 }
  0xc3   : >>> { %10039 = vmatpush3.msra.mxu0 %v10930_v10 }
 0x157   : >>> { %v700_v30 = vpop.f32.mrf.mxu1 }
 0x159   : >>> { %v9942_v31 = vpop.f32.mrf.mxu1 }
 0x15b   : >>> { %v775_v32 = vpop.f32.mrf.mxu1  ;;  %v852_v33 = vpop.f32.mrf.mxu0 }
 0x15c   : >>> { %v776_v38 = vadd.f32 %v775_v32, %v700_v30 }
 0x15d   : >>> { %v9947_v34 = vpop.f32.mrf.mxu1  ;;  %v9952_v35 = vpop.f32.mrf.mxu0 }
 0x15e   : >>> { %v856_v43 = vadd.f32 %v852_v33, %v776_v38  ;;  %v2059_v38 = vpop.permute.xlu0 %2058 }
 0x15f   : >>> { %v929_v36 = vpop.f32.mrf.mxu1  ;;  %v1007_v37 = vpop.f32.mrf.mxu0 }
 0x160   : >>> { %v933_v48 = vadd.f32 %v929_v36, %v856_v43  ;;  %v11108_v43 = vld [vmem:[%s12345_s5 + $0x8] sm:$0xff] (%p604_p5) }
 0x161   : >>> { %v9957_v39 = vpop.f32.mrf.mxu1  ;;  %v9962_v40 = vpop.f32.mrf.mxu0 }
 0x162   : >>> { %v1011_v53 = vadd.f32 %v1007_v37, %v933_v48 }
 0x163   : >>> { %v1085_v41 = vpop.f32.mrf.mxu1  ;;  %v1162_v42 = vpop.f32.mrf.mxu0 }
 0x164   : >>> { %v1089_v58 = vadd.f32 %v1085_v41, %v1011_v53 }
 0x165   : >>> { %v9967_v44 = vpop.f32.mrf.mxu1  ;;  %v9972_v45 = vpop.f32.mrf.mxu0 }
 0x166   : >>> { %v1166_v17 = vadd.f32 %v1162_v42, %v1089_v58  ;;  %v11103_v42 = vld [vmem:[%s12345_s5] sm:$0xff] (%p604_p5)  ;;  %v11113_v44 = vld [vmem:[%s12345_s5 + $0x10] sm:$0xff] (%p604_p5)  ;;  %v11118_v45 = vld [vmem:[%s12345_s5 + $0x18] sm:$0xff] (%p604_p5) }
 0x167   : >>> { %v1240_v46 = vpop.f32.mrf.mxu1  ;;  %v1318_v47 = vpop.f32.mrf.mxu0 }
 0x168   : >>> { %v1244_v24 = vadd.f32 %v1240_v46, %v1166_v17 }
 0x169   : >>> { %v9977_v49 = vpop.f32.mrf.mxu1  ;;  %v9982_v50 = vpop.f32.mrf.mxu0 }
 0x16a   : >>> { %v1322_v31 = vadd.f32 %v1318_v47, %v1244_v24 }
 0x16b   : >>> { %v1394_v51 = vpop.f32.mrf.mxu1  ;;  %v1464_v52 = vpop.f32.mrf.mxu0 }
 0x16c   : >>> { %v1465_v56 = vadd.f32 %v1464_v52, %v1394_v51 }
 0x16d   : >>> { %v9987_v54 = vpop.f32.mrf.mxu1  ;;  %v9992_v55 = vpop.f32.mrf.mxu0 }
 0x16f   : >>> { %v1534_v57 = vpop.f32.mrf.mxu1 }
 0x170   : >>> { %v1538_v59 = vadd.f32 %v1534_v57, %v1465_v56  ;;  %v1605_v60 = vpop.f32.mrf.mxu0 }
 0x171   : >>> { %v9997_v61 = vpop.f32.mrf.mxu1 }
 0x172   : >>> { %v1609_v62 = vadd.f32 %v1605_v60, %v1538_v59  ;;  %v10002_v63 = vpop.f32.mrf.mxu0 }
 0x173   : >>> { %v1676_v16 = vpop.f32.mrf.mxu1 }
 0x174   : >>> { %v1680_v18 = vadd.f32 %v1676_v16, %v1609_v62  ;;  %v1747_v19 = vpop.f32.mrf.mxu0 }
 0x175   : >>> { %v10007_v20 = vpop.f32.mrf.mxu1 }
 0x176   : >>> { %v1751_v21 = vadd.f32 %v1747_v19, %v1680_v18  ;;  %v10012_v22 = vpop.f32.mrf.mxu0 }
 0x177   : >>> { %v1821_v23 = vpop.f32.mrf.mxu1 }
 0x178   : >>> { %v1825_v25 = vadd.f32 %v1821_v23, %v1751_v21  ;;  %v1896_v26 = vpop.f32.mrf.mxu0 }
 0x179   : >>> { %v10017_v27 = vpop.f32.mrf.mxu1 }
 0x17a   : >>> { %v1900_v28 = vadd.f32 %v1896_v26, %v1825_v25  ;;  %v10022_v29 = vpop.f32.mrf.mxu0 }
 0x17b   : >>> { %v1971_v30 = vpop.f32.mrf.mxu1 }
 0x17c   : >>> { %v1975_v32 = vadd.f32 %v1971_v30, %v1900_v28 }
 0x17d   : >>> { %v10027_v33 = vpop.f32.mrf.mxu1 }
 0x17e   : >>> { %v1976_v34 = vmax.f32 %v1322_v31, %v1975_v32 }
 0x180   : >>> { %10041 = vmatmul.mubr.msk.f32.vlgmr.msra.gmra.mxu0 %vm1977_vm3, %v1976_v34 }
 0x240   : >>> { %v2047_v35 = vpop.f32.mrf.mxu0 }
 0x241   : >>> { %2052 = vrot.lane.b32.xlu1 %v2047_v35, %s10742_s25 }
 0x242   : >>> { %v10042_v36 = vpop.f32.mrf.mxu0 }
 0x2b3   : >>> { %v2053_v37 = vpop.permute.xlu1 %2052 }
 0x2b4   : >>> { %v2055_v39 = vmax.f32 %v2047_v35, %v2053_v37 }
 0x2b6   : >>> { %v2061_v40 = vadd.f32 %v2059_v38, %v2055_v39  ;;  %606 = sbr.rel (!%p604_p5) target bundleno = 30 (0x1e), region = 203 }
 0x2b8   : >>> { %v2062_v41 = vmax.f32 %v2061_v40, 0.0 }
 0x2ba   : >>> { %2068 = vst.msk [vmem:[%s2066_s0] sm:$0xf] %vm2067_vm4, %v2062_v41 }
 0x2bb LB: >>> { %v10743_v9 = vmov 0.0   ;;  %vm10744_vm5 = vmmov 0   ;;  %s9560_s1 = sshll.u32 %s10731_s18, 3  ;;  %s10745_s23 = smov 127   ;;  %vm2119_vm6 = vcmask 1043456   ;;  %vm2115_vm7 = vcmask 31744   ;;  %s10731_s18 = sphi %s11165_s18, %s2095_s18  }
 0x2bc   : >>> { %10043 = vmatprep.subr.mxu1 %v10743_v9  ;;  %10045 = vmatprep.mubr.msk.f32.mxu1 %vm10744_vm5, %v10743_v9  ;;  %s2099_s20 = sadd.s32 %s9560_s1, %s2064_s26  ;;  %s10746_s25 = smov 126   ;;  %vm3469_vm8 = vcmask 1045504   ;;  %v10747_v52 = vmov 0   ;;  %vm3465_vm9 = vcmask 179200   ;;  %vm3559_vm10 = vcmask 89088  }
 0x2bd   : >>> { %10053 = vmatprep.subr.mxu0 %v10743_v9  ;;  %10055 = vmatprep.mubr.msk.f32.mxu0 %vm10744_vm5, %v10743_v9  ;;  %s2100_s22 = scalar_lea.vmem [#allocation2], %s2099_s20  ;;  %s10748_s29 = smov 117  }
 0x2be   : >>> { %10688 = vset.pattern.permute.xlu0 %v10747_v52  ;;  %s3556_s27 = smul.u32 88, %s10723_s16  ;;  %s2095_s18 = sadd.s32 1, %s10731_s18  }
 0x2bf   : >>> { %p2092_p6 = scmp.ge.s32.totalorder %s2095_s18, 11  }
 0x2c0   : >>> { %s3557_s28 = sadd.s32 %s9560_s1, %s3556_s27  ;;  %s11415_s26 = smov (%p2092_p6), 0  }
 0x2c1   : >>> { %v2101_v10 = vld [vmem:[%s2100_s22] sm:$0xf]  ;;  %v9254_v11 = vld [vmem:[%s2100_s22 + $0x4] sm:$0xf]  ;;  %v9257_v12 = vld [vmem:[%s2100_s22 + $0x8] sm:$0xf] }
 0x2c2   : >>> { %2113 = vrot.lane.b32.xlu0 %v2101_v10, %s10745_s23  ;;  %2422 = vrot.lane.b32.xlu1 %v9254_v11, %s10745_s23  ;;  %v11181_v13 = vld [vmem:[%s2100_s22 + $0xc] sm:$0xf]  ;;  %s3558_s0 = scalar_lea.vmem [#allocation3], %s3557_s28 }
 0x2c6   : >>> { %2267 = vrot.lane.b32.xlu0 %v2101_v10, %s10746_s25  ;;  %2500 = vrot.lane.b32.xlu1 %v9254_v11, %s10746_s25 }
 0x2ca   : >>> { %2655 = vrot.lane.b32.xlu0 %v9257_v12, %s10745_s23  ;;  %2733 = vrot.lane.b32.xlu1 %v9257_v12, %s10746_s25 }
 0x2ce   : >>> { %3314 = vrot.lane.b32.xlu0 %v11181_v13, %s10745_s23  ;;  %3389 = vrot.lane.b32.xlu1 %v11181_v13, %s10746_s25 }
 0x2d2   : >>> { %3550 = vperm.xlu0 %10688, %v11148_v5   ;;  %v11373_v5 = vld [vmem:[%s12348_s8 + $0x68] sm:$0xff] (%p2092_p6) }
 0x334   : >>> { %v2114_v14 = vpop.permute.xlu0 %2113  ;;  %v2423_v15 = vpop.permute.xlu1 %2422 }
 0x335   : >>> { %10044 = vmatpush3.msk.msra.mxu1 %vm2119_vm6, %v2114_v14 }
 0x336   : >>> { %10046 = vmatmul.mubr.msk.f32.vlgmr.msra.gmra.mxu1 %vm2115_vm7, %v11108_v43  ;;  %10048 = vmatprep.subr.mxu1 %v10743_v9 }
 0x337   : >>> { %10049 = vmatpush3.msk.msra.mxu1 %vm2119_vm6, %v2101_v10  ;;  %10050 = vmatprep.mubr.msk.f32.mxu1 %vm10744_vm5, %v10743_v9 }
 0x338   : >>> { %v2268_v46 = vpop.permute.xlu0 %2267  ;;  %10058 = vmatprep.subr.mxu1 %v10743_v9  ;;  %v2501_v47 = vpop.permute.xlu1 %2500 }
 0x339   : >>> { %10054 = vmatpush3.msk.msra.mxu0 %vm2119_vm6, %v2268_v46 }
 0x33a   : >>> { %10051 = vmatmul.mubr.msk.f32.vlgmr.msra.gmra.mxu1 %vm2115_vm7, %v11103_v42  ;;  %10056 = vmatmul.mubr.msk.f32.vlgmr.msra.gmra.mxu0 %vm2115_vm7, %v11113_v44 }
 0x33b   : >>> { %10063 = vmatprep.subr.mxu0 %v10743_v9  ;;  %10059 = vmatpush3.msk.msra.mxu1 %vm2119_vm6, %v9254_v11 }
 0x33c   : >>> { %10064 = vmatpush3.msk.msra.mxu0 %vm2119_vm6, %v2423_v15  ;;  %10060 = vmatprep.mubr.msk.f32.mxu1 %vm10744_vm5, %v10743_v9  ;;  %v2656_v48 = vpop.permute.xlu0 %2655  ;;  %v2734_v49 = vpop.permute.xlu1 %2733 }
 0x33d   : >>> { %10065 = vmatprep.mubr.msk.f32.mxu0 %vm10744_vm5, %v10743_v9  ;;  %10068 = vmatprep.subr.mxu1 %v10743_v9 }
 0x33e   : >>> { %10061 = vmatmul.mubr.msk.f32.vlgmr.msra.gmra.mxu1 %vm2115_vm7, %v11118_v45  ;;  %10066 = vmatmul.mubr.msk.f32.vlgmr.msra.gmra.mxu0 %vm2115_vm7, %v11123_v0 }
 0x33f   : >>> { %10069 = vmatpush3.msk.msra.mxu1 %vm2119_vm6, %v2501_v47  ;;  %10073 = vmatprep.subr.mxu0 %v10743_v9 }
 0x340   : >>> { %10070 = vmatprep.mubr.msk.f32.mxu1 %vm10744_vm5, %v10743_v9  ;;  %10074 = vmatpush3.msk.msra.mxu0 %vm2119_vm6, %v9257_v12  ;;  %v3315_v50 = vpop.permute.xlu0 %3314  ;;  %v3390_v51 = vpop.permute.xlu1 %3389 }
 0x341   : >>> { %10075 = vmatprep.mubr.msk.f32.mxu0 %vm10744_vm5, %v10743_v9  ;;  %10078 = vmatprep.subr.mxu1 %v10743_v9 }
 0x342   : >>> { %10071 = vmatmul.mubr.msk.f32.vlgmr.msra.gmra.mxu1 %vm2115_vm7, %v11128_v1  ;;  %10076 = vmatmul.mubr.msk.f32.vlgmr.msra.gmra.mxu0 %vm2115_vm7, %v11133_v2 }
 0x343   : >>> { %10079 = vmatpush3.msk.msra.mxu1 %vm2119_vm6, %v2656_v48  ;;  %10083 = vmatprep.subr.mxu0 %v10743_v9 }
 0x344   : >>> { %10080 = vmatprep.mubr.msk.f32.mxu1 %vm10744_vm5, %v10743_v9  ;;  %10084 = vmatpush3.msk.msra.mxu0 %vm2119_vm6, %v2734_v49 }
 0x345   : >>> { %10085 = vmatprep.mubr.msk.f32.mxu0 %vm10744_vm5, %v10743_v9  ;;  %10088 = vmatprep.subr.mxu1 %v10743_v9 }
 0x346   : >>> { %10081 = vmatmul.mubr.msk.f32.vlgmr.msra.gmra.mxu1 %vm2115_vm7, %v11138_v3  ;;  %10086 = vmatmul.mubr.msk.f32.vlgmr.msra.gmra.mxu0 %vm2115_vm7, %v11143_v4 }
 0x347   : >>> { %10089 = vmatpush3.msk.msra.mxu1 %vm2119_vm6, %v2423_v15  ;;  %10093 = vmatprep.subr.mxu0 %v10743_v9 }
 0x348   : >>> { %10090 = vmatprep.mubr.msk.f32.mxu1 %vm10744_vm5, %v10743_v9  ;;  %10094 = vmatpush3.msk.msra.mxu0 %vm2119_vm6, %v9254_v11 }
 0x349   : >>> { %10095 = vmatprep.mubr.msk.f32.mxu0 %vm10744_vm5, %v10743_v9  ;;  %10098 = vmatprep.subr.mxu1 %v10743_v9 }
 0x34a   : >>> { %10091 = vmatmul.mubr.msk.f32.vlgmr.msra.gmra.mxu1 %vm2115_vm7, %v11108_v43  ;;  %10096 = vmatmul.mubr.msk.f32.vlgmr.msra.gmra.mxu0 %vm2115_vm7, %v11103_v42  ;;  %v11328_v42 = vld [vmem:[%s12348_s8 + $0x20] sm:$0xff] (%p2092_p6)  ;;  %v11333_v43 = vld [vmem:[%s12348_s8 + $0x28] sm:$0xff] (%p2092_p6) }
 0x34b   : >>> { %10099 = vmatpush3.msk.msra.mxu1 %vm2119_vm6, %v2501_v47  ;;  %10103 = vmatprep.subr.mxu0 %v10743_v9 }
 0x34c   : >>> { %10104 = vmatpush3.msk.msra.mxu0 %vm2119_vm6, %v9257_v12  ;;  %10100 = vmatprep.mubr.msk.f32.mxu1 %vm10744_vm5, %v10743_v9 }
 0x34d   : >>> { %10105 = vmatprep.mubr.msk.f32.mxu0 %vm10744_vm5, %v10743_v9  ;;  %10108 = vmatprep.subr.mxu1 %v10743_v9 }
 0x34e   : >>> { %10113 = vmatprep.subr.mxu0 %v10743_v9  ;;  %10101 = vmatmul.mubr.msk.f32.vlgmr.msra.gmra.mxu1 %vm2115_vm7, %v11113_v44  ;;  %v11338_v44 = vld [vmem:[%s12348_s8 + $0x30] sm:$0xff] (%p2092_p6) }
 0x34f   : >>> { %10106 = vmatmul.mubr.msk.f32.vlgmr.msra.gmra.mxu0 %vm2115_vm7, %v11118_v45  ;;  %10109 = vmatpush3.msk.msra.mxu1 %vm2119_vm6, %v2656_v48  ;;  %v11343_v45 = vld [vmem:[%s12348_s8 + $0x38] sm:$0xff] (%p2092_p6) }
 0x350   : >>> { %10114 = vmatpush3.msk.msra.mxu0 %vm2119_vm6, %v2734_v49  ;;  %10110 = vmatprep.mubr.msk.f32.mxu1 %vm10744_vm5, %v10743_v9 }
 0x351   : >>> { %10115 = vmatprep.mubr.msk.f32.mxu0 %vm10744_vm5, %v10743_v9  ;;  %10118 = vmatprep.subr.mxu1 %v10743_v9 }
 0x352   : >>> { %10111 = vmatmul.mubr.msk.f32.vlgmr.msra.gmra.mxu1 %vm2115_vm7, %v11123_v0  ;;  %10123 = vmatprep.subr.mxu0 %v10743_v9  ;;  %v11348_v0 = vld [vmem:[%s12348_s8 + $0x40] sm:$0xff] (%p2092_p6) }
 0x353   : >>> { %10116 = vmatmul.mubr.msk.f32.vlgmr.msra.gmra.mxu0 %vm2115_vm7, %v11128_v1  ;;  %10119 = vmatpush3.msk.msra.mxu1 %vm2119_vm6, %v11181_v13  ;;  %v11353_v1 = vld [vmem:[%s12348_s8 + $0x48] sm:$0xff] (%p2092_p6) }
 0x354   : >>> { %10120 = vmatprep.mubr.msk.f32.mxu1 %vm10744_vm5, %v10743_v9  ;;  %10124 = vmatpush3.msk.msra.mxu0 %vm2119_vm6, %v3315_v50 }
 0x355   : >>> { %10125 = vmatprep.mubr.msk.f32.mxu0 %vm10744_vm5, %v10743_v9  ;;  %10128 = vmatprep.subr.mxu1 %v10743_v9 }
 0x356   : >>> { %10121 = vmatmul.mubr.msk.f32.vlgmr.msra.gmra.mxu1 %vm2115_vm7, %v11133_v2  ;;  %10133 = vmatprep.subr.mxu0 %v10743_v9  ;;  %v11358_v2 = vld [vmem:[%s12348_s8 + $0x50] sm:$0xff] (%p2092_p6) }
 0x357   : >>> { %10126 = vmatmul.mubr.msk.f32.vlgmr.msra.gmra.mxu0 %vm2115_vm7, %v11138_v3  ;;  %10129 = vmatpush3.msk.msra.mxu1 %vm2119_vm6, %v3390_v51  ;;  %v11363_v3 = vld [vmem:[%s12348_s8 + $0x58] sm:$0xff] (%p2092_p6) }
 0x358   : >>> { %10130 = vmatprep.mubr.msk.f32.mxu1 %vm10744_vm5, %v10743_v9  ;;  %10139 = vmatprep.mubr.msk.f32.mxu0 %vm10744_vm5, %v10743_v9 }
 0x359   : >>> { %10134 = vmatpush3.msk.msra.mxu0 %vm3469_vm8, %v11163_v8  ;;  %v11388_v8 = vld [vmem:[%s12348_s8 + $0x80] sm:$0xff] (%p2092_p6) }
 0x35a   : >>> { %10131 = vmatmul.mubr.msk.f32.vlgmr.msra.gmra.mxu1 %vm2115_vm7, %v11143_v4  ;;  %10135 = vmatprep.subr.mxu0 %v10743_v9  ;;  %v11368_v4 = vld [vmem:[%s12348_s8 + $0x60] sm:$0xff] (%p2092_p6) }
 0x35b   : >>> { %10136 = vmatpush3.msra.mxu0 %v11158_v7  ;;  %v11383_v7 = vld [vmem:[%s12348_s8 + $0x78] sm:$0xff] (%p2092_p6) }
 0x35c   : >>> { %10137 = vmatprep.subr.mxu0 %v10743_v9 }
 0x35d   : >>> { %10138 = vmatpush3.msra.mxu0 %v11153_v6  ;;  %v11378_v6 = vld [vmem:[%s12348_s8 + $0x70] sm:$0xff] (%p2092_p6) }
 0x3f6   : >>> { %v2188_v53 = vpop.f32.mrf.mxu1 }
 0x3f8   : >>> { %v10047_v54 = vpop.f32.mrf.mxu1 }
 0x3fa   : >>> { %v2263_v55 = vpop.f32.mrf.mxu1  ;;  %v2340_v56 = vpop.f32.mrf.mxu0 }
 0x3fb   : >>> { %v2264_v61 = vadd.f32 %v2263_v55, %v2188_v53 }
 0x3fc   : >>> { %v10052_v57 = vpop.f32.mrf.mxu1  ;;  %v10057_v58 = vpop.f32.mrf.mxu0 }
 0x3fd   : >>> { %v2344_v18 = vadd.f32 %v2340_v56, %v2264_v61  ;;  %v3551_v58 = vpop.permute.xlu0 %3550 }
 0x3fe   : >>> { %v2417_v59 = vpop.f32.mrf.mxu1  ;;  %v2495_v60 = vpop.f32.mrf.mxu0 }
 0x3ff   : >>> { %v2421_v23 = vadd.f32 %v2417_v59, %v2344_v18  ;;  %v11393_v18 = vld [vmem:[%s12348_s8 + $0x88] sm:$0xff] (%p2092_p6) }
 0x400   : >>> { %v10062_v62 = vpop.f32.mrf.mxu1  ;;  %v10067_v63 = vpop.f32.mrf.mxu0 }
 0x401   : >>> { %v2499_v28 = vadd.f32 %v2495_v60, %v2421_v23  ;;  %v11308_v62 = vld [vmem:[%s12348_s8] sm:$0xff] (%p2092_p6)  ;;  %v11313_v63 = vld [vmem:[%s12348_s8 + $0x8] sm:$0xff] (%p2092_p6) }
 0x402   : >>> { %v2573_v16 = vpop.f32.mrf.mxu1  ;;  %v2650_v17 = vpop.f32.mrf.mxu0 }
 0x403   : >>> { %v2577_v33 = vadd.f32 %v2573_v16, %v2499_v28  ;;  %v11318_v16 = vld [vmem:[%s12348_s8 + $0x10] sm:$0xff] (%p2092_p6) }
 0x404   : >>> { %v10072_v19 = vpop.f32.mrf.mxu1  ;;  %v10077_v20 = vpop.f32.mrf.mxu0 }
 0x405   : >>> { %v2654_v40 = vadd.f32 %v2650_v17, %v2577_v33  ;;  %v11323_v17 = vld [vmem:[%s12348_s8 + $0x18] sm:$0xff] (%p2092_p6)  ;;  %v11398_v19 = vld [vmem:[%s12349_s9] sm:$0xff] (%p2092_p6)  ;;  %v11403_v20 = vld [vmem:[%s12349_s9 + $0x8] sm:$0xff] (%p2092_p6) }
 0x406   : >>> { %v2728_v21 = vpop.f32.mrf.mxu1  ;;  %v2806_v22 = vpop.f32.mrf.mxu0 }
 0x407   : >>> { %v2732_v14 = vadd.f32 %v2728_v21, %v2654_v40  ;;  %v11408_v21 = vld [vmem:[%s12350_s10] sm:$0xff] (%p2092_p6) }
 0x408   : >>> { %v10082_v24 = vpop.f32.mrf.mxu1  ;;  %v10087_v25 = vpop.f32.mrf.mxu0 }
 0x409   : >>> { %v2810_v51 = vadd.f32 %v2806_v22, %v2732_v14  ;;  %v11413_v22 = vld [vmem:[%s12350_s10 + $0x8] sm:$0x1] (%p2092_p6) }
 0x40a   : >>> { %v2882_v26 = vpop.f32.mrf.mxu1  ;;  %v2952_v27 = vpop.f32.mrf.mxu0 }
 0x40b   : >>> { %v2953_v31 = vadd.f32 %v2952_v27, %v2882_v26 }
 0x40c   : >>> { %v10092_v29 = vpop.f32.mrf.mxu1  ;;  %v10097_v30 = vpop.f32.mrf.mxu0 }
 0x40e   : >>> { %v3022_v32 = vpop.f32.mrf.mxu1 }
 0x40f   : >>> { %v3026_v34 = vadd.f32 %v3022_v32, %v2953_v31  ;;  %v3093_v35 = vpop.f32.mrf.mxu0 }
 0x410   : >>> { %v10102_v36 = vpop.f32.mrf.mxu1 }
 0x411   : >>> { %v3097_v37 = vadd.f32 %v3093_v35, %v3026_v34  ;;  %v10107_v38 = vpop.f32.mrf.mxu0 }
 0x412   : >>> { %v3164_v39 = vpop.f32.mrf.mxu1 }
 0x413   : >>> { %v3168_v41 = vadd.f32 %v3164_v39, %v3097_v37  ;;  %v3235_v9 = vpop.f32.mrf.mxu0 }
 0x414   : >>> { %v10112_v10 = vpop.f32.mrf.mxu1 }
 0x415   : >>> { %v3239_v11 = vadd.f32 %v3235_v9, %v3168_v41  ;;  %v10117_v12 = vpop.f32.mrf.mxu0 }
 0x416   : >>> { %v3309_v13 = vpop.f32.mrf.mxu1 }
 0x417   : >>> { %v3313_v15 = vadd.f32 %v3309_v13, %v3239_v11  ;;  %v3384_v46 = vpop.f32.mrf.mxu0 }
 0x418   : >>> { %v10122_v47 = vpop.f32.mrf.mxu1 }
 0x419   : >>> { %v3388_v48 = vadd.f32 %v3384_v46, %v3313_v15  ;;  %v10127_v49 = vpop.f32.mrf.mxu0 }
 0x41a   : >>> { %v3459_v50 = vpop.f32.mrf.mxu1 }
 0x41b   : >>> { %v3463_v52 = vadd.f32 %v3459_v50, %v3388_v48 }
 0x41c   : >>> { %v10132_v53 = vpop.f32.mrf.mxu1 }
 0x41d   : >>> { %v3464_v54 = vmax.f32 %v2810_v51, %v3463_v52 }
 0x41f   : >>> { %10140 = vmatmul.mubr.msk.f32.vlgmr.msra.gmra.mxu0 %vm3465_vm9, %v3464_v54 }
 0x4df   : >>> { %v3539_v55 = vpop.f32.mrf.mxu0 }
 0x4e0   : >>> { %3544 = vrot.lane.b32.xlu1 %v3539_v55, %s10748_s29 }
 0x4e1   : >>> { %v10141_v56 = vpop.f32.mrf.mxu0 }
 0x552   : >>> { %v3545_v57 = vpop.permute.xlu1 %3544 }
 0x553   : >>> { %v3547_v59 = vmax.f32 %v3539_v55, %v3545_v57 }
 0x555   : >>> { %v3553_v60 = vadd.f32 %v3551_v58, %v3547_v59  ;;  %2094 = sbr.rel (!%p2092_p6) target bundleno = 699 (0x2bb), region = 214 }
 0x557   : >>> { %v3554_v61 = vmax.f32 %v3553_v60, 0.0 }
 0x559   : >>> { %3560 = vst.msk [vmem:[%s3558_s0] sm:$0xff] %vm3559_vm10, %v3554_v61 }
 0x55a LB: >>> { %vm3617_vm11 = vcmask 64512   ;;  %s9564_s18 = sshll.u32 %s10735_s26, 4  ;;  %s10749_s24 = smov 127   ;;  %vm5088_vm12 = vcmask 1040384   ;;  %v10751_v35 = vmov 0   ;;  %vm5081_vm13 = vcmask 72704   ;;  %s10735_s26 = sphi %s11415_s26, %s3596_s26  }
 0x55b   : >>> { %10149 = vmatprep.mubr.msk.f32.mxu1 %vm3617_vm11, %v11308_v62  ;;  %10144 = vmatprep.mubr.msk.f32.mxu0 %vm3617_vm11, %v11318_v16  ;;  %s3600_s28 = sadd.s32 %s9564_s18, %s3556_s27  ;;  %s10750_s30 = smov 126  }
 0x55c   : >>> { %s3601_s0 = scalar_lea.vmem [#allocation3], %s3600_s28  ;;  %10689 = vset.pattern.permute.xlu0 %v10751_v35  ;;  %10690 = vset.pattern.permute.xlu1 %v10751_v35  ;;  %s10752_s20 = smov 124  }
 0x55d   : >>> { %s9367_s22 = sshll.u32 %s10723_s16, 6  ;;  %s3596_s26 = sadd.s32 1, %s10735_s26  }
 0x55e   : >>> { %s5193_s1 = sadd.s32 %s9564_s18, %s9367_s22  ;;  %p3593_p7 = scmp.ge.s32.totalorder %s3596_s26, 4  }
 0x55f   : >>> { %s5194_s23 = scalar_lea.vmem [#allocation4], %s5193_s1  ;;  %s577_s16 = sadd.s32 (%p3593_p7), 1, %s10723_s16  }
 0x560   : >>> { %v11429_v23 = vld [vmem:[%s3601_s0 + $0x8] sm:$0xff]  ;;  %v3602_v24 = vld [vmem:[%s3601_s0] sm:$0xff]  ;;  %v9323_v25 = vld [vmem:[%s3601_s0 + $0x10] sm:$0xff]  ;;  %p574_p8 = scmp.ge.s32.totalorder (%p3593_p7), %s577_s16, 2  }
 0x561   : >>> { %3950 = vrot.lane.b32.xlu1 %v11429_v23, %s10749_s24  ;;  %3614 = vrot.lane.b32.xlu0 %v3602_v24, %s10749_s24  ;;  %v9344_v26 = vld [vmem:[%s3601_s0 + $0x18] sm:$0xff] }
 0x562   : >>> { %10147 = vmatprep.subr.mxu1 %v3602_v24 }
 0x563   : >>> { %10148 = vmatpush3.msra.mxu1 %v3602_v24 }
 0x564   : >>> { %10150 = vmatmul.mubr.msk.f32.vlgmr.msra.gmra.mxu1 %vm3617_vm11, %v11313_v63  ;;  %10157 = vmatprep.subr.mxu1 %v11429_v23 }
 0x565   : >>> { %4036 = vrot.lane.b32.xlu1 %v11429_v23, %s10750_s30  ;;  %3780 = vrot.lane.b32.xlu0 %v3602_v24, %s10750_s30 }
 0x566   : >>> { %10158 = vmatpush3.msra.mxu1 %v11429_v23  ;;  %10159 = vmatprep.mubr.msk.f32.mxu1 %vm3617_vm11, %v11338_v44 }
 0x568   : >>> { %10160 = vmatmul.mubr.msk.f32.vlgmr.msra.gmra.mxu1 %vm3617_vm11, %v11343_v45 }
 0x569   : >>> { %4206 = vrot.lane.b32.xlu0 %v9323_v25, %s10749_s24  ;;  %4292 = vrot.lane.b32.xlu1 %v9323_v25, %s10750_s30 }
 0x56a   : >>> { %10169 = vmatprep.mubr.msk.f32.mxu1 %vm3617_vm11, %v11358_v2 }
 0x56d   : >>> { %4919 = vrot.lane.b32.xlu0 %v9344_v26, %s10749_s24  ;;  %4999 = vrot.lane.b32.xlu1 %v9344_v26, %s10750_s30 }
 0x571   : >>> { %5179 = vperm.xlu0 %10689, %v11398_v19   ;;  %5184 = vperm.xlu1 %10690, %v11403_v20  }
 0x5d3   : >>> { %v3951_v27 = vpop.permute.xlu1 %3950  ;;  %v3615_v28 = vpop.permute.xlu0 %3614 }
 0x5d4   : >>> { %10142 = vmatprep.subr.mxu0 %v3615_v28 }
 0x5d5   : >>> { %10143 = vmatpush3.msra.mxu0 %v3615_v28 }
 0x5d6   : >>> { %10145 = vmatmul.mubr.msk.f32.vlgmr.msra.gmra.mxu0 %vm3617_vm11, %v11323_v17 }
 0x5d7   : >>> { %v4037_v29 = vpop.permute.xlu1 %4036  ;;  %v3781_v30 = vpop.permute.xlu0 %3780  ;;  %10154 = vmatprep.mubr.msk.f32.mxu0 %vm3617_vm11, %v11328_v42 }
 0x5d8   : >>> { %10152 = vmatprep.subr.mxu0 %v3781_v30  ;;  %10167 = vmatprep.subr.mxu1 %v4037_v29 }
 0x5d9   : >>> { %10153 = vmatpush3.msra.mxu0 %v3781_v30  ;;  %10168 = vmatpush3.msra.mxu1 %v4037_v29 }
 0x5da   : >>> { %10155 = vmatmul.mubr.msk.f32.vlgmr.msra.gmra.mxu0 %vm3617_vm11, %v11333_v43  ;;  %10162 = vmatprep.subr.mxu0 %v3951_v27 }
 0x5db   : >>> { %10170 = vmatmul.mubr.msk.f32.vlgmr.msra.gmra.mxu1 %vm3617_vm11, %v11363_v3  ;;  %10163 = vmatpush3.msra.mxu0 %v3951_v27  ;;  %v4207_v31 = vpop.permute.xlu0 %4206  ;;  %v4293_v32 = vpop.permute.xlu1 %4292 }
 0x5dc   : >>> { %10177 = vmatprep.subr.mxu1 %v4207_v31  ;;  %10164 = vmatprep.mubr.msk.f32.mxu0 %vm3617_vm11, %v11348_v0 }
 0x5dd   : >>> { %10178 = vmatpush3.msra.mxu1 %v4207_v31  ;;  %10179 = vmatprep.mubr.msk.f32.mxu1 %vm3617_vm11, %v11378_v6 }
 0x5de   : >>> { %10165 = vmatmul.mubr.msk.f32.vlgmr.msra.gmra.mxu0 %vm3617_vm11, %v11353_v1  ;;  %10187 = vmatprep.subr.mxu1 %v3951_v27 }
 0x5df   : >>> { %10180 = vmatmul.mubr.msk.f32.vlgmr.msra.gmra.mxu1 %vm3617_vm11, %v11383_v7  ;;  %10172 = vmatprep.subr.mxu0 %v9323_v25  ;;  %v4920_v33 = vpop.permute.xlu0 %4919  ;;  %v5000_v34 = vpop.permute.xlu1 %4999 }
 0x5e0   : >>> { %10188 = vmatpush3.msra.mxu1 %v3951_v27  ;;  %10173 = vmatpush3.msra.mxu0 %v9323_v25 }
 0x5e1   : >>> { %10197 = vmatprep.subr.mxu1 %v4037_v29  ;;  %10174 = vmatprep.mubr.msk.f32.mxu0 %vm3617_vm11, %v11368_v4 }
 0x5e2   : >>> { %10189 = vmatprep.mubr.msk.f32.mxu1 %vm3617_vm11, %v11318_v16  ;;  %10175 = vmatmul.mubr.msk.f32.vlgmr.msra.gmra.mxu0 %vm3617_vm11, %v11373_v5 }
 0x5e3   : >>> { %10190 = vmatmul.mubr.msk.f32.vlgmr.msra.gmra.mxu1 %vm3617_vm11, %v11323_v17  ;;  %10182 = vmatprep.subr.mxu0 %v4293_v32 }
 0x5e4   : >>> { %10198 = vmatpush3.msra.mxu1 %v4037_v29  ;;  %10183 = vmatpush3.msra.mxu0 %v4293_v32 }
 0x5e5   : >>> { %10207 = vmatprep.subr.mxu1 %v4207_v31  ;;  %10184 = vmatprep.mubr.msk.f32.mxu0 %vm3617_vm11, %v11388_v8 }
 0x5e6   : >>> { %10199 = vmatprep.mubr.msk.f32.mxu1 %vm3617_vm11, %v11328_v42  ;;  %10185 = vmatmul.mubr.msk.f32.vlgmr.msra.gmra.mxu0 %vm3617_vm11, %v11393_v18 }
 0x5e7   : >>> { %10200 = vmatmul.mubr.msk.f32.vlgmr.msra.gmra.mxu1 %vm3617_vm11, %v11333_v43  ;;  %10192 = vmatprep.subr.mxu0 %v11429_v23 }
 0x5e8   : >>> { %10208 = vmatpush3.msra.mxu1 %v4207_v31  ;;  %10193 = vmatpush3.msra.mxu0 %v11429_v23 }
 0x5e9   : >>> { %10194 = vmatprep.mubr.msk.f32.mxu0 %vm3617_vm11, %v11308_v62  ;;  %10202 = vmatprep.subr.mxu0 %v9323_v25 }
 0x5ea   : >>> { %10195 = vmatmul.mubr.msk.f32.vlgmr.msra.gmra.mxu0 %vm3617_vm11, %v11313_v63  ;;  %10209 = vmatprep.mubr.msk.f32.mxu1 %vm3617_vm11, %v11348_v0 }
 0x5eb   : >>> { %10203 = vmatpush3.msra.mxu0 %v9323_v25  ;;  %10204 = vmatprep.mubr.msk.f32.mxu0 %vm3617_vm11, %v11338_v44 }
 0x5ec   : >>> { %10212 = vmatprep.subr.mxu0 %v4293_v32  ;;  %10210 = vmatmul.mubr.msk.f32.vlgmr.msra.gmra.mxu1 %vm3617_vm11, %v11353_v1 }
 0x5ed   : >>> { %10217 = vmatprep.subr.mxu1 %v9344_v26  ;;  %10219 = vmatprep.mubr.msk.f32.mxu1 %vm3617_vm11, %v11368_v4 }
 0x5ee   : >>> { %10205 = vmatmul.mubr.msk.f32.vlgmr.msra.gmra.mxu0 %vm3617_vm11, %v11343_v45  ;;  %10218 = vmatpush3.msra.mxu1 %v9344_v26 }
 0x5ef   : >>> { %10213 = vmatpush3.msra.mxu0 %v4293_v32  ;;  %10214 = vmatprep.mubr.msk.f32.mxu0 %vm3617_vm11, %v11358_v2 }
 0x5f0   : >>> { %10222 = vmatprep.subr.mxu0 %v4920_v33  ;;  %10220 = vmatmul.mubr.msk.f32.vlgmr.msra.gmra.mxu1 %vm3617_vm11, %v11373_v5 }
 0x5f1   : >>> { %10227 = vmatprep.subr.mxu1 %v5000_v34  ;;  %10229 = vmatprep.mubr.msk.f32.mxu1 %vm3617_vm11, %v11388_v8 }
 0x5f2   : >>> { %10215 = vmatmul.mubr.msk.f32.vlgmr.msra.gmra.mxu0 %vm3617_vm11, %v11363_v3  ;;  %10228 = vmatpush3.msra.mxu1 %v5000_v34 }
 0x5f3   : >>> { %10223 = vmatpush3.msra.mxu0 %v4920_v33  ;;  %10224 = vmatprep.mubr.msk.f32.mxu0 %vm3617_vm11, %v11378_v6 }
 0x5f4   : >>> { %10230 = vmatmul.mubr.msk.f32.vlgmr.msra.gmra.mxu1 %vm3617_vm11, %v11393_v18  ;;  %10232 = vmatprep.subr.msk.mxu0 %vm5088_vm12, %v11413_v22 }
 0x5f6   : >>> { %10225 = vmatmul.mubr.msk.f32.vlgmr.msra.gmra.mxu0 %vm3617_vm11, %v11383_v7 }
 0x5f7   : >>> { %10233 = vmatpush3.msk.msra.mxu0 %vm5088_vm12, %v11413_v22 }
 0x5f8   : >>> { %10234 = vmatprep.subr.mxu0 %v11408_v21 }
 0x5f9   : >>> { %10235 = vmatpush3.msra.mxu0 %v11408_v21 }
 0x624   : >>> { %v10151_v36 = vpop.f32.mrf.mxu1 }
 0x626   : >>> { %v3771_v37 = vpop.f32.mrf.mxu1 }
 0x628   : >>> { %v10161_v38 = vpop.f32.mrf.mxu1 }
 0x62a   : >>> { %v3938_v40 = vpop.f32.mrf.mxu1 }
 0x696   : >>> { %v10146_v39 = vpop.f32.mrf.mxu0 }
 0x697   : >>> { %v3777_v48 = vadd.f32 %v10151_v36, %v10146_v39 }
 0x698   : >>> { %v3690_v41 = vpop.f32.mrf.mxu0 }
 0x699   : >>> { %v3772_v46 = vadd.f32 %v3771_v37, %v3690_v41 }
 0x69a   : >>> { %v10156_v9 = vpop.f32.mrf.mxu0 }
 0x69b   : >>> { %v10171_v10 = vpop.f32.mrf.mxu1  ;;  %v3865_v52 = vadd.f32 %v10156_v9, %v3777_v48 }
 0x69c   : >>> { %v3855_v11 = vpop.f32.mrf.mxu0 }
 0x69d   : >>> { %v4111_v12 = vpop.f32.mrf.mxu1  ;;  %v3864_v50 = vadd.f32 %v3855_v11, %v3772_v46  ;;  %v3948_v58 = vadd.f32 %v10161_v38, %v3865_v52 }
 0x69e   : >>> { %v10166_v13 = vpop.f32.mrf.mxu0 }
 0x69f   : >>> { %v10181_v14 = vpop.f32.mrf.mxu1  ;;  %v3947_v56 = vadd.f32 %v3938_v40, %v3864_v50  ;;  %v4035_v25 = vadd.f32 %v10166_v13, %v3948_v58 }
 0x6a0   : >>> { %v4025_v15 = vpop.f32.mrf.mxu0 }
 0x6a1   : >>> { %v4281_v47 = vpop.f32.mrf.mxu1  ;;  %v4034_v23 = vadd.f32 %v4025_v15, %v3947_v56  ;;  %v4121_v35 = vadd.f32 %v10171_v10, %v4035_v25 }
 0x6a2   : >>> { %v10176_v49 = vpop.f32.mrf.mxu0 }
 0x6a3   : >>> { %v10191_v51 = vpop.f32.mrf.mxu1  ;;  %v4120_v32 = vadd.f32 %v4111_v12, %v4034_v23  ;;  %v4204_v13 = vadd.f32 %v10176_v49, %v4121_v35 }
 0x6a4   : >>> { %v4194_v53 = vpop.f32.mrf.mxu0 }
 0x6a5   : >>> { %v4449_v54 = vpop.f32.mrf.mxu1  ;;  %v4203_v9 = vadd.f32 %v4194_v53, %v4120_v32 }
 0x6a6   : >>> { %v10186_v55 = vpop.f32.mrf.mxu0 }
 0x6a7   : >>> { %v10201_v57 = vpop.f32.mrf.mxu1 }
 0x6a8   : >>> { %v4367_v59 = vpop.f32.mrf.mxu0 }
 0x6a9   : >>> { %v4599_v60 = vpop.f32.mrf.mxu1 }
 0x6aa   : >>> { %v10196_v61 = vpop.f32.mrf.mxu0 }
 0x6ab   : >>> { %v4530_v24 = vadd.f32 %v10196_v61, %v10191_v51 }
 0x6ac   : >>> { %v4524_v26 = vpop.f32.mrf.mxu0  ;;  %v10211_v27 = vpop.f32.mrf.mxu1 }
 0x6ad   : >>> { %v4525_v28 = vadd.f32 %v4524_v26, %v4449_v54  ;;  %v4609_v29 = vadd.f32 %v10201_v57, %v4530_v24  ;;  %v4290_v54 = vadd.f32 %v4281_v47, %v4203_v9  ;;  %v4291_v57 = vadd.f32 %v10181_v14, %v4204_v13  ;;  %v5180_v14 = vpop.permute.xlu0 %5179 }
 0x6ae   : >>> { %v10206_v30 = vpop.f32.mrf.mxu0  ;;  %v4753_v31 = vpop.f32.mrf.mxu1 }
 0x6af   : >>> { %v4608_v33 = vadd.f32 %v4599_v60, %v4525_v28  ;;  %v4686_v34 = vadd.f32 %v10206_v30, %v4609_v29  ;;  %v4376_v23 = vadd.f32 %v4367_v59, %v4290_v54  ;;  %v4377_v53 = vadd.f32 %v10186_v55, %v4291_v57 }
 0x6b0   : >>> { %v4676_v36 = vpop.f32.mrf.mxu0  ;;  %v10221_v37 = vpop.f32.mrf.mxu1 }
 0x6b1   : >>> { %v4685_v39 = vadd.f32 %v4676_v36, %v4608_v33  ;;  %v4763_v38 = vadd.f32 %v10211_v27, %v4686_v34  ;;  %v5185_v27 = vpop.permute.xlu1 %5184 }
 0x6b2   : >>> { %v10216_v40 = vpop.f32.mrf.mxu0  ;;  %v4907_v41 = vpop.f32.mrf.mxu1 }
 0x6b3   : >>> { %v4762_v11 = vadd.f32 %v4753_v31, %v4685_v39  ;;  %v4840_v15 = vadd.f32 %v10216_v40, %v4763_v38 }
 0x6b4   : >>> { %v4830_v46 = vpop.f32.mrf.mxu0  ;;  %v10231_v52 = vpop.f32.mrf.mxu1 }
 0x6b5   : >>> { %v4839_v48 = vadd.f32 %v4830_v46, %v4762_v11  ;;  %v4917_v50 = vadd.f32 %v10221_v37, %v4840_v15 }
 0x6b6   : >>> { %v10226_v51 = vpop.f32.mrf.mxu0  ;;  %v5068_v61 = vpop.f32.mrf.mxu1 }
 0x6b7   : >>> { %v4916_v12 = vadd.f32 %v4907_v41, %v4839_v48  ;;  %v4998_v56 = vadd.f32 %v10226_v51, %v4917_v50 }
 0x6b8   : >>> { %v4988_v10 = vpop.f32.mrf.mxu0 }
 0x6b9   : >>> { %v4997_v58 = vadd.f32 %v4988_v10, %v4916_v12  ;;  %v5078_v60 = vadd.f32 %v10231_v52, %v4998_v56 }
 0x6bb   : >>> { %v5077_v24 = vadd.f32 %v5068_v61, %v4997_v58  ;;  %v5080_v25 = vmax.f32 %v4377_v53, %v5078_v60 }
 0x6bd   : >>> { %v5079_v49 = vmax.f32 %v4376_v23, %v5077_v24 }
 0x6bf   : >>> { %10236 = vmatprep.mubr.msk.f32.mxu0 %vm5081_vm13, %v5079_v49 }
 0x6c0   : >>> { %10237 = vmatmul.mubr.msk.f32.vlgmr.msra.gmra.mxu0 %vm5081_vm13, %v5080_v25 }
 0x780   : >>> { %v10238_v26 = vpop.f32.mrf.mxu0 }
 0x781   : >>> { %5171 = vrot.lane.b32.xlu0 %v10238_v26, %s10752_s20 }
 0x782   : >>> { %v5158_v47 = vpop.f32.mrf.mxu0 }
 0x783   : >>> { %5169 = vrot.lane.b32.xlu1 %v5158_v47, %s10752_s20 }
 0x7f3   : >>> { %v5172_v28 = vpop.permute.xlu0 %5171 }
 0x7f4   : >>> { %v5176_v59 = vmax.f32 %v10238_v26, %v5172_v28 }
 0x7f5   : >>> { %v5170_v29 = vpop.permute.xlu1 %5169 }
 0x7f6   : >>> { %v5188_v30 = vadd.f32 %v5185_v27, %v5176_v59  ;;  %v5175_v55 = vmax.f32 %v5158_v47, %v5170_v29 }
 0x7f8   : >>> { %v5190_v31 = vmax.f32 %v5188_v30, 0.0  ;;  %v5187_v32 = vadd.f32 %v5180_v14, %v5175_v55  ;;  %3595 = sbr.rel (!%p3593_p7) target bundleno = 1370 (0x55a), region = 225 }
 0x7fa   : >>> { %5197 = vst.msk [vmem:[%s5194_s23 + $0x8] sm:$0xff] %vm2115_vm7, %v5190_v31  ;;  %v5189_v33 = vmax.f32 %v5187_v32, 0.0 }
 0x7fc   : >>> { %5196 = vst.msk [vmem:[%s5194_s23] sm:$0xff] %vm2115_vm7, %v5189_v33 }
 0x7fd   : > { %576 = sbr.rel (!%p574_p8) target bundleno = 24 (0x18), region = 236  ;;  %s10753_s25 = smov (%p574_p8), 127   ;;  %vm5262_vm14 = vcmask (%p574_p8), 130048   ;;  %v11527_v62 = vld [vmem:[%s12351_s11] sm:$0xff] (%p574_p8)  ;;  %v11534_v63 = vld [vmem:[%s12351_s11 + $0x8] sm:$0xff] (%p574_p8)  ;;  %v11539_v16 = vld [vmem:[%s12351_s11 + $0x10] sm:$0xff] (%p574_p8) }
 0x7fe   : > { %s10754_s29 = smov (%p574_p8), 126   ;;  %10253 = vmatprep.mubr.msk.f32.mxu1 (%p574_p8), %vm5262_vm14, %v11527_v62  ;;  %v11550_v43 = vld [vmem:[%s12351_s11 + $0x20] sm:$0xff] (%p574_p8)  ;;  %v11560_v44 = vld [vmem:[%s12351_s11 + $0x18] sm:$0xff] (%p574_p8)  ;;  %v11583_v0 = vld [vmem:[%s12351_s11 + $0x68] sm:$0xff] (%p574_p8)  ;;  %s10755_s22 = smov (%p574_p8), 1   ;;  %vm8784_vm15 = vcmask (%p574_p8), 261120  }
 0x7ff   : > { %10243 = vmatprep.mubr.msk.f32.mxu0 (%p574_p8), %vm5262_vm14, %v11550_v43  ;;  %v11571_v45 = vld [vmem:[%s12351_s11 + $0x60] sm:$0xff] (%p574_p8)  ;;  %v11592_v1 = vld [vmem:[%s12351_s11 + $0x70] sm:$0xff] (%p574_p8)  ;;  %v11605_v4 = vld [vmem:[%s12351_s11 + $0x78] sm:$0xff] (%p574_p8)  ;;  %vm7040_vm0 = vcmask (%p574_p8), 7168   ;;  %vm8747_vm1 = vcmask (%p574_p8), 15368   ;;  %vm10758_vm2 = vmmov (%p574_p8), 0  }
 0x800   : > { %v11614_v5 = vld [vmem:[%s12351_s11 + $0xa0] sm:$0xff] (%p574_p8)  ;;  %v11687_v9 = vld [vmem:[%s12351_s11 + $0x28] sm:$0xff] (%p574_p8)  ;;  %v11692_v11 = vld [vmem:[%s12351_s11 + $0x30] sm:$0xff] (%p574_p8)  ;;  %s12391_s15 = sld [smem:[#allocation19_spill]] (%p574_p8)  ;;  %vm8990_vm7 = vcmask (%p574_p8), 12288  }
 0x801   : > { %v11701_v46 = vld [vmem:[%s12351_s11 + $0x38] sm:$0xff] (%p574_p8)  ;;  %v11706_v48 = vld [vmem:[%s12351_s11 + $0x40] sm:$0xff] (%p574_p8)  ;;  %v11719_v52 = vld [vmem:[%s12351_s11 + $0x48] sm:$0xff] (%p574_p8) }
 0x802   : > { %v11726_v54 = vld [vmem:[%s12351_s11 + $0xa8] sm:$0xff]  ;;  %v11737_v56 = vld [vmem:[%s12351_s11 + $0x50] sm:$0xff]  ;;  %v11746_v10 = vld [vmem:[%s12351_s11 + $0x58] sm:$0xff] }
 0x803   : > { %v5247_v34 = vld [vmem:[#allocation4 + $0x8] sm:$0xff]  ;;  %v5246_v35 = vld [vmem:[#allocation4] sm:$0xff]  ;;  %v11541_v17 = vld [vmem:[#allocation4 + $0x18] sm:$0xff] }
 0x804   : > { %5258 = vrot.lane.b32.xlu0 %v5247_v34, %s10753_s25  ;;  %5459 = vrot.lane.b32.xlu1 %v5247_v34, %s10754_s29  ;;  %v11543_v42 = vld [vmem:[#allocation4 + $0x10] sm:$0xff]  ;;  %v11594_v2 = vld [vmem:[#allocation4 + $0x28] sm:$0xff]  ;;  %v11596_v3 = vld [vmem:[#allocation4 + $0x20] sm:$0xff] }
 0x805   : > { %10249 = vmatprep.subr.mxu1 %v5247_v34  ;;  %v11624_v6 = vld [vmem:[#allocation4 + $0x38] sm:$0xff]  ;;  %v11626_v7 = vld [vmem:[#allocation4 + $0x30] sm:$0xff]  ;;  %v11636_v8 = vld [vmem:[#allocation4 + $0x48] sm:$0xff] }
 0x806   : > { %10250 = vmatpush3.msra.mxu1 %v5247_v34  ;;  %v11638_v18 = vld [vmem:[#allocation4 + $0x40] sm:$0xff]  ;;  %v11648_v19 = vld [vmem:[#allocation4 + $0x58] sm:$0xff]  ;;  %v11650_v20 = vld [vmem:[#allocation4 + $0x50] sm:$0xff] }
 0x807   : > { %10251 = vmatprep.subr.mxu1 %v5246_v35  ;;  %v11660_v21 = vld [vmem:[#allocation4 + $0x68] sm:$0xff]  ;;  %v11662_v22 = vld [vmem:[#allocation4 + $0x60] sm:$0xff]  ;;  %v11672_v36 = vld [vmem:[#allocation4 + $0x78] sm:$0xff] }
 0x808   : > { %5256 = vrot.lane.b32.xlu0 %v5246_v35, %s10753_s25  ;;  %5457 = vrot.lane.b32.xlu1 %v5246_v35, %s10754_s29  ;;  %v11674_v37 = vld [vmem:[#allocation4 + $0x70] sm:$0xff]  ;;  %v11752_v58 = vld [vmem:[%s12351_s11 + $0xb0] sm:$0xff]  ;;  %v11760_v60 = vld [vmem:[%s12351_s11 + $0xb8] sm:$0xff] }
 0x809   : > { %10252 = vmatpush3.msra.mxu1 %v5246_v35  ;;  %v11768_v61 = vld [vmem:[%s12351_s11 + $0x80] sm:$0xff]  ;;  %v11776_v23 = vld [vmem:[%s12351_s11 + $0x88] sm:$0xff]  ;;  %v11788_v53 = vld [vmem:[%s12351_s11 + $0x90] sm:$0xff] }
 0x80a   : > { %10254 = vmatmul.mubr.msk.f32.vlgmr.msra.gmra.mxu1 %vm5262_vm14, %v11534_v63  ;;  %10269 = vmatprep.subr.mxu1 %v11541_v17  ;;  %v11781_v24 = vld [vmem:[%s12351_s11 + $0xe0] sm:$0xff]  ;;  %v11796_v49 = vld [vmem:[%s12351_s11 + $0xe8] sm:$0xff]  ;;  %v11808_v25 = vld [vmem:[%s12351_s11 + $0x98] sm:$0xff] }
 0x80b   : > { %10256 = vmatprep.mubr.msk.f32.mxu1 %vm5262_vm14, %v11539_v16  ;;  %10270 = vmatpush3.msra.mxu1 %v11541_v17  ;;  %v11816_v26 = vld [vmem:[%s12351_s11 + $0xf0] sm:$0xff]  ;;  %v11822_v47 = vld [vmem:[%s12351_s11 + $0xf8] sm:$0xff]  ;;  %v11831_v27 = vld [vmem:[%s12351_s11 + $0xc0] sm:$0xff] }
 0x80c   : > { %5669 = vrot.lane.b32.xlu0 %v11541_v17, %s10753_s25  ;;  %5667 = vrot.lane.b32.xlu1 %v11543_v42, %s10753_s25  ;;  %v11838_v28 = vld [vmem:[%s12351_s11 + $0xc8] sm:$0xff]  ;;  %v11846_v59 = vld [vmem:[%s12351_s11 + $0xd0] sm:$0xff] }
 0x80d   : > { %10271 = vmatprep.subr.mxu1 %v11543_v42  ;;  %v11863_v30 = vld [vmem:[%s12351_s11 + $0xd8] sm:$0xff]  ;;  %v11876_v55 = vld [vmem:[%s12351_s11 + $0x100] sm:$0xff]  ;;  %v11884_v31 = vld [vmem:[%s12351_s11 + $0x108] sm:$0xff] }
 0x80e   : > { %10257 = vmatmul.mubr.msk.f32.gmra.mxu1 %vm5262_vm14, %v11560_v44  ;;  %v11892_v32 = vld [vmem:[%s12351_s11 + $0x110] sm:$0xff]  ;;  %v11907_v33 = vld [vmem:[%s12351_s11 + $0x118] sm:$0xff] }
 0x80f   : > { %10272 = vmatpush3.msra.mxu1 %v11543_v42  ;;  %10273 = vmatprep.mubr.msk.f32.mxu1 %vm5262_vm14, %v11571_v45 }
 0x810   : > { %5776 = vrot.lane.b32.xlu0 %v11541_v17, %s10754_s29  ;;  %5774 = vrot.lane.b32.xlu1 %v11543_v42, %s10754_s29 }
 0x812   : > { %10274 = vmatmul.mubr.msk.f32.vlgmr.msra.gmra.mxu1 %vm5262_vm14, %v11583_v0 }
 0x813   : > { %10276 = vmatprep.mubr.msk.f32.mxu1 %vm5262_vm14, %v11592_v1 }
 0x814   : > { %5986 = vrot.lane.b32.xlu0 %v11594_v2, %s10753_s25  ;;  %5984 = vrot.lane.b32.xlu1 %v11596_v3, %s10753_s25 }
 0x816   : > { %10277 = vmatmul.mubr.msk.f32.gmra.mxu1 %vm5262_vm14, %v11605_v4 }
 0x817   : > { %10293 = vmatprep.mubr.msk.f32.mxu1 %vm5262_vm14, %v11614_v5 }
 0x818   : > { %6093 = vrot.lane.b32.xlu0 %v11594_v2, %s10754_s29  ;;  %6091 = vrot.lane.b32.xlu1 %v11596_v3, %s10754_s29 }
 0x81c   : > { %6820 = vrot.lane.b32.xlu0 %v11624_v6, %s10753_s25  ;;  %6818 = vrot.lane.b32.xlu1 %v11626_v7, %s10753_s25 }
 0x820   : > { %6915 = vrot.lane.b32.xlu0 %v11624_v6, %s10754_s29  ;;  %6913 = vrot.lane.b32.xlu1 %v11626_v7, %s10754_s29 }
 0x824   : > { %7058 = vrot.lane.b32.xlu0 %v11636_v8, %s10753_s25  ;;  %7056 = vrot.lane.b32.xlu1 %v11638_v18, %s10753_s25 }
 0x828   : > { %7234 = vrot.lane.b32.xlu0 %v11636_v8, %s10754_s29  ;;  %7232 = vrot.lane.b32.xlu1 %v11638_v18, %s10754_s29 }
 0x82c   : > { %7420 = vrot.lane.b32.xlu0 %v11648_v19, %s10753_s25  ;;  %7418 = vrot.lane.b32.xlu1 %v11650_v20, %s10753_s25 }
 0x830   : > { %7515 = vrot.lane.b32.xlu0 %v11648_v19, %s10754_s29  ;;  %7513 = vrot.lane.b32.xlu1 %v11650_v20, %s10754_s29 }
 0x834   : > { %7701 = vrot.lane.b32.xlu0 %v11660_v21, %s10753_s25  ;;  %7699 = vrot.lane.b32.xlu1 %v11662_v22, %s10753_s25 }
 0x838   : > { %7796 = vrot.lane.b32.xlu0 %v11660_v21, %s10754_s29  ;;  %7794 = vrot.lane.b32.xlu1 %v11662_v22, %s10754_s29 }
 0x83c   : > { %8511 = vrot.lane.b32.xlu0 %v11672_v36, %s10753_s25  ;;  %8509 = vrot.lane.b32.xlu1 %v11674_v37, %s10753_s25 }
 0x840   : > { %8606 = vrot.lane.b32.xlu0 %v11672_v36, %s10754_s29  ;;  %8604 = vrot.lane.b32.xlu1 %v11674_v37, %s10754_s29 }
 0x876   : > { %v5259_v39 = vpop.permute.xlu0 %5258  ;;  %v5460_v38 = vpop.permute.xlu1 %5459 }
 0x877   : > { %10239 = vmatprep.subr.mxu0 %v5259_v39 }
 0x878   : > { %10240 = vmatpush3.msra.mxu0 %v5259_v39 }
 0x87a   : > { %v5257_v40 = vpop.permute.xlu0 %5256  ;;  %v5458_v41 = vpop.permute.xlu1 %5457 }
 0x87b   : > { %10241 = vmatprep.subr.mxu0 %v5257_v40 }
 0x87c   : > { %10242 = vmatpush3.msra.mxu0 %v5257_v40 }
 0x87d   : > { %10244 = vmatmul.mubr.msk.f32.vlgmr.msra.gmra.mxu0 %vm5262_vm14, %v11687_v9  ;;  %10259 = vmatprep.subr.mxu0 %v5460_v38 }
 0x87e   : > { %v5670_v15 = vpop.permute.xlu0 %5669  ;;  %10260 = vmatpush3.msra.mxu0 %v5460_v38  ;;  %v5668_v13 = vpop.permute.xlu1 %5667  ;;  %10246 = vmatprep.mubr.msk.f32.mxu0 %vm5262_vm14, %v11692_v11 }
 0x87f   : > { %10261 = vmatprep.subr.mxu0 %v5458_v41 }
 0x880   : > { %10262 = vmatpush3.msra.mxu0 %v5458_v41 }
 0x881   : > { %10247 = vmatmul.mubr.msk.f32.gmra.mxu0 %vm5262_vm14, %v11701_v46  ;;  %10279 = vmatprep.subr.mxu0 %v5670_v15 }
 0x882   : > { %v11710_v50 = vpop.permute.xlu0 %5776  ;;  %v11712_v51 = vpop.permute.xlu1 %5774  ;;  %10263 = vmatprep.mubr.msk.f32.mxu0 %vm5262_vm14, %v11706_v48 }
 0x883   : > { %10289 = vmatprep.subr.mxu1 %v11710_v50 }
 0x884   : > { %10290 = vmatpush3.msra.mxu1 %v11710_v50 }
 0x885   : > { %10264 = vmatmul.mubr.msk.f32.vlgmr.msra.gmra.mxu0 %vm5262_vm14, %v11719_v52  ;;  %10291 = vmatprep.subr.mxu1 %v11712_v51 }
 0x886   : > { %10280 = vmatpush3.msra.mxu0 %v5670_v15  ;;  %v11731_v12 = vpop.permute.xlu0 %5986  ;;  %10292 = vmatpush3.msra.mxu1 %v11712_v51  ;;  %v11741_v57 = vpop.permute.xlu1 %5984 }
 0x887   : > { %10281 = vmatprep.subr.mxu0 %v5668_v13  ;;  %10294 = vmatmul.mubr.msk.f32.vlgmr.msra.gmra.mxu1 %vm5262_vm14, %v11726_v54 }
 0x888   : > { %10282 = vmatpush3.msra.mxu0 %v5668_v13  ;;  %10309 = vmatprep.subr.mxu1 %v11731_v12 }
 0x889   : > { %10266 = vmatprep.mubr.msk.f32.mxu0 %vm5262_vm14, %v11737_v56  ;;  %10310 = vmatpush3.msra.mxu1 %v11731_v12 }
 0x88a   : > { %10267 = vmatmul.mubr.msk.f32.gmra.mxu0 %vm5262_vm14, %v11746_v10  ;;  %10311 = vmatprep.subr.mxu1 %v11741_v57  ;;  %v11826_v14 = vpop.permute.xlu0 %6093  ;;  %v11851_v29 = vpop.permute.xlu1 %6091 }
 0x88b   : > { %10296 = vmatprep.mubr.msk.f32.mxu1 %vm5262_vm14, %v11752_v58  ;;  %10312 = vmatpush3.msra.mxu1 %v11741_v57 }
 0x88c   : > { %10297 = vmatmul.mubr.msk.f32.gmra.mxu1 %vm5262_vm14, %v11760_v60  ;;  %10329 = vmatprep.subr.mxu1 %v5670_v15 }
 0x88d   : > { %10283 = vmatprep.mubr.msk.f32.mxu0 %vm5262_vm14, %v11768_v61  ;;  %10299 = vmatprep.subr.mxu0 %v11594_v2 }
 0x88e   : > { %10284 = vmatmul.mubr.msk.f32.vlgmr.msra.gmra.mxu0 %vm5262_vm14, %v11776_v23  ;;  %10313 = vmatprep.mubr.msk.f32.mxu1 %vm5262_vm14, %v11781_v24  ;;  %v6821_v34 = vpop.permute.xlu0 %6820  ;;  %v6819_v35 = vpop.permute.xlu1 %6818 }
 0x88f   : > { %10300 = vmatpush3.msra.mxu0 %v11594_v2  ;;  %10286 = vmatprep.mubr.msk.f32.mxu0 %vm5262_vm14, %v11788_v53 }
 0x890   : > { %10314 = vmatmul.mubr.msk.f32.vlgmr.msra.gmra.mxu1 %vm5262_vm14, %v11796_v49  ;;  %10301 = vmatprep.subr.mxu0 %v11596_v3 }
 0x891   : > { %10330 = vmatpush3.msra.mxu1 %v5670_v15  ;;  %10302 = vmatpush3.msra.mxu0 %v11596_v3 }
 0x892   : > { %10331 = vmatprep.subr.mxu1 %v5668_v13  ;;  %10287 = vmatmul.mubr.msk.f32.gmra.mxu0 %vm5262_vm14, %v11808_v25 }
 0x893   : > { %10332 = vmatpush3.msra.mxu1 %v5668_v13  ;;  %10316 = vmatprep.mubr.msk.f32.mxu1 %vm5262_vm14, %v11816_v26 }
 0x894   : > { %10349 = vmatprep.subr.mxu1 %v11710_v50  ;;  %10317 = vmatmul.mubr.msk.f32.gmra.mxu1 %vm5262_vm14, %v11822_v47 }
 0x895   : > { %10303 = vmatprep.mubr.msk.f32.mxu0 %vm5262_vm14, %v11831_v27  ;;  %10319 = vmatprep.subr.mxu0 %v11826_v14 }
 0x896   : > { %10304 = vmatmul.mubr.msk.f32.vlgmr.msra.gmra.mxu0 %vm5262_vm14, %v11838_v28  ;;  %10333 = vmatprep.mubr.msk.f32.mxu1 %vm5262_vm14, %v11550_v43 }
 0x897   : > { %10320 = vmatpush3.msra.mxu0 %v11826_v14  ;;  %10306 = vmatprep.mubr.msk.f32.mxu0 %vm5262_vm14, %v11846_v59 }
 0x898   : > { %10334 = vmatmul.mubr.msk.f32.vlgmr.msra.gmra.mxu1 %vm5262_vm14, %v11687_v9  ;;  %10321 = vmatprep.subr.mxu0 %v11851_v29 }
 0x899   : > { %10350 = vmatpush3.msra.mxu1 %v11710_v50  ;;  %10322 = vmatpush3.msra.mxu0 %v11851_v29 }
 0x89a   : > { %10351 = vmatprep.subr.mxu1 %v11712_v51  ;;  %10307 = vmatmul.mubr.msk.f32.gmra.mxu0 %vm5262_vm14, %v11863_v30 }
 0x89b   : > { %10352 = vmatpush3.msra.mxu1 %v11712_v51  ;;  %10336 = vmatprep.mubr.msk.f32.mxu1 %vm5262_vm14, %v11692_v11 }
 0x89c   : > { %10369 = vmatprep.subr.mxu1 %v11731_v12  ;;  %10337 = vmatmul.mubr.msk.f32.gmra.mxu1 %vm5262_vm14, %v11701_v46 }
 0x89d   : > { %10323 = vmatprep.mubr.msk.f32.mxu0 %vm5262_vm14, %v11876_v55  ;;  %10339 = vmatprep.subr.mxu0 %v11541_v17 }
 0x89e   : > { %10324 = vmatmul.mubr.msk.f32.vlgmr.msra.gmra.mxu0 %vm5262_vm14, %v11884_v31  ;;  %10353 = vmatprep.mubr.msk.f32.mxu1 %vm5262_vm14, %v11706_v48 }
 0x89f   : > { %10340 = vmatpush3.msra.mxu0 %v11541_v17  ;;  %10326 = vmatprep.mubr.msk.f32.mxu0 %vm5262_vm14, %v11892_v32  ;;  %v6916_v17 = vpop.permute.xlu0 %6915 }
 0x8a0   : > { %10354 = vmatmul.mubr.msk.f32.vlgmr.msra.gmra.mxu1 %vm5262_vm14, %v11719_v52  ;;  %10341 = vmatprep.subr.mxu0 %v11543_v42 }
 0x8a1   : > { %10370 = vmatpush3.msra.mxu1 %v11731_v12  ;;  %10342 = vmatpush3.msra.mxu0 %v11543_v42  ;;  %v6914_v42 = vpop.permute.xlu1 %6913 }
 0x8a2   : > { %10371 = vmatprep.subr.mxu1 %v11741_v57  ;;  %10327 = vmatmul.mubr.msk.f32.gmra.mxu0 %vm5262_vm14, %v11907_v33 }
 0x8a3   : > { %10372 = vmatpush3.msra.mxu1 %v11741_v57  ;;  %10356 = vmatprep.mubr.msk.f32.mxu1 %vm5262_vm14, %v11737_v56 }
 0x8a4   : > { %10357 = vmatmul.mubr.msk.f32.gmra.mxu1 %vm5262_vm14, %v11746_v10  ;;  %10343 = vmatprep.mubr.msk.f32.mxu0 %vm5262_vm14, %v11527_v62 }
 0x8a5   : > { %10359 = vmatprep.subr.mxu0 %v11594_v2  ;;  %10373 = vmatprep.mubr.msk.f32.mxu1 %vm5262_vm14, %v11768_v61 }
 0x8a6   : > { %10344 = vmatmul.mubr.msk.f32.vlgmr.msra.gmra.mxu0 %vm5262_vm14, %v11534_v63  ;;  %10389 = vmatprep.subr.mxu1 %v11624_v6 }
 0x8a7   : > { %10360 = vmatpush3.msra.mxu0 %v11594_v2  ;;  %10346 = vmatprep.mubr.msk.f32.mxu0 %vm5262_vm14, %v11539_v16  ;;  %v7059_v2 = vpop.permute.xlu0 %7058 }
 0x8a8   : > { %10361 = vmatprep.subr.mxu0 %v11596_v3  ;;  %10374 = vmatmul.mubr.msk.f32.vlgmr.msra.gmra.mxu1 %vm5262_vm14, %v11776_v23 }
 0x8a9   : > { %10362 = vmatpush3.msra.mxu0 %v11596_v3  ;;  %10376 = vmatprep.mubr.msk.f32.mxu1 %vm5262_vm14, %v11788_v53  ;;  %v7057_v3 = vpop.permute.xlu1 %7056 }
 0x8aa   : > { %10379 = vmatprep.subr.mxu0 %v11826_v14  ;;  %10347 = vmatmul.mubr.msk.f32.gmra.mxu0 %vm5262_vm14, %v11560_v44 }
 0x8ab   : > { %10363 = vmatprep.mubr.msk.f32.mxu0 %vm5262_vm14, %v11571_v45  ;;  %10390 = vmatpush3.msra.mxu1 %v11624_v6  ;;  %v7235_v6 = vpop.permute.xlu0 %7234 }
 0x8ac   : > { %10377 = vmatmul.mubr.msk.f32.gmra.mxu1 %vm5262_vm14, %v11808_v25  ;;  %10391 = vmatprep.subr.mxu1 %v11626_v7 }
 0x8ad   : > { %10392 = vmatpush3.msra.mxu1 %v11626_v7  ;;  %10393 = vmatprep.mubr.msk.f32.mxu1 %vm5262_vm14, %v11831_v27  ;;  %v7233_v7 = vpop.permute.xlu1 %7232 }
 0x8ae   : > { %10364 = vmatmul.mubr.msk.f32.vlgmr.msra.gmra.mxu0 %vm5262_vm14, %v11583_v0  ;;  %10409 = vmatprep.subr.mxu1 %v6916_v17 }
 0x8af   : > { %10380 = vmatpush3.msra.mxu0 %v11826_v14  ;;  %10366 = vmatprep.mubr.msk.f32.mxu0 %vm5262_vm14, %v11592_v1  ;;  %v7421_v39 = vpop.permute.xlu0 %7420 }
 0x8b0   : > { %10381 = vmatprep.subr.mxu0 %v11851_v29  ;;  %10394 = vmatmul.mubr.msk.f32.vlgmr.msra.gmra.mxu1 %vm5262_vm14, %v11838_v28 }
 0x8b1   : > { %10382 = vmatpush3.msra.mxu0 %v11851_v29  ;;  %10396 = vmatprep.mubr.msk.f32.mxu1 %vm5262_vm14, %v11846_v59 }
 0x8b2   : > { %10367 = vmatmul.mubr.msk.f32.gmra.mxu0 %vm5262_vm14, %v11605_v4  ;;  %10399 = vmatprep.subr.mxu0 %v6821_v34 }
 0x8b3   : > { %10383 = vmatprep.mubr.msk.f32.mxu0 %vm5262_vm14, %v11614_v5  ;;  %10410 = vmatpush3.msra.mxu1 %v6916_v17 }
 0x8b4   : > { %10397 = vmatmul.mubr.msk.f32.gmra.mxu1 %vm5262_vm14, %v11863_v30  ;;  %10411 = vmatprep.subr.mxu1 %v6914_v42 }
 0x8b5   : > { %10412 = vmatpush3.msra.mxu1 %v6914_v42  ;;  %10413 = vmatprep.mubr.msk.f32.mxu1 %vm5262_vm14, %v11876_v55 }
 0x8b6   : > { %10384 = vmatmul.mubr.msk.f32.vlgmr.msra.gmra.mxu0 %vm5262_vm14, %v11726_v54  ;;  %10429 = vmatprep.subr.mxu1 %v11636_v8 }
 0x8b7   : > { %10400 = vmatpush3.msra.mxu0 %v6821_v34  ;;  %10386 = vmatprep.mubr.msk.f32.mxu0 %vm5262_vm14, %v11752_v58 }
 0x8b8   : > { %10401 = vmatprep.subr.mxu0 %v6819_v35  ;;  %10414 = vmatmul.mubr.msk.f32.vlgmr.msra.gmra.mxu1 %vm5262_vm14, %v11884_v31 }
 0x8b9   : > { %10402 = vmatpush3.msra.mxu0 %v6819_v35  ;;  %10416 = vmatprep.mubr.msk.f32.mxu1 %vm5262_vm14, %v11892_v32 }
 0x8ba   : > { %10387 = vmatmul.mubr.msk.f32.gmra.mxu0 %vm5262_vm14, %v11760_v60  ;;  %10419 = vmatprep.subr.mxu0 %v7059_v2 }
 0x8bb   : > { %10403 = vmatprep.mubr.msk.f32.mxu0 %vm5262_vm14, %v11781_v24  ;;  %10430 = vmatpush3.msra.mxu1 %v11636_v8  ;;  %v7419_v8 = vpop.permute.xlu1 %7418 }
 0x8bc   : > { %10417 = vmatmul.mubr.msk.f32.gmra.mxu1 %vm5262_vm14, %v11907_v33  ;;  %10431 = vmatprep.subr.mxu1 %v11638_v18 }
 0x8bd   : > { %10432 = vmatpush3.msra.mxu1 %v11638_v18  ;;  %10433 = vmatprep.mubr.msk.f32.mxu1 %vm5262_vm14, %v11527_v62  ;;  %v12004_v18 = vpop.permute.xlu0 %7515 }
 0x8be   : > { %10404 = vmatmul.mubr.msk.f32.vlgmr.msra.gmra.mxu0 %vm5262_vm14, %v11796_v49  ;;  %10449 = vmatprep.subr.mxu1 %v11648_v19 }
 0x8bf   : > { %10420 = vmatpush3.msra.mxu0 %v7059_v2  ;;  %10406 = vmatprep.mubr.msk.f32.mxu0 %vm5262_vm14, %v11816_v26  ;;  %v7514_v38 = vpop.permute.xlu1 %7513 }
 0x8c0   : > { %10434 = vmatmul.mubr.msk.f32.vlgmr.msra.gmra.mxu1 %vm5262_vm14, %v11534_v63  ;;  %10421 = vmatprep.subr.mxu0 %v7057_v3 }
 0x8c1   : > { %10422 = vmatpush3.msra.mxu0 %v7057_v3  ;;  %10436 = vmatprep.mubr.msk.f32.mxu1 %vm5262_vm14, %v11539_v16  ;;  %v7702_v40 = vpop.permute.xlu0 %7701 }
 0x8c2   : > { %10407 = vmatmul.mubr.msk.f32.gmra.mxu0 %vm5262_vm14, %v11822_v47  ;;  %10439 = vmatprep.subr.mxu0 %v7235_v6 }
 0x8c3   : > { %10423 = vmatprep.mubr.msk.f32.mxu0 %vm5262_vm14, %v11550_v43  ;;  %10450 = vmatpush3.msra.mxu1 %v11648_v19  ;;  %v7700_v41 = vpop.permute.xlu1 %7699 }
 0x8c4   : > { %10437 = vmatmul.mubr.msk.f32.gmra.mxu1 %vm5262_vm14, %v11560_v44  ;;  %10451 = vmatprep.subr.mxu1 %v11650_v20 }
 0x8c5   : > { %10452 = vmatpush3.msra.mxu1 %v11650_v20  ;;  %10453 = vmatprep.mubr.msk.f32.mxu1 %vm5262_vm14, %v11571_v45  ;;  %v7797_v15 = vpop.permute.xlu0 %7796 }
 0x8c6   : > { %10424 = vmatmul.mubr.msk.f32.vlgmr.msra.gmra.mxu0 %vm5262_vm14, %v11687_v9  ;;  %10469 = vmatprep.subr.mxu1 %v12004_v18 }
 0x8c7   : > { %10440 = vmatpush3.msra.mxu0 %v7235_v6  ;;  %10426 = vmatprep.mubr.msk.f32.mxu0 %vm5262_vm14, %v11692_v11  ;;  %v7795_v13 = vpop.permute.xlu1 %7794 }
 0x8c8   : > { %10454 = vmatmul.mubr.msk.f32.vlgmr.msra.gmra.mxu1 %vm5262_vm14, %v11583_v0  ;;  %10441 = vmatprep.subr.mxu0 %v7233_v7 }
 0x8c9   : > { %10442 = vmatpush3.msra.mxu0 %v7233_v7  ;;  %10456 = vmatprep.mubr.msk.f32.mxu1 %vm5262_vm14, %v11592_v1 }
 0x8ca   : > { %10427 = vmatmul.mubr.msk.f32.gmra.mxu0 %vm5262_vm14, %v11701_v46  ;;  %10459 = vmatprep.subr.mxu0 %v7421_v39 }
 0x8cb   : > { %10470 = vmatpush3.msra.mxu1 %v12004_v18  ;;  %10443 = vmatprep.mubr.msk.f32.mxu0 %vm5262_vm14, %v11706_v48 }
 0x8cc   : > { %10457 = vmatmul.mubr.msk.f32.gmra.mxu1 %vm5262_vm14, %v11605_v4  ;;  %10471 = vmatprep.subr.mxu1 %v7514_v38 }
 0x8cd   : > { %10472 = vmatpush3.msra.mxu1 %v7514_v38  ;;  %10473 = vmatprep.mubr.msk.f32.mxu1 %vm5262_vm14, %v11614_v5 }
 0x8ce   : > { %10444 = vmatmul.mubr.msk.f32.vlgmr.msra.gmra.mxu0 %vm5262_vm14, %v11719_v52  ;;  %10489 = vmatprep.subr.mxu1 %v7702_v40 }
 0x8cf   : > { %10460 = vmatpush3.msra.mxu0 %v7421_v39  ;;  %10446 = vmatprep.mubr.msk.f32.mxu0 %vm5262_vm14, %v11737_v56 }
 0x8d0   : > { %10461 = vmatprep.subr.mxu0 %v7419_v8  ;;  %10474 = vmatmul.mubr.msk.f32.vlgmr.msra.gmra.mxu1 %vm5262_vm14, %v11726_v54 }
 0x8d1   : > { %10462 = vmatpush3.msra.mxu0 %v7419_v8  ;;  %10490 = vmatpush3.msra.mxu1 %v7702_v40 }
 0x8d2   : > { %10491 = vmatprep.subr.mxu1 %v7700_v41  ;;  %10447 = vmatmul.mubr.msk.f32.gmra.mxu0 %vm5262_vm14, %v11746_v10 }
 0x8d3   : > { %10492 = vmatpush3.msra.mxu1 %v7700_v41  ;;  %10476 = vmatprep.mubr.msk.f32.mxu1 %vm5262_vm14, %v11752_v58 }
 0x8d4   : > { %10509 = vmatprep.subr.mxu1 %v7421_v39  ;;  %10477 = vmatmul.mubr.msk.f32.gmra.mxu1 %vm5262_vm14, %v11760_v60 }
 0x8d5   : > { %10463 = vmatprep.mubr.msk.f32.mxu0 %vm5262_vm14, %v11768_v61  ;;  %10479 = vmatprep.subr.mxu0 %v11660_v21 }
 0x8d6   : > { %10464 = vmatmul.mubr.msk.f32.vlgmr.msra.gmra.mxu0 %vm5262_vm14, %v11776_v23  ;;  %10493 = vmatprep.mubr.msk.f32.mxu1 %vm5262_vm14, %v11781_v24 }
 0x8d7   : > { %10480 = vmatpush3.msra.mxu0 %v11660_v21  ;;  %10466 = vmatprep.mubr.msk.f32.mxu0 %vm5262_vm14, %v11788_v53 }
 0x8d8   : > { %10494 = vmatmul.mubr.msk.f32.vlgmr.msra.gmra.mxu1 %vm5262_vm14, %v11796_v49  ;;  %10481 = vmatprep.subr.mxu0 %v11662_v22 }
 0x8d9   : > { %10510 = vmatpush3.msra.mxu1 %v7421_v39  ;;  %10482 = vmatpush3.msra.mxu0 %v11662_v22 }
 0x8da   : > { %10511 = vmatprep.subr.mxu1 %v7419_v8  ;;  %10467 = vmatmul.mubr.msk.f32.gmra.mxu0 %vm5262_vm14, %v11808_v25 }
 0x8db   : > { %10512 = vmatpush3.msra.mxu1 %v7419_v8  ;;  %10496 = vmatprep.mubr.msk.f32.mxu1 %vm5262_vm14, %v11816_v26 }
 0x8dc   : > { %10529 = vmatprep.subr.mxu1 %v12004_v18  ;;  %10497 = vmatmul.mubr.msk.f32.gmra.mxu1 %vm5262_vm14, %v11822_v47 }
 0x8dd   : > { %10483 = vmatprep.mubr.msk.f32.mxu0 %vm5262_vm14, %v11831_v27  ;;  %10499 = vmatprep.subr.mxu0 %v7797_v15 }
 0x8de   : > { %10484 = vmatmul.mubr.msk.f32.vlgmr.msra.gmra.mxu0 %vm5262_vm14, %v11838_v28  ;;  %10513 = vmatprep.mubr.msk.f32.mxu1 %vm5262_vm14, %v11550_v43 }
 0x8df   : > { %10500 = vmatpush3.msra.mxu0 %v7797_v15  ;;  %10486 = vmatprep.mubr.msk.f32.mxu0 %vm5262_vm14, %v11846_v59 }
 0x8e0   : > { %10514 = vmatmul.mubr.msk.f32.vlgmr.msra.gmra.mxu1 %vm5262_vm14, %v11687_v9  ;;  %10501 = vmatprep.subr.mxu0 %v7795_v13 }
 0x8e1   : > { %10530 = vmatpush3.msra.mxu1 %v12004_v18  ;;  %10502 = vmatpush3.msra.mxu0 %v7795_v13 }
 0x8e2   : > { %10531 = vmatprep.subr.mxu1 %v7514_v38  ;;  %10487 = vmatmul.mubr.msk.f32.gmra.mxu0 %vm5262_vm14, %v11863_v30 }
 0x8e3   : > { %10532 = vmatpush3.msra.mxu1 %v7514_v38  ;;  %10516 = vmatprep.mubr.msk.f32.mxu1 %vm5262_vm14, %v11692_v11 }
 0x8e4   : > { %10549 = vmatprep.subr.mxu1 %v7702_v40  ;;  %10517 = vmatmul.mubr.msk.f32.gmra.mxu1 %vm5262_vm14, %v11701_v46 }
 0x8e5   : > { %10503 = vmatprep.mubr.msk.f32.mxu0 %vm5262_vm14, %v11876_v55  ;;  %10519 = vmatprep.subr.mxu0 %v11648_v19 }
 0x8e6   : > { %10504 = vmatmul.mubr.msk.f32.vlgmr.msra.gmra.mxu0 %vm5262_vm14, %v11884_v31  ;;  %10533 = vmatprep.mubr.msk.f32.mxu1 %vm5262_vm14, %v11706_v48 }
 0x8e7   : > { %10520 = vmatpush3.msra.mxu0 %v11648_v19  ;;  %10506 = vmatprep.mubr.msk.f32.mxu0 %vm5262_vm14, %v11892_v32 }
 0x8e8   : > { %10534 = vmatmul.mubr.msk.f32.vlgmr.msra.gmra.mxu1 %vm5262_vm14, %v11719_v52  ;;  %10521 = vmatprep.subr.mxu0 %v11650_v20 }
 0x8e9   : > { %10550 = vmatpush3.msra.mxu1 %v7702_v40  ;;  %10522 = vmatpush3.msra.mxu0 %v11650_v20 }
 0x8ea   : > { %10551 = vmatprep.subr.mxu1 %v7700_v41  ;;  %10507 = vmatmul.mubr.msk.f32.gmra.mxu0 %vm5262_vm14, %v11907_v33 }
 0x8eb   : > { %10552 = vmatpush3.msra.mxu1 %v7700_v41  ;;  %10523 = vmatprep.mubr.msk.f32.mxu0 %vm5262_vm14, %v11527_v62  ;;  %v8512_v62 = vpop.permute.xlu0 %8511 }
 0x8ec   : > { %10539 = vmatprep.subr.mxu0 %v11660_v21  ;;  %10536 = vmatprep.mubr.msk.f32.mxu1 %vm5262_vm14, %v11737_v56 }
 0x8ed   : > { %10537 = vmatmul.mubr.msk.f32.gmra.mxu1 %vm5262_vm14, %v11746_v10  ;;  %10569 = vmatprep.subr.mxu1 %v11672_v36 }
 0x8ee   : > { %10524 = vmatmul.mubr.msk.f32.vlgmr.msra.gmra.mxu0 %vm5262_vm14, %v11534_v63  ;;  %10553 = vmatprep.mubr.msk.f32.mxu1 %vm5262_vm14, %v11768_v61  ;;  %v8510_v63 = vpop.permute.xlu1 %8509 }
 0x8ef   : > { %10540 = vmatpush3.msra.mxu0 %v11660_v21  ;;  %10526 = vmatprep.mubr.msk.f32.mxu0 %vm5262_vm14, %v11539_v16  ;;  %v8607_v16 = vpop.permute.xlu0 %8606 }
 0x8f0   : > { %10541 = vmatprep.subr.mxu0 %v11662_v22 }
 0x8f1   : > { %10542 = vmatpush3.msra.mxu0 %v11662_v22  ;;  %10554 = vmatmul.mubr.msk.f32.vlgmr.msra.gmra.mxu1 %vm5262_vm14, %v11776_v23 }
 0x8f2   : > { %10559 = vmatprep.subr.mxu0 %v7797_v15  ;;  %10527 = vmatmul.mubr.msk.f32.gmra.mxu0 %vm5262_vm14, %v11560_v44  ;;  %v8605_v43 = vpop.permute.xlu1 %8604  ;;  %v10255_v44 = vpop.f32.mrf.mxu1 }
 0x8f3   : > { %10543 = vmatprep.mubr.msk.f32.mxu0 %vm5262_vm14, %v11571_v45  ;;  %10556 = vmatprep.mubr.msk.f32.mxu1 %vm5262_vm14, %v11788_v53 }
 0x8f4   : > { %10570 = vmatpush3.msra.mxu1 %v11672_v36  ;;  %v5438_v45 = vpop.f32.mrf.mxu1 }
 0x8f5   : > { %10557 = vmatmul.mubr.msk.f32.gmra.mxu1 %vm5262_vm14, %v11808_v25  ;;  %10571 = vmatprep.subr.mxu1 %v11674_v37 }
 0x8f6   : > { %10544 = vmatmul.mubr.msk.f32.vlgmr.msra.gmra.mxu0 %vm5262_vm14, %v11583_v0  ;;  %10572 = vmatpush3.msra.mxu1 %v11674_v37  ;;  %v10258_v0 = vpop.f32.mrf.mxu1 }
 0x8f7   : > { %10560 = vmatpush3.msra.mxu0 %v7797_v15  ;;  %10546 = vmatprep.mubr.msk.f32.mxu0 %vm5262_vm14, %v11592_v1 }
 0x8f8   : > { %10561 = vmatprep.subr.mxu0 %v7795_v13  ;;  %10573 = vmatprep.mubr.msk.f32.mxu1 %vm5262_vm14, %v11831_v27  ;;  %v5448_v1 = vpop.f32.mrf.mxu1 }
 0x8f9   : > { %10562 = vmatpush3.msra.mxu0 %v7795_v13  ;;  %10574 = vmatmul.mubr.msk.f32.vlgmr.msra.gmra.mxu1 %vm5262_vm14, %v11838_v28 }
 0x8fa   : > { %10547 = vmatmul.mubr.msk.f32.gmra.mxu0 %vm5262_vm14, %v11605_v4  ;;  %10579 = vmatprep.subr.mxu0 %v8512_v62  ;;  %v10275_v4 = vpop.f32.mrf.mxu1 }
 0x8fb   : > { %10563 = vmatprep.mubr.msk.f32.mxu0 %vm5262_vm14, %v11614_v5  ;;  %10589 = vmatprep.subr.mxu1 %v8607_v16 }
 0x8fc   : > { %10590 = vmatpush3.msra.mxu1 %v8607_v16  ;;  %10576 = vmatprep.mubr.msk.f32.mxu1 %vm5262_vm14, %v11846_v59  ;;  %v5642_v5 = vpop.f32.mrf.mxu1 }
 0x8fd   : > { %10577 = vmatmul.mubr.msk.f32.gmra.mxu1 %vm5262_vm14, %v11863_v30  ;;  %10591 = vmatprep.subr.mxu1 %v8605_v43 }
 0x8fe   : > { %10564 = vmatmul.mubr.msk.f32.vlgmr.msra.gmra.mxu0 %vm5262_vm14, %v11726_v54  ;;  %10592 = vmatpush3.msra.mxu1 %v8605_v43  ;;  %v10278_v21 = vpop.f32.mrf.mxu1 }
 0x8ff   : > { %10580 = vmatpush3.msra.mxu0 %v8512_v62  ;;  %10566 = vmatprep.mubr.msk.f32.mxu0 %vm5262_vm14, %v11752_v58 }
 0x900   : > { %10581 = vmatprep.subr.mxu0 %v8510_v63  ;;  %10593 = vmatprep.mubr.msk.f32.mxu1 %vm5262_vm14, %v11876_v55  ;;  %v5652_v37 = vpop.f32.mrf.mxu1 }
 0x901   : > { %10582 = vmatpush3.msra.mxu0 %v8510_v63  ;;  %10594 = vmatmul.mubr.msk.f32.vlgmr.msra.gmra.mxu1 %vm5262_vm14, %v11884_v31 }
 0x902   : > { %10567 = vmatmul.mubr.msk.f32.gmra.mxu0 %vm5262_vm14, %v11760_v60  ;;  %10596 = vmatprep.mubr.msk.f32.mxu1 %vm5262_vm14, %v11892_v32 }
 0x903   : > { %10583 = vmatprep.mubr.msk.f32.mxu0 %vm5262_vm14, %v11781_v24 }
 0x905   : > { %10597 = vmatmul.mubr.msk.f32.gmra.mxu1 %vm5262_vm14, %v11907_v33 }
 0x906   : > { %10584 = vmatmul.mubr.msk.f32.vlgmr.msra.gmra.mxu0 %vm5262_vm14, %v11796_v49 }
 0x907   : > { %10586 = vmatprep.mubr.msk.f32.mxu0 %vm5262_vm14, %v11816_v26 }
 0x90a   : > { %10587 = vmatmul.mubr.msk.f32.gmra.mxu0 %vm5262_vm14, %v11822_v47 }
 0x93d   : > { %v10245_v19 = vpop.f32.mrf.mxu0 }
 0x93e   : > { %v5444_v9 = vadd.f32 %v10255_v44, %v10245_v19 }
 0x93f   : > { %v5341_v20 = vpop.f32.mrf.mxu0 }
 0x940   : > { %v5439_v46 = vadd.f32 %v5438_v45, %v5341_v20 }
 0x941   : > { %v10248_v22 = vpop.f32.mrf.mxu0 }
 0x942   : > { %v5454_v54 = vadd.f32 %v10258_v0, %v10248_v22 }
 0x943   : > { %v5351_v36 = vpop.f32.mrf.mxu0 }
 0x944   : > { %v5449_v57 = vadd.f32 %v5448_v1, %v5351_v36 }
 0x945   : > { %v10265_v11 = vpop.f32.mrf.mxu0 }
 0x946   : > { %v5561_v48 = vadd.f32 %v10265_v11, %v5444_v9 }
 0x947   : > { %v5541_v50 = vpop.f32.mrf.mxu0  ;;  %v10295_v51 = vpop.f32.mrf.mxu1 }
 0x948   : > { %v5560_v52 = vadd.f32 %v5541_v50, %v5439_v46  ;;  %v5662_v61 = vadd.f32 %v10275_v4, %v5561_v48 }
 0x949   : > { %v5858_v12 = vpop.f32.mrf.mxu1 }
 0x94a   : > { %v10268_v56 = vpop.f32.mrf.mxu0  ;;  %v5661_v49 = vadd.f32 %v5642_v5, %v5560_v52 }
 0x94b   : > { %v5563_v10 = vadd.f32 %v10268_v56, %v5454_v54 }
 0x94c   : > { %v5551_v58 = vpop.f32.mrf.mxu0  ;;  %v10298_v60 = vpop.f32.mrf.mxu1 }
 0x94d   : > { %v5562_v23 = vadd.f32 %v5551_v58, %v5449_v57  ;;  %v5664_v27 = vadd.f32 %v10278_v21, %v5563_v10 }
 0x94e   : > { %v10285_v24 = vpop.f32.mrf.mxu0  ;;  %v5868_v53 = vpop.f32.mrf.mxu1 }
 0x94f   : > { %v5663_v25 = vadd.f32 %v5652_v37, %v5562_v23  ;;  %v5771_v26 = vadd.f32 %v10285_v24, %v5662_v61 }
 0x950   : > { %v5751_v47 = vpop.f32.mrf.mxu0  ;;  %v10315_v14 = vpop.f32.mrf.mxu1 }
 0x951   : > { %v5878_v28 = vadd.f32 %v10295_v51, %v5771_v26  ;;  %v5770_v59 = vadd.f32 %v5751_v47, %v5661_v49 }
 0x952   : > { %v10288_v29 = vpop.f32.mrf.mxu0  ;;  %v6068_v30 = vpop.f32.mrf.mxu1 }
 0x953   : > { %v5877_v55 = vadd.f32 %v5858_v12, %v5770_v59  ;;  %v5773_v31 = vadd.f32 %v10288_v29, %v5664_v27 }
 0x954   : > { %v5761_v32 = vpop.f32.mrf.mxu0  ;;  %v10318_v33 = vpop.f32.mrf.mxu1 }
 0x955   : > { %v5880_v34 = vadd.f32 %v10298_v60, %v5773_v31  ;;  %v5772_v35 = vadd.f32 %v5761_v32, %v5663_v25 }
 0x956   : > { %v10305_v17 = vpop.f32.mrf.mxu0  ;;  %v6078_v42 = vpop.f32.mrf.mxu1 }
 0x957   : > { %v5879_v2 = vadd.f32 %v5868_v53, %v5772_v35  ;;  %v5979_v3 = vadd.f32 %v10305_v17, %v5878_v28 }
 0x958   : > { %v5959_v6 = vpop.f32.mrf.mxu0  ;;  %v10335_v7 = vpop.f32.mrf.mxu1 }
 0x959   : > { %v6088_v39 = vadd.f32 %v10315_v14, %v5979_v3  ;;  %v5978_v8 = vadd.f32 %v5959_v6, %v5877_v55 }
 0x95a   : > { %v10308_v18 = vpop.f32.mrf.mxu0  ;;  %v6267_v38 = vpop.f32.mrf.mxu1 }
 0x95b   : > { %v6087_v40 = vadd.f32 %v6068_v30, %v5978_v8  ;;  %v5981_v41 = vadd.f32 %v10308_v18, %v5880_v34 }
 0x95c   : > { %v5969_v15 = vpop.f32.mrf.mxu0  ;;  %v10338_v13 = vpop.f32.mrf.mxu1 }
 0x95d   : > { %v6090_v62 = vadd.f32 %v10318_v33, %v5981_v41  ;;  %v5980_v63 = vadd.f32 %v5969_v15, %v5879_v2 }
 0x95e   : > { %v10325_v16 = vpop.f32.mrf.mxu0  ;;  %v6277_v43 = vpop.f32.mrf.mxu1 }
 0x95f   : > { %v6089_v44 = vadd.f32 %v6078_v42, %v5980_v63  ;;  %v12164_v45 = vadd.f32 %v10325_v16, %v6088_v39 }
 0x960   : > { %v6175_v0 = vpop.f32.mrf.mxu0  ;;  %v10355_v1 = vpop.f32.mrf.mxu1 }
 0x961   : > { %v12166_v4 = vadd.f32 %v6175_v0, %v6087_v40 }
 0x962   : > { %v10328_v5 = vpop.f32.mrf.mxu0  ;;  %v6437_v19 = vpop.f32.mrf.mxu1 }
 0x963   : > { %v12168_v20 = vadd.f32 %v10328_v5, %v6090_v62 }
 0x964   : > { %v6185_v21 = vpop.f32.mrf.mxu0  ;;  %v10358_v22 = vpop.f32.mrf.mxu1 }
 0x965   : > { %v12170_v36 = vadd.f32 %v6185_v21, %v6089_v44 }
 0x966   : > { %v10345_v37 = vpop.f32.mrf.mxu0  ;;  %v6447_v9 = vpop.f32.mrf.mxu1 }
 0x967   : > { %v6358_v11 = vadd.f32 %v10345_v37, %v10335_v7 }
 0x968   : > { %v6352_v46 = vpop.f32.mrf.mxu0  ;;  %v10375_v48 = vpop.f32.mrf.mxu1 }
 0x969   : > { %v6457_v50 = vadd.f32 %v10355_v1, %v6358_v11  ;;  %v6353_v51 = vadd.f32 %v6352_v46, %v6267_v38 }
 0x96a   : > { %v10348_v52 = vpop.f32.mrf.mxu0  ;;  %v6615_v54 = vpop.f32.mrf.mxu1 }
 0x96b   : > { %v6456_v12 = vadd.f32 %v6437_v19, %v6353_v51  ;;  %v6368_v56 = vadd.f32 %v10348_v52, %v10338_v13 }
 0x96c   : > { %v6362_v57 = vpop.f32.mrf.mxu0  ;;  %v10378_v10 = vpop.f32.mrf.mxu1 }
 0x96d   : > { %v6459_v58 = vadd.f32 %v10358_v22, %v6368_v56  ;;  %v6363_v60 = vadd.f32 %v6362_v57, %v6277_v43 }
 0x96e   : > { %v10365_v61 = vpop.f32.mrf.mxu0  ;;  %v6625_v23 = vpop.f32.mrf.mxu1 }
 0x96f   : > { %v6458_v24 = vadd.f32 %v6447_v9, %v6363_v60  ;;  %v6546_v53 = vadd.f32 %v10365_v61, %v6457_v50 }
 0x970   : > { %v6526_v49 = vpop.f32.mrf.mxu0  ;;  %v10395_v25 = vpop.f32.mrf.mxu1 }
 0x971   : > { %v6635_v26 = vadd.f32 %v10375_v48, %v6546_v53  ;;  %v6545_v47 = vadd.f32 %v6526_v49, %v6456_v12 }
 0x972   : > { %v10368_v14 = vpop.f32.mrf.mxu0  ;;  %v6793_v27 = vpop.f32.mrf.mxu1 }
 0x973   : > { %v6634_v28 = vadd.f32 %v6615_v54, %v6545_v47  ;;  %v6548_v59 = vadd.f32 %v10368_v14, %v6459_v58 }
 0x974   : > { %v6536_v29 = vpop.f32.mrf.mxu0  ;;  %v10398_v30 = vpop.f32.mrf.mxu1 }
 0x975   : > { %v6637_v55 = vadd.f32 %v10378_v10, %v6548_v59  ;;  %v6547_v31 = vadd.f32 %v6536_v29, %v6458_v24 }
 0x976   : > { %v10385_v32 = vpop.f32.mrf.mxu0  ;;  %v6803_v33 = vpop.f32.mrf.mxu1 }
 0x977   : > { %v6636_v34 = vadd.f32 %v6625_v23, %v6547_v31  ;;  %v6724_v35 = vadd.f32 %v10385_v32, %v6635_v26 }
 0x978   : > { %v6704_v17 = vpop.f32.mrf.mxu0  ;;  %v10415_v42 = vpop.f32.mrf.mxu1 }
 0x979   : > { %v6813_v2 = vadd.f32 %v10395_v25, %v6724_v35  ;;  %v6723_v3 = vadd.f32 %v6704_v17, %v6634_v28 }
 0x97a   : > { %v10388_v6 = vpop.f32.mrf.mxu0  ;;  %v6985_v7 = vpop.f32.mrf.mxu1 }
 0x97b   : > { %v6812_v39 = vadd.f32 %v6793_v27, %v6723_v3  ;;  %v6726_v8 = vadd.f32 %v10388_v6, %v6637_v55 }
 0x97c   : > { %v6714_v18 = vpop.f32.mrf.mxu0  ;;  %v10418_v38 = vpop.f32.mrf.mxu1 }
 0x97d   : > { %v6815_v40 = vadd.f32 %v10398_v30, %v6726_v8  ;;  %v6725_v41 = vadd.f32 %v6714_v18, %v6636_v34 }
 0x97e   : > { %v10405_v15 = vpop.f32.mrf.mxu0  ;;  %v6995_v13 = vpop.f32.mrf.mxu1 }
 0x97f   : > { %v6814_v62 = vadd.f32 %v6803_v33, %v6725_v41  ;;  %v6910_v63 = vadd.f32 %v10405_v15, %v6813_v2 }
 0x980   : > { %v6890_v16 = vpop.f32.mrf.mxu0  ;;  %v12172_v43 = vpop.f32.mrf.mxu1 }
 0x981   : > { %v7005_v44 = vadd.f32 %v10415_v42, %v6910_v63  ;;  %v6909_v0 = vadd.f32 %v6890_v16, %v6812_v39 }
 0x982   : > { %v10408_v1 = vpop.f32.mrf.mxu0  ;;  %v12174_v5 = vpop.f32.mrf.mxu1 }
 0x983   : > { %v12177_v19 = vmax.f32 %v12164_v45, %v7005_v44  ;;  %v7004_v21 = vadd.f32 %v6985_v7, %v6909_v0  ;;  %v6912_v22 = vadd.f32 %v10408_v1, %v6815_v40 }
 0x984   : > { %v6900_v37 = vpop.f32.mrf.mxu0  ;;  %v10438_v9 = vpop.f32.mrf.mxu1 }
 0x985   : > { %12370 = vst [vmem:[#allocation7_spill] sm:$0xff] %v12177_v19  ;;  %v12180_v11 = vmax.f32 %v12166_v4, %v7004_v21  ;;  %v7007_v46 = vadd.f32 %v10418_v38, %v6912_v22  ;;  %v6911_v48 = vadd.f32 %v6900_v37, %v6814_v62 }
 0x986   : > { %v12182_v50 = vpop.f32.mrf.mxu0  ;;  %v7223_v51 = vpop.f32.mrf.mxu1 }
 0x987   : > { %12371 = vst [vmem:[#allocation8_spill] sm:$0xff] %v12180_v11  ;;  %v12185_v52 = vmax.f32 %v12168_v20, %v7007_v46  ;;  %v7006_v54 = vadd.f32 %v6995_v13, %v6911_v48 }
 0x988   : > { %v12187_v12 = vpop.f32.mrf.mxu0  ;;  %v12189_v45 = vpop.f32.mrf.mxu1 }
 0x989   : > { %12372 = vst [vmem:[#allocation9_spill] sm:$0xff] %v12185_v52  ;;  %v12192_v56 = vmax.f32 %v12170_v36, %v7006_v54 }
 0x98a   : > { %v10428_v57 = vpop.f32.mrf.mxu0  ;;  %v12194_v10 = vpop.f32.mrf.mxu1 }
 0x98b   : > { %12373 = vst [vmem:[#allocation10_spill] sm:$0xff] %v12192_v56  ;;  %v7229_v1 = vadd.f32 %v10438_v9, %v10428_v57  ;;  %v7214_v9 = vadd.f32 %v12174_v5, %v12187_v12 }
 0x98c   : > { %v7138_v4 = vpop.f32.mrf.mxu0  ;;  %v10458_v58 = vpop.f32.mrf.mxu1 }
 0x98d   : > { %v7224_v48 = vadd.f32 %v7223_v51, %v7138_v4 }
 0x98e   : > { %v10445_v60 = vpop.f32.mrf.mxu0  ;;  %v12196_v61 = vpop.f32.mrf.mxu1 }
 0x990   : > { %v12198_v23 = vpop.f32.mrf.mxu0  ;;  %v12200_v20 = vpop.f32.mrf.mxu1 }
 0x992   : > { %v10448_v24 = vpop.f32.mrf.mxu0  ;;  %v12202_v53 = vpop.f32.mrf.mxu1 }
 0x993   : > { %v7326_v54 = vadd.f32 %v10448_v24, %v7229_v1 }
 0x994   : > { %v7314_v49 = vpop.f32.mrf.mxu0  ;;  %v12204_v25 = vpop.f32.mrf.mxu1 }
 0x996   : > { %v12206_v36 = vpop.f32.mrf.mxu0  ;;  %v12208_v26 = vpop.f32.mrf.mxu1 }
 0x998   : > { %v12210_v47 = vpop.f32.mrf.mxu0  ;;  %v12212_v14 = vpop.f32.mrf.mxu1 }
 0x999   : > { %12374 = vst [vmem:[#allocation11_spill] sm:$0xff] %v12212_v14 }
 0x99a   : > { %v10468_v27 = vpop.f32.mrf.mxu0  ;;  %v12214_v28 = vpop.f32.mrf.mxu1 }
 0x99b   : > { %12375 = vst [vmem:[#allocation12_spill] sm:$0xff] %v12214_v28 }
 0x99c   : > { %v7500_v59 = vpop.f32.mrf.mxu0  ;;  %v12216_v29 = vpop.f32.mrf.mxu1 }
 0x99e   : > { %v12218_v30 = vpop.f32.mrf.mxu0  ;;  %v12220_v55 = vpop.f32.mrf.mxu1 }
 0x9a0   : > { %v12222_v31 = vpop.f32.mrf.mxu0  ;;  %v10515_v32 = vpop.f32.mrf.mxu1 }
 0x9a2   : > { %v12224_v33 = vpop.f32.mrf.mxu0  ;;  %v7958_v34 = vpop.f32.mrf.mxu1 }
 0x9a4   : > { %v12226_v35 = vpop.f32.mrf.mxu0  ;;  %v10518_v17 = vpop.f32.mrf.mxu1 }
 0x9a6   : > { %v12228_v42 = vpop.f32.mrf.mxu0  ;;  %v7968_v2 = vpop.f32.mrf.mxu1 }
 0x9a7   : > { %12376 = vst [vmem:[#allocation13_spill] sm:$0xff] %v12228_v42  ;;  %v7325_v42 = vadd.f32 %v7314_v49, %v7224_v48 }
 0x9a8   : > { %v12230_v3 = vpop.f32.mrf.mxu0  ;;  %v10535_v6 = vpop.f32.mrf.mxu1 }
 0x9a9   : > { %12377 = vst [vmem:[#allocation14_spill] sm:$0xff] %v12230_v3  ;;  %v7219_v3 = vadd.f32 %v12172_v43, %v12182_v50  ;;  %v7414_v43 = vadd.f32 %v12196_v61, %v7325_v42 }
 0x9aa   : > { %v12232_v7 = vpop.f32.mrf.mxu0  ;;  %v8128_v39 = vpop.f32.mrf.mxu1 }
 0x9ab   : > { %12378 = vst [vmem:[#allocation15_spill] sm:$0xff] %v12232_v7  ;;  %v7324_v57 = vadd.f32 %v10445_v60, %v7219_v3 }
 0x9ac   : > { %v12234_v8 = vpop.f32.mrf.mxu0 }
 0x9ad   : > { %12379 = vst [vmem:[#allocation16_spill] sm:$0xff] %v12234_v8  ;;  %v10538_v18 = vpop.f32.mrf.mxu1 }
 0x9ae   : > { %v10525_v38 = vpop.f32.mrf.mxu0 }
 0x9af   : > { %v8138_v40 = vpop.f32.mrf.mxu1  ;;  %v8049_v22 = vadd.f32 %v10525_v38, %v10515_v32  ;;  %v7415_v32 = vadd.f32 %v10458_v58, %v7326_v54  ;;  %v7323_v38 = vadd.f32 %v12198_v23, %v7214_v9  ;;  %v12381_v54 = vld [vmem:[#allocation11_spill] sm:$0xff] }
 0x9b0   : > { %v8043_v41 = vpop.f32.mrf.mxu0 }
 0x9b1   : > { %v10555_v15 = vpop.f32.mrf.mxu1  ;;  %v8044_v19 = vadd.f32 %v8043_v41, %v7958_v34  ;;  %v8148_v8 = vadd.f32 %v10535_v6, %v8049_v22  ;;  %v7512_v50 = vadd.f32 %v10468_v27, %v7415_v32  ;;  %v7413_v41 = vadd.f32 %v12189_v45, %v7324_v57 }
 0x9b2   : > { %v10528_v13 = vpop.f32.mrf.mxu0 }
 0x9b3   : > { %v8306_v62 = vpop.f32.mrf.mxu1  ;;  %v8059_v37 = vadd.f32 %v10528_v13, %v10518_v17  ;;  %v8147_v51 = vadd.f32 %v8128_v39, %v8044_v19  ;;  %v7511_v13 = vadd.f32 %v7500_v59, %v7414_v43  ;;  %v7412_v19 = vadd.f32 %v12194_v10, %v7323_v38 }
 0x9b4   : > { %v8053_v63 = vpop.f32.mrf.mxu0 }
 0x9b5   : > { %v10558_v16 = vpop.f32.mrf.mxu1  ;;  %v8054_v56 = vadd.f32 %v8053_v63, %v7968_v2  ;;  %v8150_v14 = vadd.f32 %v10538_v18, %v8059_v37  ;;  %v7606_v45 = vadd.f32 %v12208_v26, %v7511_v13  ;;  %v12380_v37 = vld [vmem:[#allocation15_spill] sm:$0xff]  ;;  %v5245_v13 = vld [vmem:[%s12352_s12 + $0x18] sm:$0xff] }
 0x9b6   : > { %v10545_v44 = vpop.f32.mrf.mxu0 }
 0x9b7   : > { %v8316_v0 = vpop.f32.mrf.mxu1  ;;  %v8149_v4 = vadd.f32 %v8138_v40, %v8054_v56  ;;  %v8237_v24 = vadd.f32 %v10545_v44, %v8148_v8  ;;  %v7607_v56 = vadd.f32 %v12204_v25, %v7512_v50 }
 0x9b8   : > { %v8217_v21 = vpop.f32.mrf.mxu0 }
 0x9b9   : > { %v10575_v46 = vpop.f32.mrf.mxu1  ;;  %v8236_v6 = vadd.f32 %v8217_v21, %v8147_v51  ;;  %v8326_v58 = vadd.f32 %v10555_v15, %v8237_v24  ;;  %v7696_v59 = vadd.f32 %v12224_v33, %v7607_v56  ;;  %v12383_v51 = vld [vmem:[#allocation12_spill] sm:$0xff]  ;;  %v12384_v24 = vld [vmem:[#allocation13_spill] sm:$0xff]  ;;  %v5243_v56 = vld [vmem:[%s12352_s12 + $0x8] sm:$0xff] }
 0x9ba   : > { %v10548_v11 = vpop.f32.mrf.mxu0 }
 0x9bb   : > { %v8484_v52 = vpop.f32.mrf.mxu1  ;;  %v8239_v34 = vadd.f32 %v10548_v11, %v8150_v14  ;;  %v7510_v11 = vadd.f32 %v12206_v36, %v7413_v41  ;;  %v8325_v14 = vadd.f32 %v8306_v62, %v8236_v6  ;;  %v7695_v36 = vadd.f32 %v12226_v35, %v7606_v45  ;;  %v12387_v6 = vld [vmem:[#allocation10_spill] sm:$0xff]  ;;  %v12389_v41 = vld [vmem:[#allocation8_spill] sm:$0xff] }
 0x9bc   : > { %v8227_v28 = vpop.f32.mrf.mxu0 }
 0x9bd   : > { %v10578_v7 = vpop.f32.mrf.mxu1  ;;  %v8238_v18 = vadd.f32 %v8227_v28, %v8149_v4  ;;  %v8328_v60 = vadd.f32 %v10558_v16, %v8239_v34  ;;  %v7509_v28 = vadd.f32 %v12210_v47, %v7412_v19  ;;  %v7605_v10 = vadd.f32 %v12200_v20, %v7510_v11 }
 0x9be   : > { %v10565_v17 = vpop.f32.mrf.mxu0  ;;  %v7793_v47 = vadd.f32 %v12216_v29, %v7696_v59  ;;  %v7792_v20 = vadd.f32 %v12220_v55, %v7695_v36  ;;  %v12382_v29 = vld [vmem:[#allocation16_spill] sm:$0xff]  ;;  %v8756_v36 = vld [vmem:[%s12353_s13] sm:$0xff] }
 0x9bf   : > { %v8494_v2 = vpop.f32.mrf.mxu1  ;;  %v8327_v61 = vadd.f32 %v8316_v0, %v8238_v18  ;;  %v8415_v27 = vadd.f32 %v10565_v17, %v8326_v58  ;;  %v7604_v63 = vadd.f32 %v12202_v53, %v7509_v28  ;;  %v7694_v16 = vadd.f32 %v12218_v30, %v7605_v10  ;;  %v12388_v18 = vld [vmem:[#allocation7_spill] sm:$0xff]  ;;  %10607 = vmatprep.mubr.msk.f32.mxu0 %vm8784_vm15, %v8756_v36 }
 0x9c0   : > { %v8395_v49 = vpop.f32.mrf.mxu0  ;;  %v7887_v57 = vadd.f32 %v12382_v29, %v7792_v20  ;;  %v5244_v58 = vld [vmem:[%s12352_s12 + $0x10] sm:$0xff] }
 0x9c1   : > { %v10595_v12 = vpop.f32.mrf.mxu1  ;;  %v8414_v8 = vadd.f32 %v8395_v49, %v8325_v14  ;;  %v8504_v15 = vadd.f32 %v10575_v46, %v8415_v27  ;;  %v7693_v22 = vadd.f32 %v12222_v31, %v7604_v63  ;;  %v7888_v46 = vadd.f32 %v12380_v37, %v7793_v47  ;;  %v12386_v49 = vld [vmem:[#allocation9_spill] sm:$0xff] }
 0x9c2   : > { %v10568_v5 = vpop.f32.mrf.mxu0  ;;  %v7791_v30 = vadd.f32 %v12381_v54, %v7694_v16 }
 0x9c3   : > { %v8417_v42 = vadd.f32 %v10568_v5, %v8328_v60  ;;  %v8676_v39 = vpop.f32.mrf.mxu1  ;;  %v8503_v33 = vadd.f32 %v8484_v52, %v8414_v8  ;;  %v7790_v4 = vadd.f32 %v12383_v51, %v7693_v22 }
 0x9c4   : > { %v8405_v23 = vpop.f32.mrf.mxu0  ;;  %v7886_v31 = vadd.f32 %v12384_v24, %v7791_v30  ;;  %v8758_v24 = vld [vmem:[%s12353_s13 + $0x10] sm:$0xff] }
 0x9c5   : > { %v8416_v40 = vadd.f32 %v8405_v23, %v8327_v61  ;;  %v8506_v62 = vadd.f32 %v10578_v7, %v8417_v42  ;;  %v10598_v44 = vpop.f32.mrf.mxu1  ;;  %v5242_v42 = vld [vmem:[%s12352_s12] sm:$0xff] }
 0x9c6   : > { %v10585_v3 = vpop.f32.mrf.mxu0 }
 0x9c7   : > { %v8505_v0 = vadd.f32 %v8494_v2, %v8416_v40  ;;  %v8601_v1 = vadd.f32 %v10585_v3, %v8504_v15  ;;  %v8686_v9 = vpop.f32.mrf.mxu1  ;;  %v12385_v2 = vld [vmem:[#allocation14_spill] sm:$0xff] }
 0x9c8   : > { %v8581_v25 = vpop.f32.mrf.mxu0  ;;  %v7885_v38 = vadd.f32 %v12385_v2, %v7790_v4  ;;  %v8757_v4 = vld [vmem:[%s12353_s13 + $0x8] sm:$0xff] }
 0x9c9   : > { %v8600_v7 = vadd.f32 %v8581_v25, %v8503_v33  ;;  %v8696_v32 = vadd.f32 %v10595_v12, %v8601_v1  ;;  %v8763_v1 = vld [vmem:[%s12354_s14 + $0x18] sm:$0xff] }
 0x9ca   : > { %v10588_v26 = vpop.f32.mrf.mxu0 }
 0x9cb   : > { %v8603_v21 = vadd.f32 %v10588_v26, %v8506_v62  ;;  %v8695_v34 = vadd.f32 %v8676_v39, %v8600_v7  ;;  %v8700_v43 = vmax.f32 %v7886_v31, %v8696_v32  ;;  %v8760_v7 = vld [vmem:[%s12354_s14] sm:$0xff]  ;;  %v8759_v31 = vld [vmem:[%s12353_s13 + $0x18] sm:$0xff] }
 0x9cc   : > { %v8591_v35 = vpop.f32.mrf.mxu0 }
 0x9cd   : > { %v8698_v48 = vadd.f32 %v10598_v44, %v8603_v21  ;;  %v8602_v53 = vadd.f32 %v8591_v35, %v8505_v0  ;;  %v8699_v50 = vmax.f32 %v7885_v38, %v8695_v34  ;;  %v8762_v0 = vld [vmem:[%s12354_s14 + $0x10] sm:$0xff]  ;;  %v10756_v35 = vmov 0  }
 0x9ce   : > { %10692 = vset.pattern.permute.xlu1 %v10756_v35  ;;  %10691 = vset.pattern.permute.xlu0 %v10756_v35  ;;  %v10757_v34 = vmov 0.0  }
 0x9cf   : > { %v8702_v52 = vmax.f32 %v7888_v46, %v8698_v48  ;;  %v8697_v17 = vadd.f32 %v8686_v9, %v8602_v53  ;;  %v8761_v48 = vld [vmem:[%s12354_s14 + $0x8] sm:$0xff]  ;;  %10613 = vmatprep.subr.mxu1 %v10757_v34  ;;  %10621 = vmatprep.mubr.msk.f32.mxu1 %vm10758_vm2, %v10757_v34 }
 0x9d1   : > { %v8701_v55 = vmax.f32 %v7887_v57, %v8697_v17  ;;  %8713 = vrot.lane.b32.xlu0 %v8702_v52, %s10753_s25 }
 0x9d3   : > { %8711 = vrot.lane.b32.xlu1 %v8701_v55, %s10753_s25 }
 0x9d5   : > { %8709 = vrot.lane.b32.xlu0 %v8700_v43, %s10753_s25 }
 0x9d7   : > { %8707 = vrot.lane.b32.xlu1 %v8699_v50, %s10753_s25 }
 0x9d9   : > { %7022 = vrot.lane.b32.xlu0 %v12386_v49, %s10753_s25 }
 0x9db   : > { %7020 = vrot.lane.b32.xlu1 %v12387_v6, %s10753_s25 }
 0x9dd   : > { %7018 = vrot.lane.b32.xlu0 %v12388_v18, %s10753_s25 }
 0x9df   : > { %7016 = vrot.lane.b32.xlu1 %v12389_v41, %s10753_s25  ;;  %s12390_s25 = sld [smem:[#allocation20_spill]] }
 0x9e5   : > { %v8911_v54 = vld [vmem:[%s12390_s25] sm:$0x1f] }
 0xa43   : > { %v8714_v5 = vpop.permute.xlu0 %8713 }
 0xa44   : > { %v8722_v12 = vmax.f32 %v8702_v52, %v8714_v5  ;;  %v8886_v5 = vld [vmem:[%s10860_s19] sm:$0xff] }
 0xa45   : > { %v8712_v60 = vpop.permute.xlu1 %8711  ;;  %vm8890_vm6 = vcmp.ge.f32.partialorder %v8886_v5, 0.25 }
 0xa46   : > { %v8726_v19 = vadd.f32 %v8722_v12, %v5245_v13  ;;  %v8721_v11 = vmax.f32 %v8701_v55, %v8712_v60 }
 0xa47   : > { %v8710_v23 = vpop.permute.xlu0 %8709 }
 0xa48   : > { %v8730_v14 = vmax.f32 %v8726_v19, 0.0  ;;  %v8725_v61 = vadd.f32 %v8721_v11, %v5244_v58  ;;  %v8720_v27 = vmax.f32 %v8700_v43, %v8710_v23 }
 0xa49   : > { %v8708_v28 = vpop.permute.xlu1 %8707 }
 0xa4a   : > { %v8729_v45 = vmax.f32 %v8725_v61, 0.0  ;;  %v8724_v59 = vadd.f32 %v8720_v27, %v5243_v56  ;;  %v8719_v3 = vmax.f32 %v8699_v50, %v8708_v28  ;;  %8741 = vrot.lane.b32.xlu0 %v8730_v14, %s10755_s22  ;;  %v8889_v50 = vld [vmem:[%s10860_s19 + $0x18] sm:$0xff] }
 0xa4b   : > { %v7023_v39 = vpop.permute.xlu0 %7022  ;;  %vm8893_vm3 = vcmp.ge.f32.partialorder %v8889_v50, 0.25 }
 0xa4c   : > { %v8728_v8 = vmax.f32 %v8724_v59, 0.0  ;;  %v8723_v40 = vadd.f32 %v8719_v3, %v5242_v42  ;;  %v7031_v10 = vmax.f32 %v12386_v49, %v7023_v39  ;;  %8739 = vrot.lane.b32.xlu1 %v8729_v45, %s10755_s22  ;;  %v8887_v49 = vld [vmem:[%s10860_s19 + $0x8] sm:$0xff]  ;;  %v9551_v19 = vsel %vm8893_vm3, 1.0, %v10757_v34 }
 0xa4d   : > { %v7021_v25 = vpop.permute.xlu1 %7020  ;;  %vm8891_vm4 = vcmp.ge.f32.partialorder %v8887_v49, 0.25  ;;  %v9548_v59 = vsel %vm8890_vm6, 1.0, %v10757_v34 }
 0xa4e   : > { %v8727_v15 = vmax.f32 %v8723_v40, 0.0  ;;  %v7035_v62 = vadd.f32 %v7031_v10, %v5245_v13  ;;  %v7030_v63 = vmax.f32 %v12387_v6, %v7021_v25  ;;  %8737 = vrot.lane.b32.xlu0 %v8728_v8, %s10755_s22  ;;  %v9549_v61 = vsel %vm8891_vm4, 1.0, %v10757_v34 }
 0xa4f   : > { %v7019_v16 = vpop.permute.xlu0 %7018 }
 0xa50   : > { %v7039_v47 = vmax.f32 %v7035_v62, 0.0  ;;  %v7034_v26 = vadd.f32 %v7030_v63, %v5244_v58  ;;  %v7029_v44 = vmax.f32 %v12388_v18, %v7019_v16  ;;  %8735 = vrot.lane.b32.xlu1 %v8727_v15, %s10755_s22  ;;  %v8910_v15 = vld [vmem:[%s12391_s15] sm:$0x1f] }
 0xa51   : > { %v7017_v33 = vpop.permute.xlu1 %7016 }
 0xa52   : > { %v7038_v21 = vmax.f32 %v7034_v26, 0.0  ;;  %v7033_v22 = vadd.f32 %v7029_v44, %v5243_v56  ;;  %v7028_v20 = vmax.f32 %v12389_v41, %v7017_v33  ;;  %7044 = vst.msk [vmem:[#allocation5 + $0x18] sm:$0xff] %vm7040_vm0, %v7039_v47  ;;  %8781 = vperm.xlu0 %10691, %v8763_v1   ;;  %v8888_v41 = vld [vmem:[%s10860_s19 + $0x10] sm:$0xff] }
 0xa53   : > { %vm8892_vm5 = vcmp.ge.f32.partialorder %v8888_v41, 0.25 }
 0xa54   : > { %v7037_v37 = vmax.f32 %v7033_v22, 0.0  ;;  %v7032_v46 = vadd.f32 %v7028_v20, %v5242_v42  ;;  %7043 = vst.msk [vmem:[#allocation5 + $0x10] sm:$0xff] %vm7040_vm0, %v7038_v21  ;;  %8776 = vperm.xlu1 %10692, %v8762_v0   ;;  %v9550_v27 = vsel %vm8892_vm5, 1.0, %v10757_v34 }
 0xa56   : > { %v7036_v53 = vmax.f32 %v7032_v46, 0.0  ;;  %7042 = vst.msk [vmem:[#allocation5 + $0x8] sm:$0xff] %vm7040_vm0, %v7037_v37  ;;  %8766 = vperm.xlu0 %10691, %v8760_v7  }
 0xa58   : > { %7041 = vst.msk [vmem:[#allocation5] sm:$0xff] %vm7040_vm0, %v7036_v53  ;;  %8771 = vperm.xlu1 %10692, %v8761_v48  }
 0xa5c   : > { %8914 = vperm.xlu1 %10692, %v8911_v54  }
 0xabc   : > { %v8742_v30 = vpop.permute.xlu0 %8741 }
 0xabd   : > { %8751 = vst.msk [vmem:[#allocation5 + $0x18] sm:$0xff] %vm8747_vm1, %v8742_v30 }
 0xabe   : > { %v8740_v9 = vpop.permute.xlu1 %8739 }
 0xabf   : > { %8750 = vst.msk [vmem:[#allocation5 + $0x10] sm:$0xff] %vm8747_vm1, %v8740_v9 }
 0xac0   : > { %v8738_v29 = vpop.permute.xlu0 %8737 }
 0xac1   : > { %8749 = vst.msk [vmem:[#allocation5 + $0x8] sm:$0xff] %vm8747_vm1, %v8738_v29 }
 0xac2   : > { %v8736_v57 = vpop.permute.xlu1 %8735 }
 0xac3   : > { %8748 = vst.msk [vmem:[#allocation5] sm:$0xff] %vm8747_vm1, %v8736_v57 }
 0xac4   : > { %v8755_v32 = vld [vmem:[#allocation5 + $0x18] sm:$0xff] }
 0xac5   : > { %10599 = vmatprep.subr.mxu0 %v8755_v32 }
 0xac6   : > { %10600 = vmatpush3.msra.mxu0 %v8755_v32  ;;  %v8754_v52 = vld [vmem:[#allocation5 + $0x10] sm:$0xff] }
 0xac7   : > { %10601 = vmatprep.subr.mxu0 %v8754_v52 }
 0xac8   : > { %10602 = vmatpush3.msra.mxu0 %v8754_v52  ;;  %v8753_v17 = vld [vmem:[#allocation5 + $0x8] sm:$0xff] }
 0xac9   : > { %10603 = vmatprep.subr.mxu0 %v8753_v17 }
 0xaca   : > { %10604 = vmatpush3.msra.mxu0 %v8753_v17  ;;  %v8752_v51 = vld [vmem:[#allocation5] sm:$0xff] }
 0xacb   : > { %10605 = vmatprep.subr.mxu0 %v8752_v51 }
 0xacc   : > { %10606 = vmatpush3.msra.mxu0 %v8752_v51 }
 0xacd   : > { %10608 = vmatmul.mubr.msk.f32.vlgmr.msra.gmra.mxu0 %vm8784_vm15, %v8757_v4  ;;  %v8782_v2 = vpop.permute.xlu0 %8781 }
 0xace   : > { %10610 = vmatprep.mubr.msk.f32.mxu0 %vm8784_vm15, %v8758_v24 }
 0xacf   : > { %v8777_v55 = vpop.permute.xlu1 %8776 }
 0xad1   : > { %10611 = vmatmul.mubr.msk.f32.gmra.mxu0 %vm8784_vm15, %v8759_v31  ;;  %v8767_v6 = vpop.permute.xlu0 %8766 }
 0xad3   : > { %v8772_v43 = vpop.permute.xlu1 %8771 }
 0xad7   : > { %v8915_v62 = vpop.permute.xlu1 %8914 }
 0xb8d   : > { %v10609_v38 = vpop.f32.mrf.mxu0 }
 0xb8e   : > { %v8869_v13 = vadd.f32 %v10609_v38, %v8772_v43 }
 0xb8f   : > { %v8863_v18 = vpop.f32.mrf.mxu0 }
 0xb90   : > { %v8864_v58 = vadd.f32 %v8863_v18, %v8767_v6  ;;  %v8883_v56 = vmax.f32 %v8869_v13, 0.0 }
 0xb91   : > { %v10612_v12 = vpop.f32.mrf.mxu0 }
 0xb92   : > { %v8879_v60 = vadd.f32 %v10612_v12, %v8782_v2  ;;  %v8882_v42 = vmax.f32 %v8864_v58, 0.0  ;;  %v8903_v3 = vmul.f32 %v9549_v61, %v8883_v56 }
 0xb93   : > { %v8873_v11 = vpop.f32.mrf.mxu0 }
 0xb94   : > { %v8885_v23 = vmax.f32 %v8879_v60, 0.0  ;;  %v8874_v14 = vadd.f32 %v8873_v11, %v8777_v55  ;;  %v8902_v40 = vmul.f32 %v9548_v59, %v8882_v42  ;;  %v8907_v36 = vmul.f32 1.3333334, %v8903_v3 }
 0xb96   : > { %v8905_v28 = vmul.f32 %v9551_v19, %v8885_v23  ;;  %v8884_v45 = vmax.f32 %v8874_v14, 0.0  ;;  %v8906_v25 = vmul.f32 1.3333334, %v8902_v40 }
 0xb98   : > { %v8909_v39 = vmul.f32 1.3333334, %v8905_v28  ;;  %v8904_v8 = vmul.f32 %v9550_v27, %v8884_v45 }
 0xb9a   : > { %v8908_v10 = vmul.f32 1.3333334, %v8904_v8  ;;  %10614 = vmatpush3.msra.mxu1 %v8909_v39 }
 0xb9b   : > { %10615 = vmatprep.subr.mxu1 %v10757_v34 }
 0xb9c   : > { %10616 = vmatpush3.msra.mxu1 %v8908_v10 }
 0xb9d   : > { %10617 = vmatprep.subr.mxu1 %v10757_v34 }
 0xb9e   : > { %10618 = vmatpush3.msra.mxu1 %v8907_v36 }
 0xb9f   : > { %10619 = vmatprep.subr.mxu1 %v10757_v34 }
 0xba0   : > { %10620 = vmatpush3.msra.mxu1 %v8906_v25 }
 0xba1   : > { %10622 = vmatmul.mubr.msk.f32.vlgmr.msra.gmra.mxu1 %vm8784_vm15, %v8910_v15 }
 0xc61   : > { %v8986_v63 = vpop.f32.mrf.mxu1 }
 0xc62   : > { %v8987_v16 = vadd.f32 %v8986_v63, %v8915_v62 }
 0xc63   : > { %v10623_v47 = vpop.f32.mrf.mxu1 }
 0xc64   : > { %v8991_v26 = vsel %vm8990_vm7, %v8987_v16, -inf }
 0xc65   : > { %v8992_v44 = vrot.slane %v8991_v26, 4 }
 0xc67   : > { %v8993_v33 = vmax.f32 %v8991_v26, %v8992_v44 }
 0xc69   : > { %v8994_v0 = vrot.slane %v8993_v33, 2 }
 0xc6b   : > { %v8995_v1 = vmax.f32 %v8993_v33, %v8994_v0 }
 0xc6d   : > { %v8996_v21 = vrot.slane %v8995_v1, 1 }
 0xc6f   : > { %v8997_v22 = vmax.f32 %v8995_v1, %v8996_v21 }
 0xc71   : > { %v8998_v20 = vsub.f32 %v8987_v16, %v8997_v22 }
 0xc73   : > { %v8999_v35 = vmul.f32 1.442695, %v8998_v20 }
 0xc75   : > { %10693 = vpow2.f32 %v8999_v35 }
 0xc82   : > { %v10694_v37 = vpop.eup %10693 }
 0xc83   : > { %v9001_v46 = vsel %vm8990_vm7, %v10694_v37, 0.0 }
 0xc84   : > { %v9002_v7 = vrot.slane %v9001_v46, 4 }
 0xc86   : > { %v9003_v48 = vadd.f32 %v9002_v7, %v9001_v46 }
 0xc88   : > { %v9004_v53 = vrot.slane %v9003_v48, 2 }
 0xc8a   : > { %v9005_v54 = vadd.f32 %v9004_v53, %v9003_v48 }
 0xc8c   : > { %v9006_v30 = vrot.slane %v9005_v54, 1 }
 0xc8e   : > { %v9007_v9 = vadd.f32 %v9006_v30, %v9005_v54 }
 0xc90   : > { %10695 = vlog2.f32 %v9007_v9 }
 0xc9d   : > { %v10696_v29 = vpop.eup %10695 }
 0xc9e   : > { %v9009_v57 = vmul.f32 0.6931472, %v10696_v29 }
 0xca0   : > { %v9010_v32 = vsub.f32 %v8998_v20, %v9009_v57 }
 0xca2   : > { %9011 = vst.msk [vmem:[%s10865_s21] sm:$0x1f] %vm8990_vm7, %v9010_v32 }
 0xca3 PF: > { %s12392_s16 = sld [smem:[#allocation6_spill]] }
 0xca9   : > { %s27_s24 = sadd.s32 1, %s12392_s16  }
 0xcaa   : > { %p24_p9 = scmp.ge.s32.totalorder %s27_s24, 4  }
 0xcac   :  { %26 = sbr.rel (!%p24_p9) target bundleno = 5 (0x5), region = 247 }

</bundles_post_ra>
